<compile_context>
chip_gen: v7x
topology: tpu7x:2x2x1
jax: 0.10.0
libtpu: 0.0.40
codegen_flags: <defaults>
</compile_context>

<pallas_src>
import numpy as np
import jax
import jax.numpy as jnp
from jax import lax
from jax.experimental import pallas as pl
from jax.experimental.pallas import tpu as pltpu

CH = 128
UPC = 8 * 8 * 9          # 576 upmask channels
CUF = 640                # fused matmul width: 576 upmask + 9 eta taps + padding
# 48 MiB scoped VMEM: above the v5e/v6e defaults, but leaves headroom under
# v7x's 64 MiB physical VMEM (perf-review item).
VMEM_LIMIT = 48 * 1024 * 1024


def _pick_row_tile(H):
    """Head-kernel row-tile size (output rows per grid step)."""
    for th in (32, 16, 8):
        if th < H and H % th == 0:
            return th
    return H


# ----------------------------------------------------------------------------
# Shared in-kernel 3x3 conv (+bias+ReLU) with the dx taps K-stacked for the MXU
# (3 matmuls of K = 3*128 instead of 9 of K = 128).
#   slab  : (hout+2, W, C) bf16 -- input rows for output rows [0, hout), with
#           one extra row above/below (zeros at image borders, real rows inside)
#   w_ref : (3, 3*C, CO) bf16 ref -- one K-stacked slab per dy
#   b_ref : (1, CO) f32 ref
# returns (hout*W, CO) f32 = relu(conv + b)
# ----------------------------------------------------------------------------
def _conv3x3_relu_ks(slab, w_ref, b_ref, hout, W, C):
    hp = hout + 2
    zc = jnp.zeros((hp, 1, C), slab.dtype)
    xpw = jnp.concatenate([zc, slab, zc], axis=1)            # (hp, W+2, C)
    xs = jnp.concatenate(
        [xpw[:, 0:W, :], xpw[:, 1:W + 1, :], xpw[:, 2:W + 2, :]],
        axis=-1)                                             # (hp, W, 3C) bf16
    acc = jnp.zeros((hout * W, w_ref.shape[-1]), jnp.float32)
    for dy in range(3):
        acc = acc + jnp.dot(xs[dy:dy + hout].reshape(hout * W, 3 * C),
                            w_ref[dy], preferred_element_type=jnp.float32)
    return jnp.maximum(acc + b_ref[...], 0.0)


# ----------------------------------------------------------------------------
# Kernel 1: fused conv1(3x3) + ReLU + scatter_mean over the frame axis.
# Frames are visited sorted by group (scalar-prefetched permutation); the
# output block index comes from the prefetched group ids so each (b, g) sum
# stays resident in VMEM.  The 1/count scale is applied once, on the last frame
# of each group.
# ----------------------------------------------------------------------------
def conv1_scatter_mean(x, perm, ix_s, first, last, cnt, w1s, b1, G):
    B, num, HP, W, C = x.shape      # HP = H + 2 (wrapper-padded rows)
    H = HP - 2

    def kernel(perm_ref, ix_ref, first_ref, last_ref, cnt_ref,
               x_ref, w_ref, b_ref, o_ref):
        del perm_ref, ix_ref                      # only used in the index_maps
        n = pl.program_id(1)
        slab = x_ref[...].reshape(HP, W, C)                       # bf16
        h = _conv3x3_relu_ks(slab, w_ref, b_ref, H, W, C)         # (H*W, C) f32
        hb = h.reshape(1, 1, H, W, C)

        @pl.when(first_ref[n] == 1)
        def _():
            o_ref[...] = hb

        @pl.when(first_ref[n] == 0)
        def _():
            o_ref[...] = o_ref[...] + hb

        @pl.when(last_ref[n] == 1)
        def _():
            o_ref[...] = o_ref[...] * (1.0 / cnt_ref[n].astype(jnp.float32))

    return pl.pallas_call(
        kernel,
        out_shape=jax.ShapeDtypeStruct((B, G, H, W, C), jnp.float32),
        grid_spec=pltpu.PrefetchScalarGridSpec(
            num_scalar_prefetch=5,
            grid=(B, num),
            in_specs=[
                pl.BlockSpec((1, 1, HP, W, C),
                             lambda b, n, perm, ix, first, last, cnt:
                                 (b, perm[n], 0, 0, 0)),
                pl.BlockSpec((3, 3 * C, C), lambda b, n, *_: (0, 0, 0)),
                pl.BlockSpec((1, C), lambda b, n, *_: (0, 0)),
            ],
            out_specs=pl.BlockSpec((1, 1, H, W, C),
                                   lambda b, n, perm, ix, first, last, cnt:
                                       (b, ix[n], 0, 0, 0)),
        ),
        # NOTE: the frame axis MUST stay innermost and "arbitrary": the running
        # (b, group) sum lives in the resident output block and relies on the
        # group-sorted visit order.  Do not reorder it or mark it "parallel".
        # TODO(synk): on v7x with B == 1 this leaves the second TensorCore
        # idle; an H row-tile axis (as in the head kernel) would fix that.
        compiler_params=pltpu.CompilerParams(
            dimension_semantics=("parallel", "arbitrary"),
            vmem_limit_bytes=VMEM_LIMIT),
    )(perm, ix_s, first, last, cnt, x, w1s, b1)


# ----------------------------------------------------------------------------
# Kernel 2 (fused head): conv2(3x3)+ReLU, then ONE fused MXU matmul whose
# columns [0,576) are the upmask 1x1 conv and columns [576,585) the eta 3x3
# per-tap maps, followed by the eta shifted-tap sum + Softplus.
# Row-tiled over H (TH output rows / step, 1-row halo of h for the eta conv).
# ----------------------------------------------------------------------------
def head_pallas(gp, w2s, b2, wf, bfu, be, H, TH):
    N, HP4, W, C = gp.shape         # HP4 = H + 4 (2 padded rows each side)
    n_th = H // TH

    def kernel(gp_ref, w2_ref, b2_ref, wf_ref, bf_ref, be_ref,
               eta_ref, up_ref):
        t = pl.program_id(1)
        r0 = pl.multiple_of(t * TH, TH)        # first output row of this tile
        # input rows needed: global [r0-2, r0+TH+2) == padded rows [r0, r0+TH+4)
        gslab = gp_ref[0, pl.ds(r0, TH + 4), :, :]                 # bf16
        # conv2 for the TH output rows plus a 1-row halo (eta's 3x3 needs it)
        h = _conv3x3_relu_ks(gslab, w2_ref, b2_ref, TH + 2, W, C)  # f32
        hb = h.astype(jnp.bfloat16)

        # fused [upmask | eta taps] matmul: ((TH+2)*W, 640)
        f = jnp.dot(hb, wf_ref[...],
                    preferred_element_type=jnp.float32) + bf_ref[...]

        # upmask: center TH rows, first 576 columns
        up_ref[...] = f[W:W + TH * W, :UPC].reshape(1, TH, W, UPC)

        # eta: per-tap maps over all TH+2 halo rows -> shifted-add -> Softplus
        E = f[:, UPC:UPC + 9].reshape(TH + 2, W, 9)
        grow = r0 - 1 + lax.broadcasted_iota(jnp.int32, (TH + 2, W, 9), 0)
        E = jnp.where((grow >= 0) & (grow < H), E, 0.0)   # zero outside image
        zc = jnp.zeros((TH + 2, 1, 9), jnp.float32)
        Ep = jnp.concatenate([zc, E, zc], axis=1)         # (TH+2, W+2, 9)
        lane = lax.broadcasted_iota(jnp.int32, (TH, W, 9), 2)
        acc9 = jnp.zeros((TH, W, 9), jnp.float32)
        for k in range(9):
            dy, dx = divmod(k, 3)
            acc9 = acc9 + jnp.where(lane == k,
                                    Ep[dy:dy + TH, dx:dx + W, :], 0.0)
        z = jnp.sum(acc9, axis=-1) + be_ref[...]          # (TH, W)
        # PyTorch Softplus (beta=1, threshold=20)
        sp = jnp.where(z > 20.0, z, jnp.log1p(jnp.exp(jnp.minimum(z, 20.0))))
        eta_ref[...] = (0.01 * sp).reshape(1, TH, W)      # lane-dense (W last)

    return pl.pallas_call(
        kernel,
        out_shape=(
            jax.ShapeDtypeStruct((N, H, W), jnp.float32),
            jax.ShapeDtypeStruct((N, H, W, UPC), jnp.float32),
        ),
        grid=(N, n_th),
        in_specs=[
            pl.BlockSpec((1, HP4, W, C), lambda n, t: (n, 0, 0, 0)),
            pl.BlockSpec((3, 3 * C, C), lambda n, t: (0, 0, 0)),
            pl.BlockSpec((1, C), lambda n, t: (0, 0)),
            pl.BlockSpec((C, CUF), lambda n, t: (0, 0)),
            pl.BlockSpec((1, CUF), lambda n, t: (0, 0)),
            pl.BlockSpec((1, 1), lambda n, t: (0, 0)),
        ],
        out_specs=[
            pl.BlockSpec((1, TH, W), lambda n, t: (n, t, 0)),
            pl.BlockSpec((1, TH, W, UPC), lambda n, t: (n, t, 0, 0)),
        ],
        compiler_params=pltpu.CompilerParams(
            dimension_semantics=("parallel", "parallel"),
            vmem_limit_bytes=VMEM_LIMIT),
    )(gp, w2s, b2, wf, bfu, be)


# ----------------------------------------------------------------------------
# Param prep: module-style conv weights (9, Cin, Cout), tap k = dy*3 + dx, are
# re-stacked to (3, 3*Cin, Cout) (dx taps along K) and cast to bf16.  The eta
# 3x3 weights (128 -> 1) are folded into the upmask 1x1 weights as 9 extra
# columns of one fused (128, 640) matmul (biases stay f32).
# ----------------------------------------------------------------------------
def prep_params(params):
    w1, b1, w2, b2, we, be, wu, bu = params
    w1s = w1.reshape(3, 3 * CH, CH).astype(jnp.bfloat16)
    w2s = w2.reshape(3, 3 * CH, CH).astype(jnp.bfloat16)
    we_mat = jnp.transpose(we.reshape(9, CH), (1, 0))        # (128, 9), [c, k]
    wf = jnp.zeros((CH, CUF), jnp.float32)
    wf = wf.at[:, :UPC].set(wu).at[:, UPC:UPC + 9].set(we_mat)
    bfu = jnp.zeros((1, CUF), jnp.float32).at[:, :UPC].set(bu)
    return w1s, b1, w2s, b2, wf.astype(jnp.bfloat16), bfu, be


# ----------------------------------------------------------------------------
# Wrapper: full GraphAgg forward pass
# ----------------------------------------------------------------------------
def graph_agg_forward(net, ii, params):
    """net: (batch, num, 128, ht, wd) float32 ; ii: (num,) int32."""
    w1s, b1, w2s, b2, wf, bfu, be = prep_params(params)
    B, num, C, H, W = net.shape
    assert C == CH

    # TODO(synk): torch.unique-style grouping of ii is done host-side with
    # numpy, so this wrapper is not jittable over a traced ii (and recompiles
    # when num / G change).
    ii_np = np.asarray(ii)
    _, ix = np.unique(ii_np, return_inverse=True)
    ix = ix.astype(np.int32)
    G = int(ix.max()) + 1
    counts = np.bincount(ix, minlength=G).astype(np.int32)
    perm = np.argsort(ix, kind="stable").astype(np.int32)   # frames grouped
    ix_s = ix[perm]
    first = np.ones(num, np.int32)
    last = np.ones(num, np.int32)
    if num > 1:
        brk = (ix_s[1:] != ix_s[:-1]).astype(np.int32)
        first[1:] = brk
        last[:-1] = brk
    cnt_s = counts[ix_s]

    # One wrapper pass over the input: NCHW -> NHWC, +1 zero row of H padding
    # each side (so the kernel never stages padded copies), cast to bf16.
    x = jnp.pad(jnp.transpose(net, (0, 1, 3, 4, 2)),
                ((0, 0), (0, 0), (1, 1), (0, 0), (0, 0))).astype(jnp.bfloat16)

    gmean = conv1_scatter_mean(
        x, jnp.asarray(perm), jnp.asarray(ix_s), jnp.asarray(first),
        jnp.asarray(last), jnp.asarray(cnt_s), w1s, b1, G)   # (B,G,H,W,C) f32

    # Group means are small: pad 2 zero rows each side (row-tile halo) and cast
    # to bf16 before the head kernel.
    gp = jnp.pad(gmean.reshape(B * G, H, W, CH),
                 ((0, 0), (2, 2), (0, 0), (0, 0))).astype(jnp.bfloat16)

    TH = _pick_row_tile(H)
    eta, up = head_pallas(gp, w2s, b2, wf, bfu, be, H, TH)

    eta_out = eta.reshape(B, G, H, W)                        # 0.01 * Softplus
    # NHWC -> NCHW permute only to match the PyTorch output layout; drop it if
    # the consumer (convex upsampling) can take the NHWC upmask directly.
    up_out = jnp.transpose(up, (0, 3, 1, 2)).reshape(B, G, UPC, H, W)
    return eta_out, up_out


# ----------------------------------------------------------------------------
# Pure-JAX f32 reference (for correctness check)
# ----------------------------------------------------------------------------
def reference_forward(net, ii, params):
    w1, b1, w2, b2, we, be, wu, bu = params
    B, num, C, H, W = net.shape

    def conv3(x_nhwc, w, b):  # w: (9, ci, co)
        hw = w.reshape(3, 3, w.shape[1], w.shape[2])
        y = lax.conv_general_dilated(
            x_nhwc, hw, (1, 1), 'SAME',
            dimension_numbers=('NHWC', 'HWIO', 'NHWC'))
        return y + b.reshape(1, 1, 1, -1)

    x = jnp.transpose(net.reshape(B * num, C, H, W), (0, 2, 3, 1))
    h1 = jax.nn.relu(conv3(x, w1, b1)).reshape(B, num, H, W, C)

    _, ix = np.unique(np.asarray(ii), return_inverse=True)
    G = int(ix.max()) + 1
    groups = []
    for gidx in range(G):
        sel = jnp.asarray(np.where(ix == gidx)[0])
        groups.append(jnp.take(h1, sel, axis=1).mean(axis=1))
    gm = jnp.stack(groups, axis=1).reshape(B * G, H, W, C)

    h2 = jax.nn.relu(conv3(gm, w2, b2))
    we_hwio = jnp.transpose(we.reshape(3, 3, 1, C), (0, 1, 3, 2))  # (3,3,128,1)
    eta = jax.nn.softplus(
        lax.conv_general_dilated(h2, we_hwio, (1, 1), 'SAME',
                                 dimension_numbers=('NHWC', 'HWIO', 'NHWC'))
        + be.reshape(1, 1, 1, -1))
    up = jnp.einsum('nhwc,cd->nhwd', h2, wu) + bu.reshape(1, 1, 1, -1)

    eta_out = 0.01 * eta.reshape(B, G, H, W)
    up_out = jnp.transpose(up, (0, 3, 1, 2)).reshape(B, G, UPC, H, W)
    return eta_out, up_out


# ----------------------------------------------------------------------------
def make_params(key):
    ks = jax.random.split(key, 8)
    s3 = 1.0 / np.sqrt(9 * CH)
    s1 = 1.0 / np.sqrt(CH)
    w1 = jax.random.normal(ks[0], (9, CH, CH), jnp.float32) * s3
    b1 = jax.random.normal(ks[1], (1, CH), jnp.float32) * 0.01
    w2 = jax.random.normal(ks[2], (9, CH, CH), jnp.float32) * s3
    b2 = jax.random.normal(ks[3], (1, CH), jnp.float32) * 0.01
    we = jax.random.normal(ks[4], (9, 1, CH), jnp.float32) * s3
    be = jax.random.normal(ks[5], (1, 1), jnp.float32) * 0.01
    wu = jax.random.normal(ks[6], (CH, UPC), jnp.float32) * s1
    bu = jax.random.normal(ks[7], (1, UPC), jnp.float32) * 0.01
    return (w1, b1, w2, b2, we, be, wu, bu)


if __name__ == "__main__":
    key = jax.random.PRNGKey(0)
    kp, kn = jax.random.split(key)
    params = make_params(kp)

    B, num, H, W = 2, 5, 32, 16          # head row-tile TH=16 -> 2 row tiles
    net = jax.random.normal(kn, (B, num, CH, H, W), jnp.float32)
    ii = jnp.array([2, 0, 0, 1, 2], dtype=jnp.int32)   # 3 groups, sizes 2/1/2

    eta, upmask = graph_agg_forward(net, ii, params)
    jax.block_until_ready((eta, upmask))

    assert eta.shape == (B, 3, H, W), eta.shape
    assert upmask.shape == (B, 3, UPC, H, W), upmask.shape

    eta_ref, up_ref = reference_forward(net, ii, params)
    # bf16 matmul operands vs the pure-f32 reference: |error| std is a few 1e-3
    # on upmask (values are O(1)) and ~1e-4 on eta, so these tolerances keep a
    # large safety margin while still catching structural bugs.
    np.testing.assert_allclose(np.asarray(eta), np.asarray(eta_ref),
                               rtol=5e-2, atol=5e-3)
    np.testing.assert_allclose(np.asarray(upmask), np.asarray(up_ref),
                               rtol=5e-2, atol=2.5e-2)

    print("KERNEL_OK")
</pallas_src>

<mosaic_0001>
module attributes {stable_mosaic.version = 11 : i64} {
  func.func @kernel(%arg0: i32, %arg1: i32, %arg2: memref<5xi32, #tpu.memory_space<smem>>, %arg3: memref<5xi32, #tpu.memory_space<smem>>, %arg4: memref<5xi32, #tpu.memory_space<smem>>, %arg5: memref<5xi32, #tpu.memory_space<smem>>, %arg6: memref<5xi32, #tpu.memory_space<smem>>, %arg7: memref<1x1x34x16x128xbf16, #tpu.memory_space<vmem>>, %arg8: memref<3x384x128xbf16, #tpu.memory_space<vmem>>, %arg9: memref<1x128xf32, #tpu.memory_space<vmem>>, %arg10: memref<1x1x32x16x128xf32, #tpu.memory_space<vmem>>) attributes {dimension_semantics = [#tpu.dimension_semantics<parallel>, #tpu.dimension_semantics<arbitrary>], iteration_bounds = array<i64: 2, 5>, scalar_prefetch = 5 : i64, scratch_operands = 0 : i64, tpu.core_type = #tpu.core_type<tc>, window_params = [{transform_indices = @transform_0, window_bounds = array<i64: 1, 1, 34, 16, 128>}, {pipeline_mode = #tpu.pipeline_mode<synchronous>, transform_indices = @transform_1, window_bounds = array<i64: 3, 384, 128>}, {pipeline_mode = #tpu.pipeline_mode<synchronous>, transform_indices = @transform_2, window_bounds = array<i64: 1, 128>}, {transform_indices = @transform_3, window_bounds = array<i64: 1, 1, 32, 16, 128>}]} {
    %c0 = arith.constant 0 : index
    %c0_0 = arith.constant 0 : index
    %c0_1 = arith.constant 0 : index
    %c0_2 = arith.constant 0 : index
    %c0_3 = arith.constant 0 : index
    %0 = vector.load %arg7[%c0, %c0_0, %c0_1, %c0_2, %c0_3] : memref<1x1x34x16x128xbf16, #tpu.memory_space<vmem>>, vector<1x1x34x16x128xbf16>
    %1 = vector.shape_cast %0 : vector<1x1x34x16x128xbf16> to vector<34x16x128xbf16>
    %cst = arith.constant 0.000000e+00 : bf16
    %2 = vector.broadcast %cst : bf16 to vector<34x1x128xbf16>
    %3 = tpu.concatenate %2, %1, %2 in 1 : vector<34x1x128xbf16>, vector<34x16x128xbf16>, vector<34x1x128xbf16> -> vector<34x18x128xbf16>
    %4 = vector.extract_strided_slice %3 {offsets = [0, 0, 0], sizes = [34, 16, 128], strides = [1, 1, 1]} : vector<34x18x128xbf16> to vector<34x16x128xbf16>
    %5 = vector.extract_strided_slice %3 {offsets = [0, 1, 0], sizes = [34, 16, 128], strides = [1, 1, 1]} : vector<34x18x128xbf16> to vector<34x16x128xbf16>
    %6 = vector.extract_strided_slice %3 {offsets = [0, 2, 0], sizes = [34, 16, 128], strides = [1, 1, 1]} : vector<34x18x128xbf16> to vector<34x16x128xbf16>
    %7 = tpu.concatenate %4, %5, %6 in 2 : vector<34x16x128xbf16>, vector<34x16x128xbf16>, vector<34x16x128xbf16> -> vector<34x16x384xbf16>
    %cst_4 = arith.constant 0.000000e+00 : f32
    %8 = vector.broadcast %cst_4 : f32 to vector<512x128xf32>
    %9 = vector.extract_strided_slice %7 {offsets = [0, 0, 0], sizes = [32, 16, 384], strides = [1, 1, 1]} : vector<34x16x384xbf16> to vector<32x16x384xbf16>
    %10 = vector.shape_cast %9 : vector<32x16x384xbf16> to vector<512x384xbf16>
    %c0_5 = arith.constant 0 : index
    %c0_6 = arith.constant 0 : index
    %c0_7 = arith.constant 0 : index
    %11 = vector.load %arg8[%c0_5, %c0_6, %c0_7] : memref<3x384x128xbf16, #tpu.memory_space<vmem>>, vector<1x384x128xbf16>
    %12 = vector.shape_cast %11 : vector<1x384x128xbf16> to vector<384x128xbf16>
    %cst_8 = arith.constant dense<0.000000e+00> : vector<512x128xf32>
    %13 = tpu.matmul %10, %12, %cst_8 {dimension_numbers = #tpu.dot_dimension_numbers<[1], [0], [0], [1], [0, 0, 1, 1], [], []>} : vector<512x384xbf16>, vector<384x128xbf16>, vector<512x128xf32> -> vector<512x128xf32>
    %14 = arith.addf %8, %13 : vector<512x128xf32>
    %15 = vector.extract_strided_slice %7 {offsets = [1, 0, 0], sizes = [32, 16, 384], strides = [1, 1, 1]} : vector<34x16x384xbf16> to vector<32x16x384xbf16>
    %16 = vector.shape_cast %15 : vector<32x16x384xbf16> to vector<512x384xbf16>
    %c1 = arith.constant 1 : index
    %c0_9 = arith.constant 0 : index
    %c0_10 = arith.constant 0 : index
    %17 = vector.load %arg8[%c1, %c0_9, %c0_10] : memref<3x384x128xbf16, #tpu.memory_space<vmem>>, vector<1x384x128xbf16>
    %18 = vector.shape_cast %17 : vector<1x384x128xbf16> to vector<384x128xbf16>
    %cst_11 = arith.constant dense<0.000000e+00> : vector<512x128xf32>
    %19 = tpu.matmul %16, %18, %cst_11 {dimension_numbers = #tpu.dot_dimension_numbers<[1], [0], [0], [1], [0, 0, 1, 1], [], []>} : vector<512x384xbf16>, vector<384x128xbf16>, vector<512x128xf32> -> vector<512x128xf32>
    %20 = arith.addf %14, %19 : vector<512x128xf32>
    %21 = vector.extract_strided_slice %7 {offsets = [2, 0, 0], sizes = [32, 16, 384], strides = [1, 1, 1]} : vector<34x16x384xbf16> to vector<32x16x384xbf16>
    %22 = vector.shape_cast %21 : vector<32x16x384xbf16> to vector<512x384xbf16>
    %c2 = arith.constant 2 : index
    %c0_12 = arith.constant 0 : index
    %c0_13 = arith.constant 0 : index
    %23 = vector.load %arg8[%c2, %c0_12, %c0_13] : memref<3x384x128xbf16, #tpu.memory_space<vmem>>, vector<1x384x128xbf16>
    %24 = vector.shape_cast %23 : vector<1x384x128xbf16> to vector<384x128xbf16>
    %cst_14 = arith.constant dense<0.000000e+00> : vector<512x128xf32>
    %25 = tpu.matmul %22, %24, %cst_14 {dimension_numbers = #tpu.dot_dimension_numbers<[1], [0], [0], [1], [0, 0, 1, 1], [], []>} : vector<512x384xbf16>, vector<384x128xbf16>, vector<512x128xf32> -> vector<512x128xf32>
    %26 = arith.addf %20, %25 : vector<512x128xf32>
    %c0_15 = arith.constant 0 : index
    %c0_16 = arith.constant 0 : index
    %27 = vector.load %arg9[%c0_15, %c0_16] : memref<1x128xf32, #tpu.memory_space<vmem>>, vector<1x128xf32>
    %28 = vector.broadcast %27 : vector<1x128xf32> to vector<512x128xf32>
    %29 = arith.addf %26, %28 : vector<512x128xf32>
    %cst_17 = arith.constant 0.000000e+00 : f32
    %30 = vector.broadcast %cst_17 : f32 to vector<512x128xf32>
    %31 = arith.maximumf %29, %30 : vector<512x128xf32>
    %32 = vector.shape_cast %31 : vector<512x128xf32> to vector<1x1x32x16x128xf32>
    %33 = arith.index_cast %arg1 : i32 to index
    %34 = memref.load %arg4[%33] : memref<5xi32, #tpu.memory_space<smem>>
    %c1_i32 = arith.constant 1 : i32
    %35 = arith.cmpi eq, %34, %c1_i32 : i32
    %36 = arith.extui %35 : i1 to i32
    %c0_i32 = arith.constant 0 : i32
    %37 = arith.cmpi ne, %36, %c0_i32 : i32
    scf.if %37 {
      %c0_22 = arith.constant 0 : index
      %c0_23 = arith.constant 0 : index
      %c0_24 = arith.constant 0 : index
      %c0_25 = arith.constant 0 : index
      %c0_26 = arith.constant 0 : index
      %48 = vector.load %arg10[%c0_22, %c0_23, %c0_24, %c0_25, %c0_26] : memref<1x1x32x16x128xf32, #tpu.memory_space<vmem>>, vector<1x1x32x16x128xf32>
      tpu.vector_store %arg10[%c0_22, %c0_23, %c0_24, %c0_25, %c0_26], %32 {strides = array<i32>} : memref<1x1x32x16x128xf32, #tpu.memory_space<vmem>>, vector<1x1x32x16x128xf32>,
    } else {
    }
    %38 = arith.index_cast %arg1 : i32 to index
    %39 = memref.load %arg4[%38] : memref<5xi32, #tpu.memory_space<smem>>
    %c0_i32_18 = arith.constant 0 : i32
    %40 = arith.cmpi eq, %39, %c0_i32_18 : i32
    %41 = arith.extui %40 : i1 to i32
    %c0_i32_19 = arith.constant 0 : i32
    %42 = arith.cmpi ne, %41, %c0_i32_19 : i32
    scf.if %42 {
      %c0_22 = arith.constant 0 : index
      %c0_23 = arith.constant 0 : index
      %c0_24 = arith.constant 0 : index
      %c0_25 = arith.constant 0 : index
      %c0_26 = arith.constant 0 : index
      %48 = vector.load %arg10[%c0_22, %c0_23, %c0_24, %c0_25, %c0_26] : memref<1x1x32x16x128xf32, #tpu.memory_space<vmem>>, vector<1x1x32x16x128xf32>
      %49 = arith.addf %48, %32 : vector<1x1x32x16x128xf32>
      %c0_27 = arith.constant 0 : index
      %c0_28 = arith.constant 0 : index
      %c0_29 = arith.constant 0 : index
      %c0_30 = arith.constant 0 : index
      %c0_31 = arith.constant 0 : index
      %50 = vector.load %arg10[%c0_27, %c0_28, %c0_29, %c0_30, %c0_31] : memref<1x1x32x16x128xf32, #tpu.memory_space<vmem>>, vector<1x1x32x16x128xf32>
      tpu.vector_store %arg10[%c0_27, %c0_28, %c0_29, %c0_30, %c0_31], %49 {strides = array<i32>} : memref<1x1x32x16x128xf32, #tpu.memory_space<vmem>>, vector<1x1x32x16x128xf32>,
    } else {
    }
    %43 = arith.index_cast %arg1 : i32 to index
    %44 = memref.load %arg5[%43] : memref<5xi32, #tpu.memory_space<smem>>
    %c1_i32_20 = arith.constant 1 : i32
    %45 = arith.cmpi eq, %44, %c1_i32_20 : i32
    %46 = arith.extui %45 : i1 to i32
    %c0_i32_21 = arith.constant 0 : i32
    %47 = arith.cmpi ne, %46, %c0_i32_21 : i32
    scf.if %47 {
      %c0_22 = arith.constant 0 : index
      %c0_23 = arith.constant 0 : index
      %c0_24 = arith.constant 0 : index
      %c0_25 = arith.constant 0 : index
      %c0_26 = arith.constant 0 : index
      %48 = vector.load %arg10[%c0_22, %c0_23, %c0_24, %c0_25, %c0_26] : memref<1x1x32x16x128xf32, #tpu.memory_space<vmem>>, vector<1x1x32x16x128xf32>
      %49 = arith.index_cast %arg1 : i32 to index
      %50 = memref.load %arg6[%49] : memref<5xi32, #tpu.memory_space<smem>>
      %51 = arith.sitofp %50 : i32 to f32
      %cst_27 = arith.constant 1.000000e+00 : f32
      %52 = arith.divf %cst_27, %51 : f32
      %53 = vector.broadcast %52 : f32 to vector<1x1x32x16x128xf32>
      %54 = arith.mulf %48, %53 : vector<1x1x32x16x128xf32>
      %c0_28 = arith.constant 0 : index
      %c0_29 = arith.constant 0 : index
      %c0_30 = arith.constant 0 : index
      %c0_31 = arith.constant 0 : index
      %c0_32 = arith.constant 0 : index
      %55 = vector.load %arg10[%c0_28, %c0_29, %c0_30, %c0_31, %c0_32] : memref<1x1x32x16x128xf32, #tpu.memory_space<vmem>>, vector<1x1x32x16x128xf32>
      tpu.vector_store %arg10[%c0_28, %c0_29, %c0_30, %c0_31, %c0_32], %54 {strides = array<i32>} : memref<1x1x32x16x128xf32, #tpu.memory_space<vmem>>, vector<1x1x32x16x128xf32>,
    } else {
    }
    return
  }
  func.func @transform_0(%arg0: i32, %arg1: i32, %arg2: memref<5xi32, #tpu.memory_space<smem>>, %arg3: memref<5xi32, #tpu.memory_space<smem>>, %arg4: memref<5xi32, #tpu.memory_space<smem>>, %arg5: memref<5xi32, #tpu.memory_space<smem>>, %arg6: memref<5xi32, #tpu.memory_space<smem>>) -> (i32, i32, i32, i32, i32) {
    %0 = arith.index_cast %arg1 : i32 to index
    %1 = memref.load %arg2[%0] : memref<5xi32, #tpu.memory_space<smem>>
    %c0_i32 = arith.constant 0 : i32
    %c0_i32_0 = arith.constant 0 : i32
    %c0_i32_1 = arith.constant 0 : i32
    %c0_i32_2 = arith.constant 0 : i32
    return %arg0, %1, %c0_i32, %c0_i32_0, %c0_i32_1 : i32, i32, i32, i32, i32
  }
  func.func @transform_1(%arg0: i32, %arg1: i32, %arg2: memref<5xi32, #tpu.memory_space<smem>>, %arg3: memref<5xi32, #tpu.memory_space<smem>>, %arg4: memref<5xi32, #tpu.memory_space<smem>>, %arg5: memref<5xi32, #tpu.memory_space<smem>>, %arg6: memref<5xi32, #tpu.memory_space<smem>>) -> (i32, i32, i32) {
    %c0_i32 = arith.constant 0 : i32
    %c0_i32_0 = arith.constant 0 : i32
    %c0_i32_1 = arith.constant 0 : i32
    %c0_i32_2 = arith.constant 0 : i32
    return %c0_i32, %c0_i32_0, %c0_i32_1 : i32, i32, i32
  }
  func.func @transform_2(%arg0: i32, %arg1: i32, %arg2: memref<5xi32, #tpu.memory_space<smem>>, %arg3: memref<5xi32, #tpu.memory_space<smem>>, %arg4: memref<5xi32, #tpu.memory_space<smem>>, %arg5: memref<5xi32, #tpu.memory_space<smem>>, %arg6: memref<5xi32, #tpu.memory_space<smem>>) -> (i32, i32) {
    %c0_i32 = arith.constant 0 : i32
    %c0_i32_0 = arith.constant 0 : i32
    %c0_i32_1 = arith.constant 0 : i32
    return %c0_i32, %c0_i32_0 : i32, i32
  }
  func.func @transform_3(%arg0: i32, %arg1: i32, %arg2: memref<5xi32, #tpu.memory_space<smem>>, %arg3: memref<5xi32, #tpu.memory_space<smem>>, %arg4: memref<5xi32, #tpu.memory_space<smem>>, %arg5: memref<5xi32, #tpu.memory_space<smem>>, %arg6: memref<5xi32, #tpu.memory_space<smem>>) -> (i32, i32, i32, i32, i32) {
    %0 = arith.index_cast %arg1 : i32 to index
    %1 = memref.load %arg3[%0] : memref<5xi32, #tpu.memory_space<smem>>
    %c0_i32 = arith.constant 0 : i32
    %c0_i32_0 = arith.constant 0 : i32
    %c0_i32_1 = arith.constant 0 : i32
    %c0_i32_2 = arith.constant 0 : i32
    return %arg0, %1, %c0_i32, %c0_i32_0, %c0_i32_1 : i32, i32, i32, i32, i32
  }
}

</mosaic_0001>

<bundles_post_ra>
// kernel: tpu_custom_call.1
= control target key start
LH: loop header
LB: loop body
LE: loop exit
PB: predicated region body
PF: predicated region fallthrough
CT: control target
= control target key end

     0   :  { %s8979_s0 = inlined_call_operand.hbm [shape: s32[5], index: 0, kind: input, shape index: {}]   ;;  %s8980_s5 = inlined_call_operand.hbm [shape: bf16[2,5,34,16,128], index: 5, kind: input, shape index: {}]   ;;  %s8981_s6 = inlined_call_operand.hbm [shape: bf16[3,384,128], index: 6, kind: input, shape index: {}]   ;;  %s8982_s7 = inlined_call_operand.hbm [shape: f32[1,128], index: 7, kind: input, shape index: {}]   ;;  %s8983_s8 = inlined_call_operand.hbm [shape: f32[2,3,32,16,128], index: 8, kind: output, shape index: {}]   ;;  %s8984_s1 = inlined_call_operand.hbm [shape: s32[5], index: 1, kind: input, shape index: {}]   ;;  %s8985_s2 = inlined_call_operand.hbm [shape: s32[5], index: 2, kind: input, shape index: {}]   ;;  %s8986_s3 = inlined_call_operand.hbm [shape: s32[5], index: 3, kind: input, shape index: {}]   ;;  %s8987_s4 = inlined_call_operand.hbm [shape: s32[5], index: 4, kind: input, shape index: {}]  }
   0x1   :  { %9141 = sst [smem:[#allocation152_spill]] %s8981_s6  ;;  %s5384_s29 = scalar_lea.hbm %s8979_s0, 16 }
   0x2   :  { %9142 = sst [smem:[#allocation153_spill]] %s8982_s7  ;;  %p5385_p0 = scmp.ne.s32.totalorder %s8979_s0, %s5384_s29 }
   0x3   :  { %p5388_p1 = scmp.lt.u32.totalorder %s5384_s29, %s8979_s0 }
   0x5   :  { %p5390_p2 = pnand %p5388_p1, %p5385_p0 }
   0x7   :  { %5393 = shalt.err (!%p5390_p2)  }
   0x8   :  { %s5650_s12 = smov [#allocation3]   ;;  %s5394_s17 = scalar_lea.hbm %s8984_s1, 16 }
   0x9   :  { %14 = dma.hbm_to_smem %s8979_s0, 16, %s5650_s12, [#allocation2] }
   0xa   :  { %p5395_p3 = scmp.ne.s32.totalorder %s8984_s1, %s5394_s17  ;;  %p5398_p4 = scmp.lt.u32.totalorder %s5394_s17, %s8984_s1 }
   0xc   :  { %p5400_p5 = pnand %p5398_p4, %p5395_p3 }
   0xe   :  { %5403 = shalt.err (!%p5400_p5)  }
   0xf   :  { %s5651_s22 = smov [#allocation4]   ;;  %s5404_s26 = scalar_lea.hbm %s8985_s2, 16 }
  0x10   :  { %16 = dma.hbm_to_smem %s8984_s1, 16, %s5651_s22, [#allocation2] }
  0x11   :  { %p5405_p6 = scmp.ne.s32.totalorder %s8985_s2, %s5404_s26  ;;  %p5408_p7 = scmp.lt.u32.totalorder %s5404_s26, %s8985_s2 }
  0x13   :  { %p5410_p8 = pnand %p5408_p7, %p5405_p6 }
  0x15   :  { %5413 = shalt.err (!%p5410_p8)  }
  0x16   :  { %s5652_s9 = smov [#allocation5]   ;;  %s5414_s13 = scalar_lea.hbm %s8986_s3, 16 }
  0x17   :  { %18 = dma.hbm_to_smem %s8985_s2, 16, %s5652_s9, [#allocation2] }
  0x18   :  { %p5415_p9 = scmp.ne.s32.totalorder %s8986_s3, %s5414_s13  ;;  %p5418_p10 = scmp.lt.u32.totalorder %s5414_s13, %s8986_s3 }
  0x1a   :  { %p5420_p11 = pnand %p5418_p10, %p5415_p9 }
  0x1c   :  { %5423 = shalt.err (!%p5420_p11)  }
  0x1d   :  { %s5653_s18 = smov [#allocation6]   ;;  %s5424_s22 = scalar_lea.hbm %s8987_s4, 16 }
  0x1e   :  { %20 = dma.hbm_to_smem %s8986_s3, 16, %s5653_s18, [#allocation2] }
  0x1f   :  { %p5425_p12 = scmp.ne.s32.totalorder %s8987_s4, %s5424_s22  ;;  %p5428_p13 = scmp.lt.u32.totalorder %s5424_s22, %s8987_s4 }
  0x21   :  { %p5430_p0 = pnand %p5428_p13, %p5425_p12 }
  0x23   :  { %5433 = shalt.err (!%p5430_p0)  }
  0x24   :  { %s5654_s26 = smov [#allocation7]  }
  0x25   :  { %22 = dma.hbm_to_smem %s8987_s4, 16, %s5654_s26, [#allocation2] }
  0x26   :  { %5592 = dma.done.wait [#allocation2], 80 }
  0x27   :  { %5593 = vsyncadd [#allocation2], 4294967216 }
  0x28   :  { %24 = sfence }
  0x29   :  { %25 = vsyncpa [#allocation9], 0 }
  0x2a   :  { %27 = vsyncpa [#allocation9 + $0x1], 0 }
  0x2b   :  { %28 = vsyncpa [#allocation12], 0 }
  0x2c   :  { %29 = vsyncpa [#allocation10], 0 }
  0x2d   :  { %31 = vsyncpa [#allocation10 + $0x1], 0  ;;  %s5769_s3 = smov 0   ;;  %s5771_s29 = smov 0  }
  0x2e   :  { %s5773_s30 = smov 0   ;;  %s5775_s9 = smov 0  }
  0x2f   :  { %s5777_s10 = smov 0   ;;  %s5779_s11 = smov 0  }
  0x30   :  { %s5781_s4 = smov 0   ;;  %s5783_s1 = smov 0  }
  0x31   :  { %s5785_s12 = smov 0   ;;  %s5787_s13 = smov 0  }
  0x32   :  { %s5789_s14 = smov 0  }
  0x33 LB: > { %9143 = sst [smem:[#allocation22_spill]] %s5608_s3  ;;  %s4628_s15 = sadd.s32 4294967295, %s5648_s14   ;;  %s5648_s14 = sphi %s5789_s14, %s37_s14   ;;  %s5644_s13 = sphi %s5787_s13, %s9798_s13   ;;  %s5640_s12 = sphi %s5785_s12, %s9789_s12   ;;  %s5636_s1 = sphi %s5783_s1, %s9797_s1   ;;  %s5632_s4 = sphi %s5781_s4, %s9788_s4   ;;  %s5628_s11 = sphi %s5779_s11, %s9796_s11   ;;  %s5624_s10 = sphi %s5777_s10, %s9795_s10   ;;  %s5620_s9 = sphi %s5775_s9, %s9794_s9   ;;  %s5616_s30 = sphi %s5773_s30, %s9793_s30   ;;  %s5612_s29 = sphi %s5771_s29, %s9792_s29   ;;  %s5608_s3 = sphi %s5769_s3, %s9791_s3  }
  0x34   : > { %9144 = sst [smem:[#allocation23_spill]] %s5640_s12  ;;  %s4629_s16 = sadd.s32 4294967294, %s5648_s14  }
  0x35   : > { %p73_p1 = scmp.ne.s32.totalorder %s5624_s10, %s5620_s9  ;;  %p5825_p2 = scmp.eq.s32.totalorder %s4628_s15, 0 }
  0x36   : > { %p142_p3 = scmp.ne.s32.totalorder %s5616_s30, %s5612_s29  ;;  %p143_p5 = scmp.eq.s32.totalorder %s4628_s15, 9 }
  0x37   : > { %s9145_s17 = scalar_select %p5825_p2, 1, 0 }
  0x38   : > { %p5833_p4 = por %p5825_p2, %p73_p1  ;;  %p148_p6 = scmp.ne.s32.totalorder %s5612_s29, %s5608_s3 }
  0x39   : > { %p149_p7 = scmp.eq.s32.totalorder %s4629_s16, 9  ;;  %p5839_p8 = por %p143_p5, %p142_p3 }
  0x3a   : > { %s9146_s18 = scalar_select %p5833_p4, 1, 0 }
  0x3b   : > { %s9147_s19 = scalar_select %p5839_p8, 1, 0 }
  0x3c   : > { %p4630_p9 = scmp.ge.s32.totalorder %s5648_s14, 1  ;;  %p5844_p10 = por %p149_p7, %p148_p6 }
  0x3d   : > { %p156_p11 = scmp.lt.s32.totalorder %s5648_s14, 11  ;;  %s5655_s21 = smov [#allocation11]  }
  0x3e   : > { %s9148_s20 = scalar_select %p5844_p10, 1, 0 }
  0x3f   : > { %p5849_p12 = pnand %p4630_p9, %p156_p11  ;;  %s168_s22 = sshll.u32 %s5655_s21, 4  ;;  %s169_s22 = int_to_ptr.vmem [resolvable:$true] %s168_s22 }
  0x40   : > { %9149 = sst [smem:[#allocation24_spill]] %s9148_s20  ;;  %s5656_s24 = smov [#allocation13]  }
  0x41   : > { %s9150_s2 = scalar_select %p5849_p12, 1, 0 }
  0x42   : > { %p5153_p13 = pneg %p5849_p12  ;;  %s182_s0 = sshll.u32 %s5656_s24, 4  ;;  %s5861_s0 = int_to_ptr.vmem [resolvable:$true] %s182_s0 }
  0x43   : > { %s9152_s6 = sld [smem:[#allocation152_spill]] }
  0x44   : > { %p5857_p0 = pnand %p5153_p13, %p5825_p2 }
  0x46   : > { %p5436_p3 = pneg %p5857_p0 }
  0x49   : > { %s5434_s27 = scalar_lea.hbm %s9152_s6, 9216 }
  0x4a   : > { %p5435_p1 = scmp.ne.s32.totalorder %s9152_s6, %s5434_s27  ;;  %p5441_p7 = scmp.lt.u32.totalorder %s5434_s27, %s9152_s6 }
  0x4c   : > { %p5437_p5 = pnand %p5436_p3, %p5435_p1 }
  0x4e   : > { %p5438_p6 = pneg %p5437_p5 }
  0x50   : > { %p5443_p9 = pnand %p5441_p7, %p5438_p6 }
  0x52   : > { %5446 = shalt.err (!%p5443_p9)
}
  0x53   : > { %s5447_s21 = scalar_lea.vmem %s169_s22, 9216  ;;  %p5455_p8 = scmp.lt.s32.totalorder %s169_s22, %s169_s22 }
  0x54   : > { %p5448_p11 = scmp.ne.s32.totalorder %s169_s22, %s5447_s21  ;;  %p5456_p2 = scmp.lt.s32.totalorder %s5447_s21, %s5447_s21 }
  0x56   : > { %p5450_p13 = pnand %p5448_p11, %p5436_p3  ;;  %p5457_p4 = por %p5456_p2, %p5455_p8 }
  0x58   : > { %p5451_p10 = pneg %p5450_p13 }
  0x5a   : > { %p5458_p12 = pnand %p5457_p4, %p5451_p10 }
  0x5c   : > { %5461 = shalt.err (!%p5458_p12)
}
  0x5d   : > { %s8995_s24 = smov 64   ;;  %s8996_s25 = smov 4  }
  0x5e   : > { %5156 = dma.hbm_to_vmem [thread:$0]  (!%p5857_p0), %s9152_s6, 9216, %s169_s22, [#allocation12], %s8995_s24, %s8995_s24, %s8996_s25  }
  0x5f   : > { %s9153_s7 = sld [smem:[#allocation153_spill]] }
  0x65   : > { %s5462_s15 = scalar_lea.hbm %s9153_s7, 16 }
  0x66   : > { %p5463_p2 = scmp.ne.s32.totalorder %s9153_s7, %s5462_s15  ;;  %p5469_p10 = scmp.lt.u32.totalorder %s5462_s15, %s9153_s7 }
  0x68   : > { %p5465_p4 = pnand %p5463_p2, %p5436_p3 }
  0x6a   : > { %p5466_p8 = pneg %p5465_p4 }
  0x6c   : > { %p5471_p12 = pnand %p5469_p10, %p5466_p8 }
  0x6e   : > { %5474 = shalt.err (!%p5471_p12)
}
  0x6f   : > { %s5475_s22 = scalar_lea.vmem %s5861_s0, 16  ;;  %s5482_s26 = scalar_lea.vmem %s5861_s0, 32 }
  0x70   : > { %p5476_p1 = scmp.ne.s32.totalorder %s5861_s0, %s5475_s22  ;;  %p5483_p7 = scmp.lt.s32.totalorder %s5861_s0, %s5861_s0 }
  0x71   : > { %p5484_p9 = scmp.lt.s32.totalorder %s5482_s26, %s5475_s22 }
  0x72   : > { %p5478_p5 = pnand %p5476_p1, %p5436_p3 }
  0x73   : > { %p5485_p11 = por %p5484_p9, %p5483_p7 }
  0x74   : > { %p5479_p6 = pneg %p5478_p5 }
  0x76   : > { %p5486_p13 = pnand %p5485_p11, %p5479_p6 }
  0x78   : > { %5489 = shalt.err (!%p5486_p13)
}
  0x79   : > { %5159 = dma.hbm_to_vmem [thread:$0]  (!%p5857_p0), %s9153_s7, 16, %s5861_s0, [#allocation12]  }
  0x7a   : > { %s46_s27 = sadd.s32 1, %s5640_s12  ;;  %s49_s28 = sadd.s32 1, %s5644_s13 }
  0x7b   : > { %p47_p3 = scmp.ge.s32.totalorder %s46_s27, 5  ;;  %s53_s23 = sld [smem:[#allocation3 + %s5640_s12]] }
  0x7c   : > { %p67_p2 = scmp.ne.s32.totalorder %s5628_s11, %s5624_s10  ;;  %s125_s15 = sld [smem:[#allocation4 + %s5640_s12]] }
  0x7d   : > { %s9800_s27 = smov (%p47_p3, %s46_s27), 0  ;;  %s9802_s28 = smov (!%p47_p3, %s49_s28), %s5644_s13 }
  0x7e   : > { %9154 = sst [smem:[#allocation25_spill]] %s9800_s27  ;;  %p51_p4 = scmp.ge.s32.totalorder %s9802_s28, 2 }
  0x7f   : > { %s54_s9 = sld [smem:[#allocation3 + %s9800_s27]]  ;;  %p68_p8 = scmp.eq.s32.totalorder %s5648_s14, 0 }
  0x80   : > { %s126_s16 = sld [smem:[#allocation4 + %s9800_s27]]  ;;  %s9804_s28 = smov (%p51_p4, %s9802_s28), 0 }
  0x81   : > { %9155 = sst [smem:[#allocation26_spill]] %s9804_s28  ;;  %s132_s0 = sadd.s32 1, %s5616_s30 }
  0x82   : > { %s55_s21 = ssub.s32 %s5644_s13, %s9804_s28  ;;  %s60_s22 = sadd.s32 1, %s5628_s11 }
  0x83   : > { %p5932_p0 = por %p68_p8, %p67_p2  ;;  %s193_s24 = sand.u32 1, %s5628_s11  }
  0x84   : > { %p5172_p12 = scmp.lt.s32.totalorder %s5648_s14, 10  ;;  %s5130_s28 = smul.u32 272, %s193_s24 }
  0x85   : > { %s56_s26 = ssub.s32 %s53_s23, %s54_s9  ;;  %s5963_s3 = scalar_lea.sflag [#allocation9], %s193_s24 }
  0x86   : > { %s57_s20 = sor.u32 %s56_s26, %s55_s21  ;;  %s128_s25 = ssub.s32 %s125_s15, %s126_s16 }
  0x87   : > { %p58_p10 = scmp.eq.s32.totalorder %s57_s20, 0  ;;  %s129_s6 = sor.u32 %s128_s25, %s55_s21 }
  0x88   : > { %p130_p1 = scmp.eq.s32.totalorder %s129_s6, 0  ;;  %p5951_p5 = pnand %p5172_p12, %p5932_p0 }
  0x89   : > { %s5939_s7 = scalar_select %p58_p10, %s5628_s11, %s60_s22  }
  0x8a   : > { %s5141_s23 = scalar_select %p5932_p0, [#allocation3], [#allocation15] }
  0x8b   : > { %9157 = sst [smem:[#allocation27_spill]] %s5939_s7  ;;  %s5132_s15 = smul.u32 340, %s5644_s13 }
  0x8c   : > { %s5944_s9 = scalar_select %p130_p1, %s5616_s30, %s132_s0  }
  0x8d   : > { %s5142_s27 = scalar_select %p5932_p0, %s5640_s12, 0 }
  0x8e   : > { %s9806_s23 = smov (!%p5172_p12, %s5141_s23), [#allocation17]  ;;  %s197_s16 = scalar_lea.vmem [#allocation8], %s5130_s28 }
  0x8f   : > { %s9808_s27 = smov (!%p5172_p12, %s5142_s27), 0  ;;  %s207_s6 = sshll.u32 %s197_s16, 4  ;;  %s5956_s6 = int_to_ptr.vmem [resolvable:$true] %s207_s6 }
  0x90   : > { %s198_s25 = sld [smem:[%s9806_s23 + %s9808_s27]]  ;;  %p5492_p7 = pneg %p5951_p5 }
  0x91   : > { %s5495_s12 = scalar_lea.hbm %s8980_s5, 43520 }
  0x96   : > { %s5131_s21 = smul.u32 68, %s198_s25 }
  0x98   : > { %s204_s22 = sadd.s32 %s5132_s15, %s5131_s21 }
  0x99   : > { %s4634_s0 = sshll.u32 %s204_s22, 6 }
  0x9a   : > { %s5961_s7 = scalar_lea.hbm %s8980_s5, %s4634_s0 }
  0x9b   : > { %s5490_s27 = scalar_lea.hbm %s5961_s7, 4352  ;;  %p5496_p13 = scmp.lt.u32.totalorder %s5961_s7, %s8980_s5 }
  0x9c   : > { %p5491_p6 = scmp.ne.s32.totalorder %s5961_s7, %s5490_s27  ;;  %p5497_p3 = scmp.lt.u32.totalorder %s5495_s12, %s5490_s27 }
  0x9d   : > { %p5499_p4 = scmp.lt.u32.totalorder %s5490_s27, %s5961_s7 }
  0x9e   : > { %p5493_p9 = pnand %p5492_p7, %p5491_p6  ;;  %p5498_p2 = por %p5497_p3, %p5496_p13 }
  0xa0   : > { %p5494_p11 = pneg %p5493_p9  ;;  %p5500_p8 = por %p5499_p4, %p5498_p2 }
  0xa2   : > { %p5501_p0 = pnand %p5500_p8, %p5494_p11 }
  0xa4   : > { %5504 = shalt.err (!%p5501_p0)
}
  0xa5   : > { %s5505_s24 = scalar_lea.vmem %s5956_s6, 4352  ;;  %s5659_s16 = smov [#allocation8]  }
  0xa6   : > { %p5506_p10 = scmp.ne.s32.totalorder %s5956_s6, %s5505_s24  ;;  %s5510_s21 = sshll.u32 %s5659_s16, 4  ;;  %s5511_s21 = int_to_ptr.vmem [resolvable:$false] %s5510_s21 }
  0xa7   : > { %s5512_s22 = scalar_lea.vmem %s5511_s21, 8704  ;;  %p5513_p6 = scmp.lt.s32.totalorder %s5956_s6, %s5511_s21 }
  0xa8   : > { %p5508_p12 = pnand %p5506_p10, %p5492_p7  ;;  %p5514_p9 = scmp.lt.s32.totalorder %s5512_s22, %s5505_s24 }
  0xaa   : > { %p5509_p1 = pneg %p5508_p12  ;;  %p5515_p13 = por %p5514_p9, %p5513_p6 }
  0xac   : > { %p5516_p3 = pnand %p5515_p13, %p5509_p1 }
  0xae   : > { %5519 = shalt.err (!%p5516_p3)
}
  0xaf   : > { %s9159_s0 = smov 4   ;;  %s9160_s20 = smov 64  }
  0xb0   : > { %5165 = dma.hbm_to_vmem [thread:$0]  (!%p5951_p5), %s5961_s7, 4352, %s5956_s6, %s5963_s3, %s9160_s20, %s9160_s20, %s9159_s0  }
  0xb1   : > { %p9161_p7 = scmp.ne.s32.totalorder %s9150_s2, 0 }
  0xb3   : > { %219 = sbr.rel (%p9161_p7) target bundleno = 1248 (0x4e0), region = 32 }
  0xba   : > { %s221_s27 = sand.u32 1, %s5624_s10   ;;  %p9162_p11 = scmp.ne.s32.totalorder %s9146_s18, 0 }
  0xbb   : > { %s5133_s28 = smul.u32 272, %s221_s27  ;;  %s222_s23 = scalar_lea.sflag [#allocation9], %s221_s27 }
  0xbd   : > { %s5997_s12 = scalar_lea.vmem [#allocation8], %s5133_s28 }
  0xbe   : > { %5595 = dma.done.wait (%p9162_p11), %s222_s23, 4352  }
  0xbf   : > { %5597 = vsyncadd (%p9162_p11), %s222_s23, 4294962944  ;;  %p9163_p2 = scmp.ne.s32.totalorder %s9145_s17, 0 }
  0xc1   : > { %5599 = dma.done.wait (%p9163_p2), [#allocation12], 9232  }
  0xc2   : > { %5601 = vsyncadd (%p9163_p2), [#allocation12], 4294958064  ;;  %s253_s7 = sand.u32 1, %s5612_s29   ;;  %s6009_s2 = sld [smem:[#allocation5 + %s5632_s4]]  ;;  %v9000_v0 = vmov 0   ;;  %v5276_v1 = vld [vmem:[#allocation11 + $0xc0] sm:$0xff]  }
  0xc3   : > { %s6013_s26 = sshll.u32 %s253_s7, 9  ;;  %1763 = vmatprep.subr.bf16.mxu0 %v9000_v0  ;;  %v6016_v2 = vld [vmem:[#allocation11 + $0x140] sm:$0xff]   ;;  %v5278_v3 = vld [vmem:[#allocation11 + $0xc8] sm:$0xff]   ;;  %v6024_v5 = vld [vmem:[#allocation11 + $0x150] sm:$0xff]   ;;  %vm803_vm0 = vcmask 1040384   ;;  %v9164_v16 = vmov 0 }
  0xc4   : > { %1764 = vmatpush1.bf16.msra.mxu0 %v5276_v1  ;;  %5114 = vmatprep.subr.bf16.mxu1 %v6016_v2  ;;  %v6020_v4 = vld [vmem:[#allocation11 + $0x148] sm:$0xff]   ;;  %v5280_v6 = vld [vmem:[#allocation11 + $0xd0] sm:$0xff]   ;;  %v6029_v7 = vld [vmem:[#allocation11 + $0x158] sm:$0xff]   ;;  %vm804_vm1 = vsmask.f32 256  ;;  %vm1385_vm3 = vcmask 1046528  }
  0xc5   : > { %1765 = vmatprep.subr.bf16.mxu0 %v9000_v0  ;;  %5122 = vmatpush3.bf16.msra.mxu1 %v6016_v2  ;;  %v5282_v8 = vld [vmem:[#allocation11 + $0xd8] sm:$0xff]   ;;  %v6034_v9 = vld [vmem:[#allocation11 + $0x160] sm:$0xff]   ;;  %v5286_v11 = vld [vmem:[#allocation11 + $0xe8] sm:$0xff]   ;;  %vm874_vm4 = vsmask.f32 7424  ;;  %s8254_s17 = scalar_lea.vmem [#allocation14], %s6013_s26 }
  0xc6   : > { %5115 = vmatprep.subr.bf16.mxu1 %v6020_v4  ;;  %v5284_v10 = vld [vmem:[#allocation11 + $0xe0] sm:$0xff]   ;;  %v5292_v12 = vld [vmem:[%s5997_s12 + $0x68] sm:$0xff]   ;;  %vm6042_vm2 = vmand %vm803_vm0, %vm804_vm1 }
  0xc7   : > { %v6040_v13 = vld [vmem:[#allocation11 + $0x168] sm:$0xff]   ;;  %v589_v14 = vshrl.u32 %v5292_v12, 16  ;;  %v592_v15 = vshll.u32 %v5292_v12, 16  ;;  %v9165_v16 = vsel %vm6042_vm2, 4294967295, %v9164_v16  ;;  %v5294_v17 = vld [vmem:[%s5997_s12 + $0x70] sm:$0xff]   ;;  %v6060_v28 = vld [vmem:[#allocation11 + $0x178] sm:$0xff]  }
  0xc8   : > { %1766 = vmatpush1.bf16.msra.mxu0 %v5278_v3  ;;  %9166 = vst [vmem:[#allocation28_spill] sm:$0xff] %v9165_v16  ;;  %v5288_v19 = vld [vmem:[#allocation11 + $0xf0] sm:$0xff]   ;;  %v596_v21 = vshrl.u32 %v5294_v17, 16  ;;  %v599_v22 = vshll.u32 %v5294_v17, 16  ;;  %v5298_v25 = vld [vmem:[%s5997_s12 + $0x78] sm:$0xff]   ;;  %v5303_v45 = vld [vmem:[%s5997_s12 + $0x88] sm:$0xff]  }
  0xc9   : > { %1767 = vmatprep.subr.bf16.mxu0 %v9000_v0  ;;  %5123 = vmatpush3.bf16.msra.mxu1 %v6020_v4  ;;  %v591_v18 = vrot.slane %v589_v14, 7  ;;  %v6050_v20 = vld [vmem:[#allocation11 + $0x170] sm:$0xff]   ;;  %v603_v30 = vshrl.u32 %v5298_v25, 16  ;;  %v606_v31 = vshll.u32 %v5298_v25, 16  ;;  %v5290_v35 = vld [vmem:[#allocation11 + $0xf8] sm:$0xff]   ;;  %v5293_v48 = vld [vmem:[#allocation11 + $0x100] sm:$0xff]  }
  0xca   : > { %5116 = vmatprep.subr.bf16.mxu1 %v6024_v5  ;;  %v598_v27 = vrot.slane %v596_v21, 7  ;;  %v5300_v37 = vld [vmem:[%s5997_s12 + $0x80] sm:$0xff]   ;;  %v617_v51 = vshrl.u32 %v5303_v45, 16  ;;  %v620_v53 = vshll.u32 %v5303_v45, 16  ;;  %v5305_v59 = vld [vmem:[%s5997_s12 + $0x90] sm:$0xff]   ;;  %v5296_v60 = vld [vmem:[#allocation11 + $0x108] sm:$0xff]  }
  0xcb   : > { %v594_v23 = vor.u32 %v592_v15, %v591_v18  ;;  %v6054_v24 = vsel %vm6042_vm2, %v591_v18, 0  ;;  %v605_v36 = vrot.slane %v603_v30, 7  ;;  %v610_v44 = vshrl.u32 %v5300_v37, 16  ;;  %v5295_v55 = vld [vmem:[#allocation11] sm:$0xff]   ;;  %v5297_v63 = vld [vmem:[#allocation11 + $0x8] sm:$0xff]   ;;  %v5299_v15 = vld [vmem:[#allocation11 + $0x110] sm:$0xff]  }
  0xcc   : > { %1768 = vmatpush1.bf16.msra.mxu0 %v5280_v6  ;;  %v1426_v26 = vrot.slane %v6054_v24, 1  ;;  %v601_v33 = vor.u32 %v599_v22, %v598_v27  ;;  %v6070_v34 = vsel %vm6042_vm2, %v598_v27, 0  ;;  %v613_v47 = vshll.u32 %v5300_v37, 16  ;;  %v5309_v14 = vld [vmem:[%s5997_s12 + $0x98] sm:$0xff]   ;;  %v5311_v30 = vld [vmem:[%s5997_s12 + $0xa0] sm:$0xff]   ;;  %p4746_p5 = scmp.ne.s32.totalorder %s6009_s2, 1 }
  0xcd   : > { %1769 = vmatprep.subr.bf16.mxu0 %v9000_v0  ;;  %5124 = vmatpush3.bf16.msra.mxu1 %v6024_v5  ;;  %v6064_v29 = vsel %vm6042_vm2, 0, %v594_v23  ;;  %v1429_v40 = vrot.slane %v6070_v34, 1  ;;  %v608_v42 = vor.u32 %v606_v31, %v605_v36  ;;  %v6087_v43 = vsel %vm6042_vm2, %v605_v36, 0  ;;  %v5302_v36 = vld [vmem:[#allocation11 + $0x118] sm:$0xff]  }
  0xce   : > { %5117 = vmatprep.subr.bf16.mxu1 %v6029_v7  ;;  %9167 = vst [vmem:[#allocation29_spill] sm:$0xff] %v6064_v29  ;;  %v1425_v32 = vrot.slane %v6064_v29, 1  ;;  %v6079_v39 = vsel %vm6042_vm2, 0, %v601_v33  ;;  %v1432_v46 = vrot.slane %v6087_v43, 1  ;;  %v612_v50 = vrot.slane %v610_v44, 7  ;;  %v5306_v44 = vld [vmem:[#allocation11 + $0x18] sm:$0xff]  }
  0xcf   : > { %9169 = vst [vmem:[#allocation31_spill] sm:$0xff] %v6079_v39  ;;  %v1428_v41 = vrot.slane %v6079_v39, 1  ;;  %v6094_v49 = vsel %vm6042_vm2, 0, %v608_v42  ;;  %v619_v58 = vrot.slane %v617_v51, 7  ;;  %v627_v12 = vshll.u32 %v5305_v59, 16 }
  0xd0   : > { %1770 = vmatpush1.bf16.msra.mxu0 %v5282_v8  ;;  %v6075_v38 = vsel %vm1385_vm3, %v1425_v32, %v1426_v26  ;;  %9170 = vst [vmem:[#allocation32_spill] sm:$0xff] %v6094_v49  ;;  %v1431_v52 = vrot.slane %v6094_v49, 1  ;;  %v615_v56 = vor.u32 %v613_v47, %v612_v50  ;;  %v6104_v57 = vsel %vm6042_vm2, %v612_v50, 0  ;;  %v5301_v26 = vld [vmem:[#allocation11 + $0x10] sm:$0xff]   ;;  %v5304_v50 = vld [vmem:[#allocation11 + $0x120] sm:$0xff]  }
  0xd1   : > { %1771 = vmatprep.subr.bf16.mxu0 %v9000_v0  ;;  %5125 = vmatpush3.bf16.msra.mxu1 %v6029_v7  ;;  %9168 = vst [vmem:[#allocation30_spill] sm:$0xff] %v6075_v38  ;;  %v6100_v54 = vsel %vm1385_vm3, %v1428_v41, %v1429_v40  ;;  %v1435_v62 = vrot.slane %v6104_v57, 1  ;;  %v622_v3 = vor.u32 %v620_v53, %v619_v58  ;;  %v6118_v6 = vsel %vm6042_vm2, %v619_v58, 0  ;;  %v5308_v58 = vld [vmem:[#allocation11 + $0x20] sm:$0xff]  }
  0xd2   : > { %5118 = vmatprep.subr.bf16.mxu1 %v6034_v9  ;;  %4914 = vmatprep.mubr.bf16.mxu1 %v6075_v38  ;;  %9171 = vst [vmem:[#allocation33_spill] sm:$0xff] %v6100_v54  ;;  %v6109_v61 = vsel %vm1385_vm3, %v1431_v52, %v1432_v46  ;;  %v6114_v1 = vsel %vm6042_vm2, 0, %v615_v56  ;;  %v624_v8 = vshrl.u32 %v5305_v59, 16  ;;  %v631_v21 = vshrl.u32 %v5309_v14, 16  ;;  %v5314_v52 = vld [vmem:[%s5997_s12 + $0x8] sm:$0xff]  }
  0xd3   : > { %9172 = vst [vmem:[#allocation34_spill] sm:$0xff] %v6109_v61  ;;  %9173 = vst [vmem:[#allocation35_spill] sm:$0xff] %v6114_v1  ;;  %v6128_v17 = vsel %vm6042_vm2, 0, %v622_v3  ;;  %v634_v25 = vshll.u32 %v5309_v14, 16  ;;  %v638_v42 = vshrl.u32 %v5311_v30, 16  ;;  %v641_v46 = vshll.u32 %v5311_v30, 16 }
  0xd4   : > { %1772 = vmatpush1.bf16.msra.mxu0 %v5284_v10  ;;  %v1434_v10 = vrot.slane %v6114_v1, 1  ;;  %9174 = vst [vmem:[#allocation36_spill] sm:$0xff] %v6128_v17  ;;  %v626_v18 = vrot.slane %v624_v8, 7  ;;  %v633_v27 = vrot.slane %v631_v21, 7  ;;  %v5315_v56 = vld [vmem:[%s5997_s12 + $0xa8] sm:$0xff]   ;;  %v1039_v16 = vshll.u32 %v6054_v24, 16 }
  0xd5   : > { %1773 = vmatprep.subr.bf16.mxu0 %v9000_v0  ;;  %5126 = vmatpush3.bf16.msra.mxu1 %v6034_v9  ;;  %v645_v3 = vshrl.u32 %v5315_v56, 16  ;;  %v648_v8 = vshll.u32 %v5315_v56, 16 }
  0xd6   : > { %5119 = vmatprep.subr.bf16.mxu1 %v6040_v13  ;;  %v629_v22 = vor.u32 %v627_v12, %v626_v18  ;;  %v6134_v23 = vsel %vm6042_vm2, %v626_v18, 0  ;;  %v6139_v31 = vsel %vm1385_vm3, %v1434_v10, %v1435_v62  ;;  %v636_v40 = vor.u32 %v634_v25, %v633_v27  ;;  %v5317_v10 = vld [vmem:[%s5997_s12 + $0xb0] sm:$0xff]  }
  0xd7   : > { %9175 = vst [vmem:[#allocation37_spill] sm:$0xff] %v6139_v31  ;;  %v6153_v41 = vsel %vm6042_vm2, %v633_v27, 0  ;;  %v508_v62 = vshll.u32 %v5314_v52, 16  ;;  %v652_v21 = vshrl.u32 %v5317_v10, 16  ;;  %v5319_v27 = vld [vmem:[%s5997_s12 + $0x10] sm:$0xff]  }
  0xd8   : > { %1774 = vmatpush1.bf16.msra.mxu0 %v5286_v11  ;;  %v1438_v11 = vrot.slane %v6118_v6, 1  ;;  %v6146_v33 = vsel %vm6042_vm2, 0, %v629_v22  ;;  %v1444_v45 = vrot.slane %v6153_v41, 1  ;;  %v6160_v47 = vsel %vm6042_vm2, 0, %v636_v40  ;;  %v5320_v40 = vld [vmem:[%s5997_s12 + $0xb8] sm:$0xff]  }
  0xd9   : > { %1775 = vmatprep.subr.bf16.mxu0 %v9000_v0  ;;  %5127 = vmatpush3.bf16.msra.mxu1 %v6040_v13  ;;  %9177 = vst [vmem:[#allocation39_spill] sm:$0xff] %v6146_v33  ;;  %v1440_v37 = vrot.slane %v6146_v33, 1  ;;  %9178 = vst [vmem:[#allocation40_spill] sm:$0xff] %v6160_v47  ;;  %v1443_v51 = vrot.slane %v6160_v47, 1  ;;  %v655_v22 = vshll.u32 %v5317_v10, 16 }
  0xda   : > { %5120 = vmatprep.subr.bf16.mxu1 %v6050_v20 }
  0xdb   : > { %v6184_v18 = vsel %vm1385_vm3, %v1443_v51, %v1444_v45  ;;  %v5312_v45 = vld [vmem:[#allocation11 + $0x28] sm:$0xff]  }
  0xdc   : > { %1776 = vmatpush1.bf16.msra.mxu0 %v5288_v19  ;;  %v1437_v19 = vrot.slane %v6128_v17, 1  ;;  %9181 = vst [vmem:[#allocation43_spill] sm:$0xff] %v6184_v18 }
  0xdd   : > { %1777 = vmatprep.subr.bf16.mxu0 %v9000_v0  ;;  %5128 = vmatpush3.bf16.msra.mxu1 %v6050_v20 }
  0xde   : > { %5121 = vmatprep.subr.bf16.mxu1 %v6060_v28  ;;  %v6142_v32 = vsel %vm1385_vm3, %v1437_v19, %v1438_v11  ;;  %v647_v19 = vrot.slane %v645_v3, 7  ;;  %v5321_v3 = vld [vmem:[%s5997_s12 + $0xc0] sm:$0xff]  }
  0xdf   : > { %9176 = vst [vmem:[#allocation38_spill] sm:$0xff] %v6142_v32 }
  0xe0   : > { %1778 = vmatpush1.bf16.msra.mxu0 %v5290_v35  ;;  %v1441_v35 = vrot.slane %v6134_v23, 1 }
  0xe1   : > { %1779 = vmatprep.subr.bf16.mxu0 %v9000_v0  ;;  %5129 = vmatpush3.bf16.msra.mxu1 %v6060_v28 }
  0xe2   : > { %2485 = vmatprep.subr.bf16.mxu1 %v9000_v0  ;;  %v6179_v11 = vsel %vm1385_vm3, %v1440_v37, %v1441_v35  ;;  %v650_v35 = vor.u32 %v648_v8, %v647_v19  ;;  %v654_v37 = vrot.slane %v652_v21, 7 }
  0xe3   : > { %9180 = vst [vmem:[#allocation42_spill] sm:$0xff] %v6179_v11 }
  0xe4   : > { %1780 = vmatpush1.bf16.msra.mxu0 %v5293_v48  ;;  %4915 = vmatmul.mubr.bf16.vlgmr.msra.gmra.mrb[0].mxu1 %v6100_v54  ;;  %v640_v48 = vrot.slane %v638_v42, 7  ;;  %v5310_v42 = vld [vmem:[#allocation11 + $0x130] sm:$0xff]  }
  0xe5   : > { %1781 = vmatprep.subr.bf16.mxu0 %v9000_v0  ;;  %2486 = vmatpush1.bf16.msra.mxu1 %v5295_v55 }
  0xe6   : > { %4918 = vmatprep.mubr.bf16.mxu1 %v6109_v61  ;;  %2487 = vmatprep.subr.bf16.mxu1 %v9000_v0  ;;  %v643_v53 = vor.u32 %v641_v46, %v640_v48  ;;  %v6168_v55 = vsel %vm6042_vm2, %v640_v48, 0  ;;  %v512_v48 = vshrl.u32 %v5319_v27, 16 }
  0xe7   : > { %v1447_v59 = vrot.slane %v6168_v55, 1 }
  0xe8   : > { %1782 = vmatpush1.bf16.msra.mxu0 %v5296_v60  ;;  %v505_v60 = vshrl.u32 %v5314_v52, 16 }
  0xe9   : > { %1783 = vmatprep.subr.bf16.mxu0 %v9000_v0  ;;  %2488 = vmatpush1.bf16.msra.mxu1 %v5297_v63  ;;  %v6175_v63 = vsel %vm6042_vm2, 0, %v643_v53  ;;  %v6212_v53 = vsel %vm6042_vm2, 0, %v650_v35  ;;  %v5316_v35 = vld [vmem:[#allocation11 + $0x30] sm:$0xff]  }
  0xea   : > { %2489 = vmatprep.subr.bf16.mxu1 %v9000_v0  ;;  %9179 = vst [vmem:[#allocation41_spill] sm:$0xff] %v6175_v63  ;;  %v1446_v12 = vrot.slane %v6175_v63, 1  ;;  %v507_v14 = vrot.slane %v505_v60, 7  ;;  %9184 = vst [vmem:[#allocation46_spill] sm:$0xff] %v6212_v53  ;;  %v6218_v60 = vsel %vm6042_vm2, %v654_v37, 0 }
  0xec   : > { %1784 = vmatpush1.bf16.msra.mxu0 %v5299_v15  ;;  %4919 = vmatmul.mubr.bf16.gmra.mrb[4].mxu1 %v6139_v31  ;;  %v5307_v15 = vld [vmem:[#allocation11 + $0x128] sm:$0xff]   ;;  %v510_v25 = vor.u32 %v508_v62, %v507_v14  ;;  %v514_v62 = vrot.slane %v512_v48, 7  ;;  %v5328_v31 = vld [vmem:[%s5997_s12 + $0x20] sm:$0xff]  }
  0xed   : > { %1785 = vmatprep.subr.bf16.mxu0 %v9000_v0  ;;  %2490 = vmatpush1.bf16.msra.mxu1 %v5301_v26  ;;  %v6188_v26 = vsel %vm6042_vm2, %v507_v14, 0  ;;  %v659_v14 = vshrl.u32 %v5320_v40, 16  ;;  %v5323_v48 = vld [vmem:[%s5997_s12 + $0x18] sm:$0xff]   ;;  %v529_v38 = vshll.u32 %v5328_v31, 16 }
  0xee   : > { %4922 = vmatprep.mubr.bf16.mxu1 %v6142_v32  ;;  %2491 = vmatprep.subr.bf16.mxu1 %v9000_v0  ;;  %9182 = vst [vmem:[#allocation44_spill] sm:$0xff] %v6188_v26  ;;  %v895_v30 = vshll.u32 %v6188_v26, 16  ;;  %v6205_v46 = vsel %vm6042_vm2, 0, %v510_v25  ;;  %v662_v25 = vshll.u32 %v5320_v40, 16  ;;  %v666_v40 = vshrl.u32 %v5321_v3, 16 }
  0xef   : > { %v888_v51 = vshrl.u32 %v6205_v46, 16  ;;  %v890_v52 = vshll.u32 %v6205_v46, 16 }
  0xf0   : > { %1786 = vmatpush1.bf16.msra.mxu0 %v5302_v36  ;;  %v6196_v36 = vsel %vm6042_vm2, %v647_v19, 0  ;;  %v897_v10 = vrot.slane %v895_v30, 1  ;;  %v5313_v19 = vld [vmem:[#allocation11 + $0x138] sm:$0xff]  }
  0xf1   : > { %1787 = vmatprep.subr.bf16.mxu0 %v9000_v0  ;;  %2492 = vmatpush1.bf16.msra.mxu1 %v5306_v44  ;;  %v6201_v44 = vsel %vm1385_vm3, %v1446_v12, %v1447_v59  ;;  %v1450_v56 = vrot.slane %v6196_v36, 1  ;;  %v657_v59 = vor.u32 %v655_v22, %v654_v37  ;;  %v892_v8 = vrot.slane %v890_v52, 1 }
  0xf2   : > { %2493 = vmatprep.subr.bf16.mxu1 %v9000_v0  ;;  %9183 = vst [vmem:[#allocation45_spill] sm:$0xff] %v6201_v44  ;;  %v1453_v12 = vrot.slane %v6218_v60, 1  ;;  %v6229_v22 = vsel %vm6042_vm2, %v514_v62, 0  ;;  %v661_v52 = vrot.slane %v659_v14, 7 }
  0xf3   : > { %9186 = vst [vmem:[#allocation48_spill] sm:$0xff] %v6229_v22 }
  0xf4   : > { %1788 = vmatpush1.bf16.msra.mxu0 %v5304_v50  ;;  %4923 = vmatmul.mubr.bf16.gmra.mrb[8].mxu1 %v6179_v11  ;;  %v515_v50 = vshll.u32 %v5319_v27, 16  ;;  %v893_v27 = vor.u32 %v892_v8, %v888_v51  ;;  %v669_v51 = vshll.u32 %v5321_v3, 16  ;;  %v664_v8 = vor.u32 %v662_v25, %v661_v52 }
  0xf5   : > { %1789 = vmatprep.subr.bf16.mxu0 %v9000_v0  ;;  %2494 = vmatpush1.bf16.msra.mxu1 %v5308_v58  ;;  %v1449_v58 = vrot.slane %v6212_v53, 1  ;;  %v6256_v14 = vsel %vm6042_vm2, %v661_v52, 0 }
  0xf6   : > { %4926 = vmatprep.mubr.bf16.mxu1 %v6184_v18  ;;  %2495 = vmatprep.subr.bf16.mxu1 %v9000_v0  ;;  %v517_v21 = vor.u32 %v515_v50, %v514_v62 }
  0xf7   : > { %v6233_v30 = vsel %vm1385_vm3, %v1449_v58, %v1450_v56  ;;  %v6245_v56 = vsel %vm874_vm4, %v893_v27, %v897_v10  ;;  %v668_v10 = vrot.slane %v666_v40, 7  ;;  %v1456_v27 = vrot.slane %v6256_v14, 1 }
  0xf8   : > { %1790 = vmatpush1.bf16.msra.mxu0 %v5307_v15  ;;  %v6225_v15 = vsel %vm6042_vm2, 0, %v657_v59  ;;  %9187 = vst [vmem:[#allocation49_spill] sm:$0xff] %v6233_v30  ;;  %v6240_v50 = vsel %vm6042_vm2, 0, %v517_v21  ;;  %v5318_v59 = vld [vmem:[#allocation11 + $0x38] sm:$0xff]   ;;  %1795 = vmatprep.mubr.bf16.mxu0 %v6245_v56 }
  0xf9   : > { %1791 = vmatprep.subr.bf16.mxu0 %v9000_v0  ;;  %2496 = vmatpush1.bf16.msra.mxu1 %v5312_v45  ;;  %9185 = vst [vmem:[#allocation47_spill] sm:$0xff] %v6225_v15  ;;  %v1452_v37 = vrot.slane %v6225_v15, 1  ;;  %v907_v45 = vshll.u32 %v6229_v22, 16  ;;  %v902_v62 = vshll.u32 %v6240_v50, 16  ;;  %v5325_v21 = vld [vmem:[%s5997_s12 + $0xc8] sm:$0xff]   ;;  %v671_v25 = vor.u32 %v669_v51, %v668_v10 }
  0xfa   : > { %2497 = vmatprep.subr.bf16.mxu1 %v9000_v0  ;;  %v6267_v52 = vsel %vm6042_vm2, %v668_v10, 0  ;;  %v673_v40 = vshrl.u32 %v5325_v21, 16  ;;  %v676_v10 = vshll.u32 %v5325_v21, 16 }
  0xfb   : > { %v6248_v58 = vsel %vm1385_vm3, %v1452_v37, %v1453_v12  ;;  %v909_v3 = vrot.slane %v907_v45, 1  ;;  %v904_v12 = vrot.slane %v902_v62, 1  ;;  %v519_v37 = vshrl.u32 %v5323_v48, 16  ;;  %v5322_v62 = vld [vmem:[#allocation11 + $0x40] sm:$0xff]  }
  0xfc   : > { %1792 = vmatpush1.bf16.msra.mxu0 %v5310_v42  ;;  %4927 = vmatmul.mubr.bf16.gmra.mrb[12].mxu1 %v6201_v44  ;;  %9188 = vst [vmem:[#allocation50_spill] sm:$0xff] %v6248_v58  ;;  %v900_v42 = vshrl.u32 %v6240_v50, 16  ;;  %v9189_v44 = vmov 0   ;;  %v6263_v45 = vsel %vm6042_vm2, 0, %v664_v8  ;;  %v6275_v8 = vsel %vm6042_vm2, 0, %v671_v25  ;;  %v5329_v25 = vld [vmem:[%s5997_s12 + $0xd8] sm:$0xff]  }
  0xfd   : > { %1793 = vmatprep.subr.bf16.mxu0 %v9000_v0  ;;  %4930 = vmatprep.mubr.bf16.mxu1 %v6233_v30  ;;  %v522_v0 = vshll.u32 %v5323_v48, 16  ;;  %9190 = vst [vmem:[#allocation51_spill] sm:$0xff] %v6263_v45  ;;  %v5326_v30 = vld [vmem:[%s5997_s12 + $0xd0] sm:$0xff]   ;;  %v1455_v48 = vrot.slane %v6263_v45, 1  ;;  %v521_v18 = vrot.slane %v519_v37, 7  ;;  %9191 = vst [vmem:[#allocation52_spill] sm:$0xff] %v6275_v8 }
  0xfe   : > { %2498 = vmatpush1.bf16.msra.mxu1 %v5316_v35  ;;  %v905_v35 = vor.u32 %v904_v12, %v900_v42  ;;  %v675_v51 = vrot.slane %v673_v40, 7  ;;  %v680_v11 = vshrl.u32 %v5326_v30, 16  ;;  %v1458_v12 = vrot.slane %v6275_v8, 1  ;;  %v5324_v40 = vld [vmem:[#allocation11 + $0x48] sm:$0xff]  }
  0xff   : > { %2499 = vmatprep.subr.bf16.mxu1 %v9189_v44  ;;  %v6282_v42 = vsel %vm1385_vm3, %v1455_v48, %v1456_v27  ;;  %v524_v37 = vor.u32 %v522_v0, %v521_v18  ;;  %v6290_v21 = vsel %vm6042_vm2, %v521_v18, 0  ;;  %v5330_v48 = vld [vmem:[%s5997_s12 + $0xe0] sm:$0xff]   ;;  %v690_v22 = vshll.u32 %v5329_v25, 16 }
 0x100   : > { %1794 = vmatpush1.bf16.msra.mxu0 %v5313_v19  ;;  %v1459_v19 = vrot.slane %v6267_v52, 1  ;;  %v6279_v32 = vsel %vm874_vm4, %v905_v35, %v909_v3  ;;  %9192 = vst [vmem:[#allocation53_spill] sm:$0xff] %v6282_v42  ;;  %9193 = vst [vmem:[#allocation54_spill] sm:$0xff] %v6290_v21  ;;  %v6294_v3 = vsel %vm6042_vm2, %v675_v51, 0  ;;  %v682_v27 = vrot.slane %v680_v11, 7 }
 0x101   : > { %4874 = vmatprep.subr.bf16.mxu0 %v6016_v2  ;;  %9194 = vst [vmem:[#allocation55_spill] sm:$0xff] %v6294_v3  ;;  %v919_v18 = vshll.u32 %v6290_v21, 16  ;;  %v1462_v35 = vrot.slane %v6294_v3, 1  ;;  %v687_v21 = vshrl.u32 %v5329_v25, 16 }
 0x102   : > { %2500 = vmatpush1.bf16.msra.mxu1 %v5318_v59  ;;  %v678_v59 = vor.u32 %v676_v10, %v675_v51  ;;  %v6299_v0 = vsel %vm1385_vm3, %v1458_v12, %v1459_v19  ;;  %v683_v10 = vshll.u32 %v5326_v30, 16 }
 0x103   : > { %1796 = vmatmul.mubr.bf16.vlgmr.msra.gmra.mrb[0].mxu0 %v6205_v46  ;;  %9195 = vst [vmem:[#allocation56_spill] sm:$0xff] %v6299_v0  ;;  %2501 = vmatprep.subr.bf16.mxu1 %v9189_v44  ;;  %v921_v12 = vrot.slane %v919_v18, 1  ;;  %v689_v25 = vrot.slane %v687_v21, 7 }
 0x104   : > { %4875 = vmatpush3.bf16.msra.mxu0 %v6016_v2  ;;  %1803 = vmatprep.mubr.bf16.mxu0 %v6279_v32  ;;  %v6304_v2 = vsel %vm6042_vm2, 0, %v524_v37  ;;  %v6314_v19 = vsel %vm6042_vm2, 0, %v678_v59  ;;  %v685_v54 = vor.u32 %v683_v10, %v682_v27  ;;  %v697_v10 = vshll.u32 %v5330_v48, 16 }
 0x105   : > { %4931 = vmatmul.mubr.bf16.gmra.mrb[16].mxu1 %v6248_v58  ;;  %v912_v11 = vshrl.u32 %v6304_v2, 16  ;;  %v914_v51 = vshll.u32 %v6304_v2, 16  ;;  %9196 = vst [vmem:[#allocation57_spill] sm:$0xff] %v6314_v19  ;;  %4876 = vmatprep.subr.bf16.mxu0 %v6020_v4  ;;  %v1461_v37 = vrot.slane %v6314_v19, 1  ;;  %v6320_v58 = vsel %vm6042_vm2, %v682_v27, 0 }
 0x106   : > { %4934 = vmatprep.mubr.bf16.mxu1 %v6282_v42  ;;  %2502 = vmatpush1.bf16.msra.mxu1 %v5322_v62  ;;  %9197 = vst [vmem:[#allocation58_spill] sm:$0xff] %v6320_v58  ;;  %v526_v42 = vshrl.u32 %v5328_v31, 16  ;;  %v1465_v59 = vrot.slane %v6320_v58, 1  ;;  %v5327_v62 = vld [vmem:[#allocation11 + $0x50] sm:$0xff]   ;;  %v694_v27 = vshrl.u32 %v5330_v48, 16  ;;  %v5333_v31 = vld [vmem:[%s5997_s12 + $0x28] sm:$0xff]  }
 0x107   : > { %2503 = vmatprep.subr.bf16.mxu1 %v9189_v44  ;;  %v916_v61 = vrot.slane %v914_v51, 1  ;;  %v6326_v30 = vsel %vm1385_vm3, %v1461_v37, %v1462_v35  ;;  %v6331_v51 = vsel %vm6042_vm2, 0, %v685_v54  ;;  %v5334_v37 = vld [vmem:[%s5997_s12 + $0xe8] sm:$0xff]  }
 0x108   : > { %4877 = vmatpush3.bf16.msra.mxu0 %v6020_v4  ;;  %9198 = vst [vmem:[#allocation59_spill] sm:$0xff] %v6326_v30  ;;  %v528_v18 = vrot.slane %v526_v42, 7  ;;  %9199 = vst [vmem:[#allocation60_spill] sm:$0xff] %v6331_v51  ;;  %v1464_v4 = vrot.slane %v6331_v51, 1  ;;  %v696_v48 = vrot.slane %v694_v27, 7 }
 0x109   : > { %4878 = vmatprep.subr.bf16.mxu0 %v6024_v5  ;;  %v917_v26 = vor.u32 %v916_v61, %v912_v11  ;;  %v5331_v11 = vld [vmem:[#allocation11 + $0x58] sm:$0xff]  }
 0x10a   : > { %2504 = vmatpush1.bf16.msra.mxu1 %v5324_v40  ;;  %v531_v35 = vor.u32 %v529_v38, %v528_v18  ;;  %v6338_v42 = vsel %vm6042_vm2, %v528_v18, 0  ;;  %v6350_v38 = vsel %vm1385_vm3, %v1464_v4, %v1465_v59  ;;  %v6358_v40 = vsel %vm6042_vm2, %v689_v25, 0 }
 0x10b   : > { %1804 = vmatmul.mubr.bf16.gmra.mrb[4].mxu0 %v6240_v50  ;;  %9200 = vst [vmem:[#allocation61_spill] sm:$0xff] %v6338_v42  ;;  %v6342_v61 = vsel %vm874_vm4, %v917_v26, %v921_v12  ;;  %2505 = vmatprep.subr.bf16.mxu1 %v9189_v44  ;;  %v931_v54 = vshll.u32 %v6338_v42, 16  ;;  %9202 = vst [vmem:[#allocation63_spill] sm:$0xff] %v6350_v38  ;;  %v692_v26 = vor.u32 %v690_v22, %v689_v25  ;;  %v5335_v25 = vld [vmem:[%s5997_s12 + $0xf0] sm:$0xff]  }
 0x10c   : > { %9201 = vst [vmem:[#allocation62_spill] sm:$0xff] %v6342_v61  ;;  %4879 = vmatpush3.bf16.msra.mxu0 %v6024_v5  ;;  %1811 = vmatprep.mubr.bf16.mxu0 %v6342_v61  ;;  %v6354_v21 = vsel %vm6042_vm2, 0, %v531_v35  ;;  %9203 = vst [vmem:[#allocation64_spill] sm:$0xff] %v6358_v40  ;;  %v1468_v59 = vrot.slane %v6358_v40, 1  ;;  %v699_v27 = vor.u32 %v697_v10, %v696_v48  ;;  %v6371_v4 = vsel %vm6042_vm2, %v696_v48, 0 }
 0x10d   : > { %4935 = vmatmul.mubr.bf16.gmra.mrb[20].mxu1 %v6299_v0  ;;  %v924_v5 = vshrl.u32 %v6354_v21, 16  ;;  %v926_v12 = vshll.u32 %v6354_v21, 16  ;;  %v933_v18 = vrot.slane %v931_v54, 1  ;;  %4880 = vmatprep.subr.bf16.mxu0 %v6029_v7  ;;  %v6367_v22 = vsel %vm6042_vm2, 0, %v692_v26  ;;  %9205 = vst [vmem:[#allocation66_spill] sm:$0xff] %v6371_v4 }
 0x10e   : > { %4938 = vmatprep.mubr.bf16.mxu1 %v6326_v30  ;;  %2506 = vmatpush1.bf16.msra.mxu1 %v5327_v62  ;;  %9204 = vst [vmem:[#allocation65_spill] sm:$0xff] %v6367_v22  ;;  %v533_v35 = vshrl.u32 %v5333_v31, 16  ;;  %v1467_v54 = vrot.slane %v6367_v22, 1  ;;  %v1471_v0 = vrot.slane %v6371_v4, 1  ;;  %v536_v62 = vshll.u32 %v5333_v31, 16  ;;  %v5337_v4 = vld [vmem:[%s5997_s12 + $0x30] sm:$0xff]  }
 0x10f   : > { %v928_v30 = vrot.slane %v926_v12, 1  ;;  %2507 = vmatprep.subr.bf16.mxu1 %v9189_v44  ;;  %v6380_v10 = vsel %vm6042_vm2, 0, %v699_v27  ;;  %v701_v48 = vshrl.u32 %v5334_v37, 16  ;;  %v704_v42 = vshll.u32 %v5334_v37, 16 }
 0x110   : > { %4881 = vmatpush3.bf16.msra.mxu0 %v6029_v7  ;;  %9206 = vst [vmem:[#allocation67_spill] sm:$0xff] %v6380_v10  ;;  %v535_v26 = vrot.slane %v533_v35, 7  ;;  %v6384_v12 = vsel %vm1385_vm3, %v1467_v54, %v1468_v59  ;;  %v1470_v22 = vrot.slane %v6380_v10, 1  ;;  %v708_v58 = vshrl.u32 %v5335_v25, 16  ;;  %v5332_v7 = vld [vmem:[#allocation11 + $0x60] sm:$0xff]   ;;  %v5338_v54 = vld [vmem:[%s5997_s12 + $0xf8] sm:$0xff]  }
 0x111   : > { %4882 = vmatprep.subr.bf16.mxu0 %v6034_v9  ;;  %v929_v40 = vor.u32 %v928_v30, %v924_v5  ;;  %9207 = vst [vmem:[#allocation68_spill] sm:$0xff] %v6384_v12  ;;  %v703_v37 = vrot.slane %v701_v48, 7  ;;  %v711_v35 = vshll.u32 %v5335_v25, 16 }
 0x112   : > { %2508 = vmatpush1.bf16.msra.mxu1 %v5331_v11  ;;  %v538_v31 = vor.u32 %v536_v62, %v535_v26  ;;  %v6391_v27 = vsel %vm6042_vm2, %v535_v26, 0  ;;  %v6397_v5 = vsel %vm1385_vm3, %v1470_v22, %v1471_v0  ;;  %v710_v11 = vrot.slane %v708_v58, 7 }
 0x113   : > { %1812 = vmatmul.mubr.bf16.gmra.mrb[8].mxu0 %v6304_v2  ;;  %9208 = vst [vmem:[#allocation69_spill] sm:$0xff] %v6391_v27  ;;  %v6394_v30 = vsel %vm874_vm4, %v929_v40, %v933_v18  ;;  %9209 = vst [vmem:[#allocation70_spill] sm:$0xff] %v6397_v5  ;;  %2509 = vmatprep.subr.bf16.mxu1 %v9189_v44  ;;  %v943_v59 = vshll.u32 %v6391_v27, 16  ;;  %v706_v40 = vor.u32 %v704_v42, %v703_v37  ;;  %v5336_v18 = vld [vmem:[#allocation11 + $0x68] sm:$0xff]  }
 0x114   : > { %4883 = vmatpush3.bf16.msra.mxu0 %v6034_v9  ;;  %1819 = vmatprep.mubr.bf16.mxu0 %v6394_v30  ;;  %v6406_v25 = vsel %vm6042_vm2, 0, %v538_v31  ;;  %v6410_v0 = vsel %vm6042_vm2, %v703_v37, 0  ;;  %v540_v22 = vshrl.u32 %v5337_v4, 16  ;;  %v713_v48 = vor.u32 %v711_v35, %v710_v11 }
 0x115   : > { %4939 = vmatmul.mubr.bf16.gmra.mrb[24].mxu1 %v6350_v38  ;;  %9210 = vst [vmem:[#allocation71_spill] sm:$0xff] %v6410_v0  ;;  %v936_v9 = vshrl.u32 %v6406_v25, 16  ;;  %v938_v58 = vshll.u32 %v6406_v25, 16  ;;  %v945_v62 = vrot.slane %v943_v59, 1  ;;  %v1474_v26 = vrot.slane %v6410_v0, 1  ;;  %4884 = vmatprep.subr.bf16.mxu0 %v6040_v13 }
 0x116   : > { %4942 = vmatprep.mubr.bf16.mxu1 %v6384_v12  ;;  %2510 = vmatpush1.bf16.msra.mxu1 %v5332_v7  ;;  %v6420_v42 = vsel %vm6042_vm2, 0, %v706_v40  ;;  %v6424_v31 = vsel %vm6042_vm2, %v710_v11, 0  ;;  %v542_v37 = vrot.slane %v540_v22, 7  ;;  %v5340_v12 = vld [vmem:[%s5997_s12 + $0x100] sm:$0xff]   ;;  %v543_v0 = vshll.u32 %v5337_v4, 16 }
 0x117   : > { %9211 = vst [vmem:[#allocation72_spill] sm:$0xff] %v6420_v42  ;;  %9212 = vst [vmem:[#allocation73_spill] sm:$0xff] %v6424_v31  ;;  %v940_v38 = vrot.slane %v938_v58, 1  ;;  %v1473_v27 = vrot.slane %v6420_v42, 1  ;;  %v1477_v59 = vrot.slane %v6424_v31, 1  ;;  %2511 = vmatprep.subr.bf16.mxu1 %v9189_v44  ;;  %v6433_v7 = vsel %vm6042_vm2, 0, %v713_v48 }
 0x118   : > { %4885 = vmatpush3.bf16.msra.mxu0 %v6040_v13  ;;  %9213 = vst [vmem:[#allocation74_spill] sm:$0xff] %v6433_v7  ;;  %v6437_v35 = vsel %vm6042_vm2, %v542_v37, 0  ;;  %v715_v11 = vshrl.u32 %v5338_v54, 16  ;;  %v718_v40 = vshll.u32 %v5338_v54, 16  ;;  %v1476_v4 = vrot.slane %v6433_v7, 1  ;;  %v5339_v31 = vld [vmem:[#allocation11 + $0x70] sm:$0xff]  }
 0x119   : > { %9214 = vst [vmem:[#allocation75_spill] sm:$0xff] %v6437_v35  ;;  %4886 = vmatprep.subr.bf16.mxu0 %v6050_v20  ;;  %v941_v22 = vor.u32 %v940_v38, %v936_v9  ;;  %v6441_v58 = vsel %vm1385_vm3, %v1473_v27, %v1474_v26  ;;  %v545_v13 = vor.u32 %v543_v0, %v542_v37  ;;  %v955_v48 = vshll.u32 %v6437_v35, 16  ;;  %v5342_v0 = vld [vmem:[%s5997_s12 + $0x38] sm:$0xff]   ;;  %v5343_v26 = vld [vmem:[%s5997_s12] sm:$0xff]  }
 0x11a   : > { %9215 = vst [vmem:[#allocation76_spill] sm:$0xff] %v6441_v58  ;;  %2512 = vmatpush1.bf16.msra.mxu1 %v5336_v18  ;;  %v717_v42 = vrot.slane %v715_v11, 7  ;;  %v722_v10 = vshrl.u32 %v5340_v12, 16  ;;  %v725_v54 = vshll.u32 %v5340_v12, 16  ;;  %v6450_v38 = vsel %vm1385_vm3, %v1476_v4, %v1477_v59 }
 0x11b   : > { %1820 = vmatmul.mubr.bf16.gmra.mrb[12].mxu0 %v6354_v21  ;;  %v6447_v51 = vsel %vm874_vm4, %v941_v22, %v945_v62  ;;  %9216 = vst [vmem:[#allocation77_spill] sm:$0xff] %v6450_v38  ;;  %v6454_v27 = vsel %vm6042_vm2, 0, %v545_v13  ;;  %2513 = vmatprep.subr.bf16.mxu1 %v9189_v44  ;;  %v957_v9 = vrot.slane %v955_v48, 1  ;;  %v550_v11 = vshll.u32 %v5342_v0, 16  ;;  %v5341_v13 = vld [vmem:[#allocation11 + $0x78] sm:$0xff]  }
 0x11c   : > { %4887 = vmatpush3.bf16.msra.mxu0 %v6050_v20  ;;  %1827 = vmatprep.mubr.bf16.mxu0 %v6447_v51  ;;  %v948_v12 = vshrl.u32 %v6454_v27, 16  ;;  %v950_v18 = vshll.u32 %v6454_v27, 16  ;;  %v720_v62 = vor.u32 %v718_v40, %v717_v42  ;;  %v6467_v37 = vsel %vm6042_vm2, %v717_v42, 0 }
 0x11d   : > { %4943 = vmatmul.mubr.bf16.gmra.mrb[28].mxu1 %v6397_v5  ;;  %9217 = vst [vmem:[#allocation78_spill] sm:$0xff] %v6467_v37  ;;  %v724_v59 = vrot.slane %v722_v10, 7  ;;  %v547_v20 = vshrl.u32 %v5342_v0, 16  ;;  %4888 = vmatprep.subr.bf16.mxu0 %v6060_v28  ;;  %v1480_v40 = vrot.slane %v6467_v37, 1  ;;  %v498_v48 = vshrl.u32 %v5343_v26, 16  ;;  %v5346_v37 = vld [vmem:[%s5997_s12 + $0x48] sm:$0xff]  }
 0x11e   : > { %4946 = vmatprep.mubr.bf16.mxu1 %v6441_v58  ;;  %v952_v22 = vrot.slane %v950_v18, 1  ;;  %v6472_v4 = vsel %vm6042_vm2, 0, %v720_v62  ;;  %2514 = vmatpush1.bf16.msra.mxu1 %v5339_v31  ;;  %v5345_v18 = vld [vmem:[%s5997_s12 + $0x40] sm:$0xff]   ;;  %v501_v31 = vshll.u32 %v5343_v26, 16 }
 0x11f   : > { %9218 = vst [vmem:[#allocation79_spill] sm:$0xff] %v6472_v4  ;;  %v1479_v42 = vrot.slane %v6472_v4, 1  ;;  %v727_v58 = vor.u32 %v725_v54, %v724_v59  ;;  %v6478_v10 = vsel %vm6042_vm2, %v724_v59, 0  ;;  %2515 = vmatprep.subr.bf16.mxu1 %v9189_v44  ;;  %v549_v0 = vrot.slane %v547_v20, 7 }
 0x120   : > { %9219 = vst [vmem:[#allocation80_spill] sm:$0xff] %v6478_v10  ;;  %4889 = vmatpush3.bf16.msra.mxu0 %v6060_v28  ;;  %v953_v62 = vor.u32 %v952_v22, %v948_v12  ;;  %v1483_v5 = vrot.slane %v6478_v10, 1  ;;  %v500_v35 = vrot.slane %v498_v48, 7  ;;  %v564_v10 = vshll.u32 %v5346_v37, 16 }
 0x121   : > { %v6486_v7 = vsel %vm1385_vm3, %v1479_v42, %v1480_v40  ;;  %v6490_v54 = vsel %vm6042_vm2, 0, %v727_v58  ;;  %v552_v59 = vor.u32 %v550_v11, %v549_v0  ;;  %v6494_v20 = vsel %vm6042_vm2, %v549_v0, 0  ;;  %v5348_v0 = vld [vmem:[%s5997_s12 + $0x50] sm:$0xff]  }
 0x122   : > { %9220 = vst [vmem:[#allocation81_spill] sm:$0xff] %v6486_v7  ;;  %9221 = vst [vmem:[#allocation82_spill] sm:$0xff] %v6490_v54  ;;  %v6498_v28 = vsel %vm874_vm4, %v953_v62, %v957_v9  ;;  %v1482_v12 = vrot.slane %v6490_v54, 1  ;;  %2516 = vmatpush1.bf16.msra.mxu1 %v5341_v13  ;;  %v967_v26 = vshll.u32 %v6494_v20, 16  ;;  %v503_v22 = vor.u32 %v501_v31, %v500_v35 }
 0x123   : > { %9222 = vst [vmem:[#allocation83_spill] sm:$0xff] %v6494_v20  ;;  %1828 = vmatmul.mubr.bf16.gmra.mrb[16].mxu0 %v6406_v25  ;;  %v6505_v58 = vsel %vm6042_vm2, 0, %v552_v59  ;;  %v6509_v11 = vsel %vm6042_vm2, %v500_v35, 0  ;;  %3256 = vmatprep.subr.bf16.mxu1 %v9189_v44  ;;  %v554_v9 = vshrl.u32 %v5345_v18, 16  ;;  %v557_v40 = vshll.u32 %v5345_v18, 16 }
 0x124   : > { %1835 = vmatprep.mubr.bf16.mxu0 %v6498_v28  ;;  %9223 = vst [vmem:[#allocation84_spill] sm:$0xff] %v6509_v11  ;;  %v960_v13 = vshrl.u32 %v6505_v58, 16  ;;  %v962_v48 = vshll.u32 %v6505_v58, 16  ;;  %v969_v42 = vrot.slane %v967_v26, 1  ;;  %v6519_v62 = vsel %vm6042_vm2, 0, %v503_v22 }
 0x125   : > { %4947 = vmatmul.mubr.bf16.gmra.mrb[32].mxu1 %v6450_v38  ;;  %v883_v35 = vshll.u32 %v6509_v11, 16  ;;  %v556_v31 = vrot.slane %v554_v9, 7  ;;  %v561_v59 = vshrl.u32 %v5346_v37, 16  ;;  %v876_v18 = vshrl.u32 %v6519_v62, 16 }
 0x126   : > { %4950 = vmatprep.mubr.bf16.mxu1 %v6486_v7  ;;  %v964_v20 = vrot.slane %v962_v48, 1  ;;  %v878_v38 = vshll.u32 %v6519_v62, 16  ;;  %v568_v9 = vshrl.u32 %v5348_v0, 16  ;;  %v6530_v48 = vsel %vm1385_vm3, %v1482_v12, %v1483_v5 }
 0x127   : > { %v885_v54 = vrot.slane %v883_v35, 1  ;;  %v559_v26 = vor.u32 %v557_v40, %v556_v31  ;;  %v6526_v7 = vsel %vm6042_vm2, %v556_v31, 0  ;;  %v563_v4 = vrot.slane %v561_v59, 7  ;;  %9225 = vst [vmem:[#allocation86_spill] sm:$0xff] %v6530_v48  ;;  %v5349_v40 = vld [vmem:[%s5997_s12 + $0x58] sm:$0xff]  }
 0x128   : > { %9224 = vst [vmem:[#allocation85_spill] sm:$0xff] %v6526_v7  ;;  %v965_v22 = vor.u32 %v964_v20, %v960_v13  ;;  %v880_v3 = vrot.slane %v878_v38, 1  ;;  %v979_v11 = vshll.u32 %v6526_v7, 16  ;;  %v571_v35 = vshll.u32 %v5348_v0, 16 }
 0x129   : > { %v6534_v19 = vsel %vm6042_vm2, 0, %v559_v26  ;;  %v566_v37 = vor.u32 %v564_v10, %v563_v4  ;;  %v6550_v10 = vsel %vm6042_vm2, %v563_v4, 0  ;;  %v570_v12 = vrot.slane %v568_v9, 7 }
 0x12a   : > { %v6539_v31 = vsel %vm874_vm4, %v965_v22, %v969_v42  ;;  %v881_v20 = vor.u32 %v880_v3, %v876_v18  ;;  %v972_v38 = vshrl.u32 %v6534_v19, 16  ;;  %v974_v13 = vshll.u32 %v6534_v19, 16 }
 0x12b   : > { %1836 = vmatmul.mubr.bf16.gmra.mrb[20].mxu0 %v6454_v27  ;;  %v6546_v5 = vsel %vm6042_vm2, 0, %v566_v37  ;;  %v981_v0 = vrot.slane %v979_v11, 1  ;;  %v573_v18 = vor.u32 %v571_v35, %v570_v12  ;;  %v575_v26 = vshrl.u32 %v5349_v40, 16  ;;  %v5344_v37 = vld [vmem:[#allocation11 + $0x180] sm:$0xff]  }
 0x12c   : > { %1843 = vmatprep.mubr.bf16.mxu0 %v6539_v31  ;;  %v886_v42 = vsel %vm874_vm4, %v881_v20, %v885_v54  ;;  %v976_v3 = vrot.slane %v974_v13, 1  ;;  %v986_v59 = vshll.u32 %v6546_v5, 16  ;;  %v991_v7 = vshll.u32 %v6550_v10, 16  ;;  %v5351_v13 = vld [vmem:[%s5997_s12 + $0x60] sm:$0xff]  }
 0x12d   : > { %4951 = vmatmul.mubr.bf16.gmra.mrb[36].mxu1 %v6530_v48  ;;  %v984_v9 = vshrl.u32 %v6546_v5, 16  ;;  %v6562_v54 = vsel %vm6042_vm2, 0, %v573_v18  ;;  %v577_v11 = vrot.slane %v575_v26, 7  ;;  %v578_v20 = vshll.u32 %v5349_v40, 16 }
 0x12e   : > { %2517 = vmatprep.mubr.bf16.mxu1 %v886_v42  ;;  %v977_v22 = vor.u32 %v976_v3, %v972_v38  ;;  %v988_v48 = vrot.slane %v986_v59, 1  ;;  %v993_v38 = vrot.slane %v991_v7, 1  ;;  %v998_v42 = vshll.u32 %v6562_v54, 16  ;;  %v5347_v3 = vld [vmem:[#allocation11 + $0x188] sm:$0xff]  }
 0x12f   : > { %v580_v40 = vor.u32 %v578_v20, %v577_v11  ;;  %v582_v59 = vshrl.u32 %v5351_v13, 16 }
 0x130   : > { %v6557_v4 = vsel %vm874_vm4, %v977_v22, %v981_v0  ;;  %v989_v35 = vor.u32 %v988_v48, %v984_v9  ;;  %v6572_v0 = vsel %vm6042_vm2, %v570_v12, 0  ;;  %v996_v48 = vshrl.u32 %v6562_v54, 16  ;;  %v5350_v22 = vld [vmem:[#allocation11 + $0x190] sm:$0xff]  }
 0x131   : > { %9226 = vst [vmem:[#allocation87_spill] sm:$0xff] %v6557_v4  ;;  %v1000_v7 = vrot.slane %v998_v42, 1  ;;  %v1003_v26 = vshll.u32 %v6572_v0, 16  ;;  %v584_v12 = vrot.slane %v582_v59, 7  ;;  %v5352_v42 = vld [vmem:[#allocation11 + $0x198] sm:$0xff]  }
 0x132   : > { %v6576_v18 = vsel %vm874_vm4, %v989_v35, %v993_v38  ;;  %v6592_v38 = vsel %vm6042_vm2, %v577_v11, 0  ;;  %v5353_v11 = vld [vmem:[#allocation11 + $0x1a0] sm:$0xff]  }
 0x133   : > { %1844 = vmatmul.mubr.bf16.gmra.mrb[24].mxu0 %v6505_v58  ;;  %9227 = vst [vmem:[#allocation88_spill] sm:$0xff] %v6576_v18  ;;  %v1001_v9 = vor.u32 %v1000_v7, %v996_v48  ;;  %v1005_v20 = vrot.slane %v1003_v26, 1  ;;  %v1015_v48 = vshll.u32 %v6592_v38, 16 }
 0x134   : > { %1851 = vmatprep.mubr.bf16.mxu0 %v6557_v4 }
 0x135   : > { %2518 = vmatmul.mubr.bf16.vlgmr.msra.gmra.mrb[40].mxu1 %v6519_v62 }
 0x136   : > { %3257 = vmatpush1.bf16.msra.mxu1 %v5344_v37  ;;  %2525 = vmatprep.mubr.bf16.mxu1 %v6245_v56  ;;  %v6582_v56 = vsel %vm6042_vm2, 0, %v580_v40  ;;  %v585_v37 = vshll.u32 %v5351_v13, 16 }
 0x137   : > { %3258 = vmatprep.subr.bf16.mxu1 %v9189_v44  ;;  %v1010_v35 = vshll.u32 %v6582_v56, 16  ;;  %v1008_v40 = vshrl.u32 %v6582_v56, 16 }
 0x138   : > { %v587_v13 = vor.u32 %v585_v37, %v584_v12  ;;  %v6610_v37 = vsel %vm6042_vm2, %v584_v12, 0 }
 0x139   : > { %v1012_v59 = vrot.slane %v1010_v35, 1  ;;  %v1027_v35 = vshll.u32 %v6610_v37, 16 }
 0x13a   : > { %3259 = vmatpush1.bf16.msra.mxu1 %v5347_v3  ;;  %v6596_v3 = vsel %vm874_vm4, %v1001_v9, %v1005_v20  ;;  %v6602_v7 = vsel %vm6042_vm2, 0, %v587_v13  ;;  %v5354_v20 = vld [vmem:[#allocation11 + $0x1a8] sm:$0xff]  }
 0x13b   : > { %1852 = vmatmul.mubr.bf16.gmra.mrb[28].mxu0 %v6534_v19  ;;  %3260 = vmatprep.subr.bf16.mxu1 %v9189_v44  ;;  %9228 = vst [vmem:[#allocation89_spill] sm:$0xff] %v6596_v3  ;;  %v1013_v26 = vor.u32 %v1012_v59, %v1008_v40  ;;  %v1022_v9 = vshll.u32 %v6602_v7, 16  ;;  %v5355_v59 = vld [vmem:[#allocation11 + $0x1b0] sm:$0xff]  }
 0x13c   : > { %1859 = vmatprep.mubr.bf16.mxu0 %v6576_v18 }
 0x13d   : > { %2526 = vmatmul.mubr.bf16.gmra.mrb[44].mxu1 %v6205_v46  ;;  %v1024_v40 = vrot.slane %v1022_v9, 1 }
 0x13e   : > { %2533 = vmatprep.mubr.bf16.mxu1 %v6279_v32  ;;  %3261 = vmatpush1.bf16.msra.mxu1 %v5350_v22  ;;  %v1017_v22 = vrot.slane %v1015_v48, 1  ;;  %v1029_v48 = vrot.slane %v1027_v35, 1 }
 0x13f   : > { %3262 = vmatprep.subr.bf16.mxu1 %v9189_v44 }
 0x140   : > { %v6617_v13 = vsel %vm874_vm4, %v1013_v26, %v1017_v22  ;;  %v5356_v26 = vld [vmem:[#allocation11 + $0x1b8] sm:$0xff]   ;;  %v1032_v22 = vshrl.u32 %v6064_v29, 16 }
 0x141   : > { %9229 = vst [vmem:[#allocation90_spill] sm:$0xff] %v6617_v13 }
 0x142   : > { %3263 = vmatpush1.bf16.msra.mxu1 %v5352_v42  ;;  %v1020_v42 = vshrl.u32 %v6602_v7, 16 }
 0x143   : > { %1860 = vmatmul.mubr.bf16.gmra.mrb[32].mxu0 %v6546_v5  ;;  %3264 = vmatprep.subr.bf16.mxu1 %v9189_v44 }
 0x144   : > { %1867 = vmatprep.mubr.bf16.mxu0 %v6596_v3  ;;  %v1025_v12 = vor.u32 %v1024_v40, %v1020_v42  ;;  %v1041_v42 = vrot.slane %v1039_v16, 1  ;;  %v1046_v40 = vshll.u32 %v6079_v39, 16 }
 0x145   : > { %2534 = vmatmul.mubr.bf16.gmra.mrb[48].mxu1 %v6240_v50 }
 0x146   : > { %2541 = vmatprep.mubr.bf16.mxu1 %v6342_v61  ;;  %3265 = vmatpush1.bf16.msra.mxu1 %v5353_v11  ;;  %v1034_v11 = vshll.u32 %v6064_v29, 16  ;;  %v6629_v9 = vsel %vm874_vm4, %v1025_v12, %v1029_v48  ;;  %v5357_v61 = vld [vmem:[#allocation11 + $0x1c0] sm:$0xff]   ;;  %v1044_v12 = vshrl.u32 %v6079_v39, 16  ;;  %v1048_v48 = vrot.slane %v1046_v40, 1 }
 0x147   : > { %3266 = vmatprep.subr.bf16.mxu1 %v9189_v44  ;;  %9230 = vst [vmem:[#allocation91_spill] sm:$0xff] %v6629_v9 }
 0x148   : > { %v1049_v16 = vor.u32 %v1048_v48, %v1044_v12  ;;  %v1070_v12 = vshll.u32 %v6114_v1, 16  ;;  %v5360_v48 = vld [vmem:[#allocation11 + $0x1d8] sm:$0xff]  }
 0x14a   : > { %3267 = vmatpush1.bf16.msra.mxu1 %v5354_v20  ;;  %v1036_v20 = vrot.slane %v1034_v11, 1  ;;  %v1051_v11 = vshll.u32 %v6070_v34, 16 }
 0x14b   : > { %1868 = vmatmul.mubr.bf16.gmra.mrb[36].mxu0 %v6562_v54  ;;  %3268 = vmatprep.subr.bf16.mxu1 %v9189_v44 }
 0x14c   : > { %1875 = vmatprep.mubr.bf16.mxu0 %v6617_v13  ;;  %v1037_v35 = vor.u32 %v1036_v20, %v1032_v22  ;;  %v1058_v22 = vshll.u32 %v6094_v49, 16  ;;  %v1056_v20 = vshrl.u32 %v6094_v49, 16 }
 0x14d   : > { %2542 = vmatmul.mubr.bf16.gmra.mrb[52].mxu1 %v6304_v2 }
 0x14e   : > { %2549 = vmatprep.mubr.bf16.mxu1 %v6394_v30  ;;  %3269 = vmatpush1.bf16.msra.mxu1 %v5355_v59  ;;  %v5358_v59 = vld [vmem:[#allocation11 + $0x1c8] sm:$0xff]   ;;  %v6640_v24 = vsel %vm874_vm4, %v1037_v35, %v1041_v42  ;;  %v1060_v35 = vrot.slane %v1058_v22, 1  ;;  %v1063_v42 = vshll.u32 %v6087_v43, 16  ;;  %v1068_v43 = vshrl.u32 %v6114_v1, 16 }
 0x14f   : > { %3270 = vmatprep.subr.bf16.mxu1 %v9189_v44  ;;  %9231 = vst [vmem:[#allocation92_spill] sm:$0xff] %v6640_v24 }
 0x150   : > { %v1061_v40 = vor.u32 %v1060_v35, %v1056_v20  ;;  %v1082_v20 = vshll.u32 %v6128_v17, 16 }
 0x152   : > { %3271 = vmatpush1.bf16.msra.mxu1 %v5356_v26  ;;  %v5359_v26 = vld [vmem:[#allocation11 + $0x1d0] sm:$0xff]  }
 0x153   : > { %1876 = vmatmul.mubr.bf16.gmra.mrb[40].mxu0 %v6582_v56  ;;  %3272 = vmatprep.subr.bf16.mxu1 %v9189_v44 }
 0x154   : > { %1883 = vmatprep.mubr.bf16.mxu0 %v6629_v9 }
 0x155   : > { %2550 = vmatmul.mubr.bf16.gmra.mrb[56].mxu1 %v6354_v21 }
 0x156   : > { %2557 = vmatprep.mubr.bf16.mxu1 %v6447_v51  ;;  %3273 = vmatpush1.bf16.msra.mxu1 %v5357_v61  ;;  %v1053_v61 = vrot.slane %v1051_v11, 1 }
 0x157   : > { %3274 = vmatprep.subr.bf16.mxu1 %v9189_v44 }
 0x158   : > { %v6652_v34 = vsel %vm874_vm4, %v1049_v16, %v1053_v61  ;;  %v1075_v16 = vshll.u32 %v6104_v57, 16  ;;  %v1087_v57 = vshll.u32 %v6118_v6, 16  ;;  %v1092_v6 = vshrl.u32 %v6146_v33, 16 }
 0x159   : > { %9232 = vst [vmem:[#allocation93_spill] sm:$0xff] %v6652_v34 }
 0x15a   : > { %3275 = vmatpush1.bf16.msra.mxu1 %v5358_v59  ;;  %v1065_v59 = vrot.slane %v1063_v42, 1  ;;  %v1077_v22 = vrot.slane %v1075_v16, 1  ;;  %v1080_v42 = vshrl.u32 %v6128_v17, 16 }
 0x15b   : > { %1884 = vmatmul.mubr.bf16.gmra.mrb[44].mxu0 %v6602_v7  ;;  %3276 = vmatprep.subr.bf16.mxu1 %v9189_v44 }
 0x15c   : > { %1891 = vmatprep.mubr.bf16.mxu0 %v6640_v24  ;;  %v6663_v11 = vsel %vm874_vm4, %v1061_v40, %v1065_v59  ;;  %v1084_v40 = vrot.slane %v1082_v20, 1 }
 0x15d   : > { %2558 = vmatmul.mubr.bf16.gmra.mrb[60].mxu1 %v6406_v25  ;;  %9233 = vst [vmem:[#allocation94_spill] sm:$0xff] %v6663_v11 }
 0x15e   : > { %2565 = vmatprep.mubr.bf16.mxu1 %v6498_v28  ;;  %3277 = vmatpush1.bf16.msra.mxu1 %v5359_v26  ;;  %v1072_v26 = vrot.slane %v1070_v12, 1  ;;  %v1085_v59 = vor.u32 %v1084_v40, %v1080_v42  ;;  %v1089_v12 = vrot.slane %v1087_v57, 1  ;;  %v1106_v42 = vshll.u32 %v6160_v47, 16 }
 0x15f   : > { %3278 = vmatprep.subr.bf16.mxu1 %v9189_v44  ;;  %v1104_v57 = vshrl.u32 %v6160_v47, 16 }
 0x160   : > { %v1073_v61 = vor.u32 %v1072_v26, %v1068_v43  ;;  %v5361_v43 = vld [vmem:[#allocation11 + $0x1e0] sm:$0xff]   ;;  %v6684_v26 = vsel %vm874_vm4, %v1085_v59, %v1089_v12  ;;  %v1108_v59 = vrot.slane %v1106_v42, 1 }
 0x161   : > { %9235 = vst [vmem:[#allocation96_spill] sm:$0xff] %v6684_v26  ;;  %v6699_v12 = vld [vmem:[#allocation11 + $0x80] sm:$0xff]  }
 0x162   : > { %3279 = vmatpush1.bf16.msra.mxu1 %v5360_v48  ;;  %v6673_v35 = vsel %vm874_vm4, %v1073_v61, %v1077_v22  ;;  %v1094_v48 = vshll.u32 %v6146_v33, 16  ;;  %v1099_v61 = vshll.u32 %v6134_v23, 16  ;;  %v1111_v23 = vshll.u32 %v6153_v41, 16  ;;  %4954 = vmatprep.subr.bf16.mxu0 %v6699_v12 }
 0x163   : > { %1892 = vmatmul.mubr.bf16.gmra.mrb[48].mxu0 %v6064_v29  ;;  %3280 = vmatprep.subr.bf16.mxu1 %v9189_v44  ;;  %9234 = vst [vmem:[#allocation95_spill] sm:$0xff] %v6673_v35 }
 0x164   : > { %1899 = vmatprep.mubr.bf16.mxu0 %v6652_v34  ;;  %v1096_v16 = vrot.slane %v1094_v48, 1  ;;  %v1101_v20 = vrot.slane %v1099_v61, 1  ;;  %v1109_v48 = vor.u32 %v1108_v59, %v1104_v57  ;;  %v1116_v61 = vshrl.u32 %v6175_v63, 16 }
 0x165   : > { %2566 = vmatmul.mubr.bf16.gmra.mrb[64].mxu1 %v6454_v27  ;;  %v1130_v59 = vshll.u32 %v6212_v53, 16 }
 0x166   : > { %2573 = vmatprep.mubr.bf16.mxu1 %v6539_v31  ;;  %3281 = vmatpush1.bf16.msra.mxu1 %v5361_v43  ;;  %v1097_v22 = vor.u32 %v1096_v16, %v1092_v6  ;;  %v1113_v43 = vrot.slane %v1111_v23, 1  ;;  %v1118_v6 = vshll.u32 %v6175_v63, 16  ;;  %v5363_v16 = vld [vmem:[#allocation11 + $0x1e8] sm:$0xff]  }
 0x167   : > { %3282 = vmatprep.subr.bf16.mxu1 %v9189_v44 }
 0x168   : > { %v6694_v40 = vsel %vm874_vm4, %v1097_v22, %v1101_v20  ;;  %v6708_v41 = vsel %vm874_vm4, %v1109_v48, %v1113_v43  ;;  %v1120_v22 = vrot.slane %v1118_v6, 1  ;;  %v1123_v20 = vshll.u32 %v6168_v55, 16 }
 0x169   : > { %9236 = vst [vmem:[#allocation97_spill] sm:$0xff] %v6694_v40  ;;  %9237 = vst [vmem:[#allocation98_spill] sm:$0xff] %v6708_v41  ;;  %v1128_v48 = vshrl.u32 %v6212_v53, 16  ;;  %v1132_v43 = vrot.slane %v1130_v59, 1  ;;  %v1135_v55 = vshll.u32 %v6196_v36, 16  ;;  %v1140_v36 = vshrl.u32 %v6225_v15, 16 }
 0x16a   : > { %3283 = vmatpush1.bf16.msra.mxu1 %v5363_v16  ;;  %v1121_v42 = vor.u32 %v1120_v22, %v1116_v61  ;;  %v1125_v57 = vrot.slane %v1123_v20, 1  ;;  %v1142_v61 = vshll.u32 %v6225_v15, 16  ;;  %v5367_v22 = vld [vmem:[#allocation11 + $0x1f0] sm:$0xff]  }
 0x16b   : > { %1900 = vmatmul.mubr.bf16.gmra.mrb[52].mxu0 %v6079_v39  ;;  %3284 = vmatprep.subr.bf16.mxu1 %v9189_v44  ;;  %v1133_v6 = vor.u32 %v1132_v43, %v1128_v48  ;;  %v1137_v16 = vrot.slane %v1135_v55, 1  ;;  %v1154_v43 = vshll.u32 %v6263_v45, 16  ;;  %v1152_v55 = vshrl.u32 %v6263_v45, 16 }
 0x16c   : > { %1907 = vmatprep.mubr.bf16.mxu0 %v6663_v11  ;;  %v6718_v23 = vsel %vm874_vm4, %v1121_v42, %v1125_v57  ;;  %v1144_v42 = vrot.slane %v1142_v61, 1  ;;  %v1147_v57 = vshll.u32 %v6218_v60, 16  ;;  %v1159_v60 = vshll.u32 %v6256_v14, 16 }
 0x16d   : > { %2574 = vmatmul.mubr.bf16.gmra.mrb[68].mxu1 %v6505_v58  ;;  %9238 = vst [vmem:[#allocation99_spill] sm:$0xff] %v6718_v23  ;;  %v6729_v20 = vsel %vm874_vm4, %v1133_v6, %v1137_v16  ;;  %v1156_v6 = vrot.slane %v1154_v43, 1 }
 0x16e   : > { %2581 = vmatprep.mubr.bf16.mxu1 %v6557_v4  ;;  %3285 = vmatpush1.bf16.msra.mxu1 %v5367_v22  ;;  %9239 = vst [vmem:[#allocation100_spill] sm:$0xff] %v6729_v20  ;;  %v1145_v59 = vor.u32 %v1144_v42, %v1140_v36  ;;  %v1149_v48 = vrot.slane %v1147_v57, 1  ;;  %v1161_v61 = vrot.slane %v1159_v60, 1  ;;  %v1166_v22 = vshll.u32 %v6275_v8, 16  ;;  %v5370_v36 = vld [vmem:[#allocation11 + $0x1f8] sm:$0xff]  }
 0x16f   : > { %3286 = vmatprep.subr.bf16.mxu1 %v9189_v44  ;;  %v1157_v16 = vor.u32 %v1156_v6, %v1152_v55  ;;  %v1164_v57 = vshrl.u32 %v6275_v8, 16  ;;  %v9242_v55 = vld [vmem:[#allocation57_spill] sm:$0xff] }
 0x170   : > { %v6739_v44 = vsel %vm874_vm4, %v1145_v59, %v1149_v48  ;;  %v1168_v14 = vrot.slane %v1166_v22, 1  ;;  %v1171_v59 = vshll.u32 %v6267_v52, 16  ;;  %v1178_v6 = vshll.u32 %v9242_v55, 16  ;;  %v9244_v22 = vld [vmem:[#allocation55_spill] sm:$0xff] }
 0x171   : > { %9240 = vst [vmem:[#allocation101_spill] sm:$0xff] %v6739_v44  ;;  %v6749_v42 = vsel %vm874_vm4, %v1157_v16, %v1161_v61  ;;  %v1176_v16 = vshrl.u32 %v9242_v55, 16  ;;  %v1183_v52 = vshll.u32 %v9244_v22, 16 }
 0x172   : > { %3287 = vmatpush1.bf16.msra.mxu1 %v5370_v36  ;;  %9241 = vst [vmem:[#allocation102_spill] sm:$0xff] %v6749_v42  ;;  %v1169_v48 = vor.u32 %v1168_v14, %v1164_v57  ;;  %v1173_v43 = vrot.slane %v1171_v59, 1  ;;  %v1180_v61 = vrot.slane %v1178_v6, 1  ;;  %v9245_v14 = vld [vmem:[#allocation60_spill] sm:$0xff] }
 0x173   : > { %1908 = vmatmul.mubr.bf16.gmra.mrb[56].mxu0 %v6094_v49  ;;  %v1185_v57 = vrot.slane %v1183_v52, 1  ;;  %v1190_v59 = vshll.u32 %v9245_v14, 16  ;;  %v1188_v6 = vshrl.u32 %v9245_v14, 16 }
 0x174   : > { %1915 = vmatprep.mubr.bf16.mxu0 %v6673_v35  ;;  %v6759_v60 = vsel %vm874_vm4, %v1169_v48, %v1173_v43  ;;  %v1181_v36 = vor.u32 %v1180_v61, %v1176_v16 }
 0x175   : > { %2582 = vmatmul.mubr.bf16.gmra.mrb[72].mxu1 %v6534_v19  ;;  %9243 = vst [vmem:[#allocation103_spill] sm:$0xff] %v6759_v60  ;;  %v1192_v22 = vrot.slane %v1190_v59, 1 }
 0x176   : > { %2589 = vmatprep.mubr.bf16.mxu1 %v6576_v18  ;;  %v6773_v43 = vsel %vm874_vm4, %v1181_v36, %v1185_v57 }
 0x177   : > { %9246 = vst [vmem:[#allocation55_spill] sm:$0xff] %v6773_v43  ;;  %v1193_v61 = vor.u32 %v1192_v22, %v1188_v6 }
 0x17b   : > { %1916 = vmatmul.mubr.bf16.gmra.mrb[60].mxu0 %v6114_v1 }
 0x17c   : > { %1923 = vmatprep.mubr.bf16.mxu0 %v6684_v26 }
 0x17d   : > { %2590 = vmatmul.mubr.bf16.gmra.mrb[76].mxu1 %v6546_v5 }
 0x17e   : > { %2597 = vmatprep.mubr.bf16.mxu1 %v6596_v3  ;;  %v9255_v3 = vld [vmem:[#allocation66_spill] sm:$0xff] }
 0x17f   : > { %v1219_v18 = vshll.u32 %v9255_v3, 16 }
 0x183   : > { %1924 = vmatmul.mubr.bf16.gmra.mrb[64].mxu0 %v6128_v17 }
 0x184   : > { %1931 = vmatprep.mubr.bf16.mxu0 %v6694_v40 }
 0x185   : > { %2598 = vmatmul.mubr.bf16.gmra.mrb[80].mxu1 %v6562_v54 }
 0x186   : > { %2605 = vmatprep.mubr.bf16.mxu1 %v6617_v13 }
 0x18b   : > { %1932 = vmatmul.mubr.bf16.gmra.mrb[68].mxu0 %v6146_v33 }
 0x18c   : > { %1939 = vmatprep.mubr.bf16.mxu0 %v6708_v41 }
 0x18d   : > { %2606 = vmatmul.mubr.bf16.gmra.mrb[84].mxu1 %v6582_v56 }
 0x18e   : > { %2613 = vmatprep.mubr.bf16.mxu1 %v6629_v9 }
 0x193   : > { %1940 = vmatmul.mubr.bf16.gmra.mrb[72].mxu0 %v6160_v47 }
 0x194   : > { %1947 = vmatprep.mubr.bf16.mxu0 %v6718_v23 }
 0x195   : > { %2614 = vmatmul.mubr.bf16.gmra.mrb[88].mxu1 %v6602_v7 }
 0x196   : > { %2621 = vmatprep.mubr.bf16.mxu1 %v6640_v24 }
 0x19b   : > { %1948 = vmatmul.mubr.bf16.gmra.mrb[76].mxu0 %v6175_v63 }
 0x19c   : > { %1955 = vmatprep.mubr.bf16.mxu0 %v6729_v20 }
 0x19d   : > { %2622 = vmatmul.mubr.bf16.gmra.mrb[92].mxu1 %v6064_v29  ;;  %v9250_v29 = vld [vmem:[#allocation64_spill] sm:$0xff] }
 0x19e   : > { %2629 = vmatprep.mubr.bf16.mxu1 %v6652_v34  ;;  %v1207_v24 = vshll.u32 %v9250_v29, 16 }
 0x1a0   : > { %v1209_v22 = vrot.slane %v1207_v24, 1 }
 0x1a3   : > { %1956 = vmatmul.mubr.bf16.gmra.mrb[80].mxu0 %v6212_v53 }
 0x1a4   : > { %1963 = vmatprep.mubr.bf16.mxu0 %v6739_v44 }
 0x1a5   : > { %2630 = vmatmul.mubr.bf16.gmra.mrb[96].mxu1 %v6079_v39 }
 0x1a6   : > { %2637 = vmatprep.mubr.bf16.mxu1 %v6663_v11 }
 0x1ab   : > { %1964 = vmatmul.mubr.bf16.gmra.mrb[84].mxu0 %v6225_v15 }
 0x1ac   : > { %1971 = vmatprep.mubr.bf16.mxu0 %v6749_v42 }
 0x1ad   : > { %2638 = vmatmul.mubr.bf16.gmra.mrb[100].mxu1 %v6094_v49  ;;  %v9247_v49 = vld [vmem:[#allocation58_spill] sm:$0xff] }
 0x1ae   : > { %2645 = vmatprep.mubr.bf16.mxu1 %v6673_v35  ;;  %v1195_v11 = vshll.u32 %v9247_v49, 16 }
 0x1b0   : > { %v1197_v52 = vrot.slane %v1195_v11, 1 }
 0x1b2   : > { %v6791_v49 = vsel %vm874_vm4, %v1193_v61, %v1197_v52 }
 0x1b3   : > { %1972 = vmatmul.mubr.bf16.gmra.mrb[88].mxu0 %v6263_v45  ;;  %9249 = vst [vmem:[#allocation58_spill] sm:$0xff] %v6791_v49 }
 0x1b4   : > { %1979 = vmatprep.mubr.bf16.mxu0 %v6759_v60 }
 0x1b5   : > { %2646 = vmatmul.mubr.bf16.gmra.mrb[104].mxu1 %v6114_v1 }
 0x1b6   : > { %2653 = vmatprep.mubr.bf16.mxu1 %v6684_v26  ;;  %v9248_v26 = vld [vmem:[#allocation65_spill] sm:$0xff] }
 0x1b7   : > { %v6768_v35 = vpop.f32.mrb[0].mxu1  ;;  %v1202_v36 = vshll.u32 %v9248_v26, 16  ;;  %v1200_v1 = vshrl.u32 %v9248_v26, 16 }
 0x1b8   : > { %v6770_v48 = vpop.f32.mrb[1].mxu1 }
 0x1b9   : > { %v6777_v39 = vpop.f32.mrb[2].mxu1  ;;  %v1204_v34 = vrot.slane %v1202_v36, 1 }
 0x1ba   : > { %v6779_v16 = vpop.f32.mrb[3].mxu1 }
 0x1bb   : > { %1980 = vmatmul.mubr.bf16.gmra.mrb[92].mxu0 %v6275_v8  ;;  %v1205_v11 = vor.u32 %v1204_v34, %v1200_v1  ;;  %v1221_v34 = vrot.slane %v1219_v18, 1 }
 0x1bc   : > { %1987 = vmatprep.mubr.bf16.mxu0 %v6773_v43 }
 0x1bd   : > { %2654 = vmatmul.mubr.bf16.gmra.mrb[108].mxu1 %v6128_v17  ;;  %v6809_v29 = vsel %vm874_vm4, %v1205_v11, %v1209_v22 }
 0x1be   : > { %2661 = vmatprep.mubr.bf16.mxu1 %v6694_v40  ;;  %v9251_v40 = vld [vmem:[#allocation67_spill] sm:$0xff]  ;;  %9254 = vst [vmem:[#allocation105_spill] sm:$0xff] %v6809_v29 }
 0x1bf   : > { %v6786_v57 = vpop.f32.mrb[4].mxu1  ;;  %v1214_v61 = vshll.u32 %v9251_v40, 16  ;;  %v1212_v17 = vshrl.u32 %v9251_v40, 16 }
 0x1c0   : > { %v6788_v59 = vpop.f32.mrb[5].mxu1 }
 0x1c1   : > { %v6795_v9 = vpop.f32.mrb[6].mxu1  ;;  %v1216_v13 = vrot.slane %v1214_v61, 1 }
 0x1c2   : > { %v6797_v6 = vpop.f32.mrb[7].mxu1 }
 0x1c3   : > { %1988 = vmatmul.mubr.bf16.gmra.mrb[96].mxu0 %v9242_v55  ;;  %v1217_v24 = vor.u32 %v1216_v13, %v1212_v17 }
 0x1c4   : > { %1995 = vmatprep.mubr.bf16.mxu0 %v6791_v49 }
 0x1c5   : > { %2662 = vmatmul.mubr.bf16.gmra.mrb[112].mxu1 %v6146_v33  ;;  %v6827_v3 = vsel %vm874_vm4, %v1217_v24, %v1221_v34 }
 0x1c6   : > { %2669 = vmatprep.mubr.bf16.mxu1 %v6708_v41  ;;  %v9258_v41 = vld [vmem:[#allocation72_spill] sm:$0xff]  ;;  %9261 = vst [vmem:[#allocation109_spill] sm:$0xff] %v6827_v3 }
 0x1c7   : > { %v6804_v52 = vpop.f32.mrb[8].mxu1  ;;  %v1226_v11 = vshll.u32 %v9258_v41, 16  ;;  %v1224_v33 = vshrl.u32 %v9258_v41, 16 }
 0x1c8   : > { %9252 = vst [vmem:[#allocation64_spill] sm:$0xff] %v6804_v52  ;;  %v6806_v36 = vpop.f32.mrb[9].mxu1  ;;  %v9262_v52 = vld [vmem:[#allocation71_spill] sm:$0xff] }
 0x1c9   : > { %9253 = vst [vmem:[#allocation104_spill] sm:$0xff] %v6806_v36  ;;  %v6813_v4 = vpop.f32.mrb[10].mxu1 }
 0x1ca   : > { %9256 = vst [vmem:[#allocation66_spill] sm:$0xff] %v6813_v4  ;;  %v6815_v1 = vpop.f32.mrb[11].mxu1  ;;  %v1228_v4 = vrot.slane %v1226_v11, 1 }
 0x1cb   : > { %9257 = vst [vmem:[#allocation106_spill] sm:$0xff] %v6815_v1  ;;  %1996 = vmatmul.mubr.bf16.gmra.mrb[100].mxu0 %v9245_v14  ;;  %v1231_v1 = vshll.u32 %v9262_v52, 16 }
 0x1cc   : > { %2003 = vmatprep.mubr.bf16.mxu0 %v6809_v29  ;;  %v1229_v18 = vor.u32 %v1228_v4, %v1224_v33 }
 0x1cd   : > { %2670 = vmatmul.mubr.bf16.gmra.mrb[116].mxu1 %v6160_v47  ;;  %v1233_v13 = vrot.slane %v1231_v1, 1  ;;  %v9271_v1 = vld [vmem:[#allocation73_spill] sm:$0xff] }
 0x1ce   : > { %2677 = vmatprep.mubr.bf16.mxu1 %v6718_v23  ;;  %v9265_v23 = vld [vmem:[#allocation74_spill] sm:$0xff] }
 0x1cf   : > { %v6822_v22 = vpop.f32.mrb[12].mxu1  ;;  %v1238_v24 = vshll.u32 %v9265_v23, 16  ;;  %v1236_v33 = vshrl.u32 %v9265_v23, 16 }
 0x1d0   : > { %9259 = vst [vmem:[#allocation107_spill] sm:$0xff] %v6822_v22  ;;  %v6824_v61 = vpop.f32.mrb[13].mxu1 }
 0x1d1   : > { %9260 = vst [vmem:[#allocation108_spill] sm:$0xff] %v6824_v61  ;;  %v6831_v36 = vpop.f32.mrb[14].mxu1  ;;  %v1240_v4 = vrot.slane %v1238_v24, 1 }
 0x1d2   : > { %9263 = vst [vmem:[#allocation71_spill] sm:$0xff] %v6831_v36  ;;  %v6833_v17 = vpop.f32.mrb[15].mxu1 }
 0x1d3   : > { %9264 = vst [vmem:[#allocation110_spill] sm:$0xff] %v6833_v17  ;;  %2004 = vmatmul.mubr.bf16.gmra.mrb[104].mxu0 %v9248_v26  ;;  %v6849_v17 = vsel %vm874_vm4, %v1229_v18, %v1233_v13 }
 0x1d4   : > { %2011 = vmatprep.mubr.bf16.mxu0 %v6827_v3  ;;  %9270 = vst [vmem:[#allocation115_spill] sm:$0xff] %v6849_v17 }
 0x1d5   : > { %2678 = vmatmul.mubr.bf16.gmra.mrb[120].mxu1 %v6175_v63  ;;  %v1243_v63 = vshll.u32 %v9271_v1, 16 }
 0x1d6   : > { %v6839_v34 = vpop.f32.mrb[0].mxu0  ;;  %2685 = vmatprep.mubr.bf16.mxu1 %v6729_v20 }
 0x1d7   : > { %9266 = vst [vmem:[#allocation111_spill] sm:$0xff] %v6839_v34  ;;  %v1799_v11 = vpop.f32.mrb[1].mxu0 }
 0x1d8   : > { %v6842_v52 = vpop.f32.mrb[16].mxu1  ;;  %v6844_v47 = vpop.f32.mrb[2].mxu0  ;;  %v1241_v11 = vor.u32 %v1240_v4, %v1236_v33  ;;  %v9280_v4 = vld [vmem:[#allocation78_spill] sm:$0xff] }
 0x1d9   : > { %9267 = vst [vmem:[#allocation112_spill] sm:$0xff] %v6842_v52  ;;  %9268 = vst [vmem:[#allocation113_spill] sm:$0xff] %v6844_v47  ;;  %v6846_v36 = vpop.f32.mrb[17].mxu1  ;;  %v1802_v22 = vpop.f32.mrb[3].mxu0  ;;  %v9274_v47 = vld [vmem:[#allocation79_spill] sm:$0xff] }
 0x1da   : > { %9269 = vst [vmem:[#allocation114_spill] sm:$0xff] %v6846_v36  ;;  %v6853_v61 = vpop.f32.mrb[18].mxu1  ;;  %v1245_v22 = vrot.slane %v1243_v63, 1  ;;  %v1250_v18 = vshll.u32 %v9274_v47, 16  ;;  %v1248_v33 = vshrl.u32 %v9274_v47, 16 }
 0x1db   : > { %9272 = vst [vmem:[#allocation73_spill] sm:$0xff] %v6853_v61  ;;  %v6855_v34 = vpop.f32.mrb[19].mxu1  ;;  %2012 = vmatmul.mubr.bf16.gmra.mrb[108].mxu0 %v9251_v40 }
 0x1dc   : > { %9273 = vst [vmem:[#allocation116_spill] sm:$0xff] %v6855_v34  ;;  %2019 = vmatprep.mubr.bf16.mxu0 %v6849_v17  ;;  %v6871_v34 = vsel %vm874_vm4, %v1241_v11, %v1245_v22  ;;  %v1252_v63 = vrot.slane %v1250_v18, 1 }
 0x1dd   : > { %2686 = vmatmul.mubr.bf16.gmra.mrb[124].mxu1 %v6212_v53  ;;  %9279 = vst [vmem:[#allocation121_spill] sm:$0xff] %v6871_v34  ;;  %v1255_v53 = vshll.u32 %v9280_v4, 16 }
 0x1de   : > { %v6861_v13 = vpop.f32.mrb[4].mxu0  ;;  %2693 = vmatprep.mubr.bf16.mxu1 %v6739_v44 }
 0x1df   : > { %9275 = vst [vmem:[#allocation117_spill] sm:$0xff] %v6861_v13  ;;  %v1807_v24 = vpop.f32.mrb[5].mxu0 }
 0x1e0   : > { %v6864_v1 = vpop.f32.mrb[20].mxu1  ;;  %v6866_v20 = vpop.f32.mrb[6].mxu0  ;;  %v1253_v24 = vor.u32 %v1252_v63, %v1248_v33  ;;  %v9288_v63 = vld [vmem:[#allocation80_spill] sm:$0xff] }
 0x1e1   : > { %9276 = vst [vmem:[#allocation118_spill] sm:$0xff] %v6864_v1  ;;  %9277 = vst [vmem:[#allocation119_spill] sm:$0xff] %v6866_v20  ;;  %v6868_v61 = vpop.f32.mrb[21].mxu1  ;;  %v1810_v52 = vpop.f32.mrb[7].mxu0  ;;  %v9283_v20 = vld [vmem:[#allocation82_spill] sm:$0xff] }
 0x1e2   : > { %9278 = vst [vmem:[#allocation120_spill] sm:$0xff] %v6868_v61  ;;  %v6875_v36 = vpop.f32.mrb[22].mxu1  ;;  %v1257_v52 = vrot.slane %v1255_v53, 1  ;;  %v1262_v11 = vshll.u32 %v9283_v20, 16  ;;  %v1260_v33 = vshrl.u32 %v9283_v20, 16 }
 0x1e3   : > { %9281 = vst [vmem:[#allocation78_spill] sm:$0xff] %v6875_v36  ;;  %v6877_v13 = vpop.f32.mrb[23].mxu1  ;;  %2020 = vmatmul.mubr.bf16.gmra.mrb[112].mxu0 %v9258_v41 }
 0x1e4   : > { %9282 = vst [vmem:[#allocation122_spill] sm:$0xff] %v6877_v13  ;;  %2027 = vmatprep.mubr.bf16.mxu0 %v6871_v34  ;;  %v6893_v13 = vsel %vm874_vm4, %v1253_v24, %v1257_v52  ;;  %v1264_v53 = vrot.slane %v1262_v11, 1 }
 0x1e5   : > { %2694 = vmatmul.mubr.bf16.gmra.mrb[128].mxu1 %v6225_v15  ;;  %9287 = vst [vmem:[#allocation126_spill] sm:$0xff] %v6893_v13  ;;  %v1267_v15 = vshll.u32 %v9288_v63, 16 }
 0x1e6   : > { %v6883_v22 = vpop.f32.mrb[8].mxu0  ;;  %2701 = vmatprep.mubr.bf16.mxu1 %v6749_v42 }
 0x1e7   : > { %9284 = vst [vmem:[#allocation123_spill] sm:$0xff] %v6883_v22  ;;  %v1815_v18 = vpop.f32.mrb[9].mxu0 }
 0x1e8   : > { %v6886_v4 = vpop.f32.mrb[24].mxu1  ;;  %v6888_v44 = vpop.f32.mrb[10].mxu0  ;;  %v1265_v18 = vor.u32 %v1264_v53, %v1260_v33  ;;  %v9293_v33 = vld [vmem:[#allocation44_spill] sm:$0xff] }
 0x1e9   : > { %9285 = vst [vmem:[#allocation124_spill] sm:$0xff] %v6886_v4  ;;  %9286 = vst [vmem:[#allocation125_spill] sm:$0xff] %v6888_v44  ;;  %v6890_v36 = vpop.f32.mrb[25].mxu1  ;;  %v1818_v1 = vpop.f32.mrb[11].mxu0  ;;  %v1390_v53 = vrot.slane %v9293_v33, 1  ;;  %v9300_v33 = vld [vmem:[#allocation48_spill] sm:$0xff] }
 0x1ea   : > { %v6897_v61 = vpop.f32.mrb[26].mxu1  ;;  %v1269_v1 = vrot.slane %v1267_v15, 1  ;;  %v1389_v15 = vrot.slane %v6205_v46, 1 }
 0x1eb   : > { %9289 = vst [vmem:[#allocation80_spill] sm:$0xff] %v6897_v61  ;;  %v6899_v22 = vpop.f32.mrb[27].mxu1  ;;  %2028 = vmatmul.mubr.bf16.gmra.mrb[116].mxu0 %v9265_v23 }
 0x1ec   : > { %2035 = vmatprep.mubr.bf16.mxu0 %v6893_v13  ;;  %v6914_v61 = vsel %vm874_vm4, %v1265_v18, %v1269_v1 }
 0x1ed   : > { %2702 = vmatmul.mubr.bf16.gmra.mrb[132].mxu1 %v6263_v45  ;;  %9292 = vst [vmem:[#allocation129_spill] sm:$0xff] %v6914_v61 }
 0x1ee   : > { %v6904_v44 = vpop.f32.mrb[12].mxu0  ;;  %2709 = vmatprep.mubr.bf16.mxu1 %v6759_v60 }
 0x1ef   : > { %9290 = vst [vmem:[#allocation127_spill] sm:$0xff] %v6904_v44  ;;  %v1823_v24 = vpop.f32.mrb[13].mxu0 }
 0x1f0   : > { %v6907_v52 = vpop.f32.mrb[28].mxu1  ;;  %v6909_v11 = vpop.f32.mrb[14].mxu0 }
 0x1f1   : > { %9291 = vst [vmem:[#allocation128_spill] sm:$0xff] %v6909_v11  ;;  %v6911_v63 = vpop.f32.mrb[29].mxu1  ;;  %v1826_v42 = vpop.f32.mrb[15].mxu0 }
 0x1f2   : > { %v6916_v4 = vpop.f32.mrb[30].mxu1 }
 0x1f3   : > { %v6918_v45 = vpop.f32.mrb[31].mxu1  ;;  %2036 = vmatmul.mubr.bf16.gmra.mrb[120].mxu0 %v9274_v47 }
 0x1f4   : > { %2043 = vmatprep.mubr.bf16.mxu0 %v6914_v61  ;;  %v6935_v61 = vsel %vm1385_vm3, %v1389_v15, %v1390_v53 }
 0x1f5   : > { %2710 = vmatmul.mubr.bf16.gmra.mrb[136].mxu1 %v6275_v8 }
 0x1f6   : > { %v6925_v24 = vpop.f32.mrb[16].mxu0  ;;  %2717 = vmatprep.mubr.bf16.mxu1 %v6773_v43 }
 0x1f7   : > { %9294 = vst [vmem:[#allocation44_spill] sm:$0xff] %v6925_v24  ;;  %v1831_v42 = vpop.f32.mrb[17].mxu0  ;;  %v1393_v24 = vrot.slane %v9300_v33, 1 }
 0x1f8   : > { %v6928_v18 = vpop.f32.mrb[32].mxu1  ;;  %v6930_v1 = vpop.f32.mrb[18].mxu0  ;;  %v1392_v42 = vrot.slane %v6240_v50, 1 }
 0x1f9   : > { %9295 = vst [vmem:[#allocation130_spill] sm:$0xff] %v6928_v18  ;;  %9296 = vst [vmem:[#allocation131_spill] sm:$0xff] %v6930_v1  ;;  %v6932_v11 = vpop.f32.mrb[33].mxu1  ;;  %v1834_v44 = vpop.f32.mrb[19].mxu0  ;;  %v1395_v1 = vrot.slane %v6304_v2, 1 }
 0x1fa   : > { %9297 = vst [vmem:[#allocation132_spill] sm:$0xff] %v6932_v11  ;;  %v6937_v8 = vpop.f32.mrb[34].mxu1  ;;  %v9301_v44 = vld [vmem:[#allocation54_spill] sm:$0xff]  ;;  %v6956_v33 = vsel %vm1385_vm3, %v1392_v42, %v1393_v24  ;;  %v1398_v24 = vrot.slane %v6354_v21, 1  ;;  %v9308_v42 = vld [vmem:[#allocation61_spill] sm:$0xff] }
 0x1fb   : > { %9298 = vst [vmem:[#allocation133_spill] sm:$0xff] %v6937_v8  ;;  %v6939_v46 = vpop.f32.mrb[35].mxu1  ;;  %2044 = vmatmul.mubr.bf16.gmra.mrb[124].mxu0 %v9283_v20  ;;  %v1396_v43 = vrot.slane %v9301_v44, 1 }
 0x1fc   : > { %9299 = vst [vmem:[#allocation134_spill] sm:$0xff] %v6939_v46  ;;  %4890 = vmatprep.mubr.bf16.mxu0 %v6935_v61 }
 0x1fd   : > { %2718 = vmatmul.mubr.bf16.gmra.mrb[140].mxu1 %v9242_v55  ;;  %v5364_v55 = vld [vmem:[#allocation11 + $0x88] sm:$0xff]   ;;  %v6961_v46 = vsel %vm1385_vm3, %v1395_v1, %v1396_v43  ;;  %v1401_v43 = vrot.slane %v6406_v25, 1 }
 0x1fe   : > { %v6948_v15 = vpop.f32.mrb[20].mxu0  ;;  %2725 = vmatprep.mubr.bf16.mxu1 %v6791_v49  ;;  %v9309_v1 = vld [vmem:[#allocation69_spill] sm:$0xff] }
 0x1ff   : > { %9302 = vst [vmem:[#allocation48_spill] sm:$0xff] %v6948_v15  ;;  %v1839_v53 = vpop.f32.mrb[21].mxu0  ;;  %v1402_v49 = vrot.slane %v9309_v1, 1  ;;  %v5366_v1 = vld [vmem:[#allocation11 + $0x98] sm:$0xff]  }
 0x200   : > { %v6951_v60 = vpop.f32.mrb[36].mxu1  ;;  %v6953_v20 = vpop.f32.mrb[22].mxu0  ;;  %v1399_v53 = vrot.slane %v9308_v42, 1 }
 0x201   : > { %9303 = vst [vmem:[#allocation54_spill] sm:$0xff] %v6951_v60  ;;  %9304 = vst [vmem:[#allocation135_spill] sm:$0xff] %v6953_v20  ;;  %v6958_v8 = vpop.f32.mrb[37].mxu1  ;;  %v1842_v18 = vpop.f32.mrb[23].mxu0 }
 0x202   : > { %9305 = vst [vmem:[#allocation136_spill] sm:$0xff] %v6958_v8  ;;  %v6963_v44 = vpop.f32.mrb[38].mxu1  ;;  %v5365_v18 = vld [vmem:[#allocation11 + $0x90] sm:$0xff]   ;;  %v6983_v42 = vsel %vm1385_vm3, %v1398_v24, %v1399_v53  ;;  %v6986_v8 = vsel %vm1385_vm3, %v1401_v43, %v1402_v49  ;;  %v9315_v49 = vld [vmem:[#allocation83_spill] sm:$0xff] }
 0x203   : > { %9306 = vst [vmem:[#allocation137_spill] sm:$0xff] %v6963_v44  ;;  %v6965_v15 = vpop.f32.mrb[39].mxu1  ;;  %4891 = vmatmul.mubr.bf16.vlgmr.msra.gmra.mrb[128].mxu0 %v6956_v33  ;;  %v5368_v53 = vld [vmem:[#allocation11 + $0xa0] sm:$0xff]  }
 0x204   : > { %9307 = vst [vmem:[#allocation138_spill] sm:$0xff] %v6965_v15  ;;  %4955 = vmatpush3.bf16.msra.mxu0 %v6699_v12  ;;  %4894 = vmatprep.mubr.bf16.mxu0 %v6961_v46 }
 0x205   : > { %2726 = vmatmul.mubr.bf16.gmra.mrb[144].mxu1 %v9245_v14  ;;  %4956 = vmatprep.subr.bf16.mxu0 %v5364_v55 }
 0x206   : > { %v6975_v20 = vpop.f32.mrb[24].mxu0  ;;  %2733 = vmatprep.mubr.bf16.mxu1 %v6809_v29 }
 0x207   : > { %9310 = vst [vmem:[#allocation61_spill] sm:$0xff] %v6975_v20  ;;  %v1847_v44 = vpop.f32.mrb[25].mxu0 }
 0x208   : > { %v6978_v12 = vpop.f32.mrb[40].mxu1  ;;  %v6980_v60 = vpop.f32.mrb[26].mxu0  ;;  %4957 = vmatpush3.bf16.msra.mxu0 %v5364_v55  ;;  %v1404_v55 = vrot.slane %v6454_v27, 1  ;;  %v9314_v44 = vld [vmem:[#allocation75_spill] sm:$0xff] }
 0x209   : > { %9311 = vst [vmem:[#allocation69_spill] sm:$0xff] %v6978_v12  ;;  %9312 = vst [vmem:[#allocation139_spill] sm:$0xff] %v6980_v60  ;;  %v2521_v14 = vpop.f32.mrb[41].mxu1  ;;  %v1850_v15 = vpop.f32.mrb[27].mxu0  ;;  %4958 = vmatprep.subr.bf16.mxu0 %v5365_v18  ;;  %v1405_v24 = vrot.slane %v9314_v44, 1 }
 0x20a   : > { %v6988_v11 = vpop.f32.mrb[42].mxu1  ;;  %v1407_v14 = vrot.slane %v6505_v58, 1  ;;  %v1408_v15 = vrot.slane %v9315_v49, 1  ;;  %v5369_v49 = vld [vmem:[#allocation11 + $0xa8] sm:$0xff]  }
 0x20b   : > { %9313 = vst [vmem:[#allocation140_spill] sm:$0xff] %v6988_v11  ;;  %v2524_v20 = vpop.f32.mrb[43].mxu1  ;;  %4895 = vmatmul.mubr.bf16.gmra.mrb[132].mxu0 %v6983_v42  ;;  %v7005_v60 = vsel %vm1385_vm3, %v1404_v55, %v1405_v24  ;;  %v5371_v24 = vld [vmem:[#allocation11 + $0xb0] sm:$0xff]  }
 0x20c   : > { %4959 = vmatpush3.bf16.msra.mxu0 %v5365_v18  ;;  %4898 = vmatprep.mubr.bf16.mxu0 %v6986_v8  ;;  %v7008_v11 = vsel %vm1385_vm3, %v1407_v14, %v1408_v15 }
 0x20d   : > { %2734 = vmatmul.mubr.bf16.gmra.mrb[148].mxu1 %v9248_v26  ;;  %4960 = vmatprep.subr.bf16.mxu0 %v5366_v1 }
 0x20e   : > { %v6997_v43 = vpop.f32.mrb[28].mxu0  ;;  %2741 = vmatprep.mubr.bf16.mxu1 %v6827_v3  ;;  %v9319_v3 = vld [vmem:[#allocation85_spill] sm:$0xff] }
 0x20f   : > { %9316 = vst [vmem:[#allocation75_spill] sm:$0xff] %v6997_v43  ;;  %v1855_v20 = vpop.f32.mrb[29].mxu0  ;;  %v1411_v55 = vrot.slane %v9319_v3, 1 }
 0x210   : > { %v7000_v18 = vpop.f32.mrb[44].mxu1  ;;  %v7002_v29 = vpop.f32.mrb[30].mxu0  ;;  %4961 = vmatpush3.bf16.msra.mxu0 %v5366_v1  ;;  %v1410_v20 = vrot.slane %v6534_v19, 1  ;;  %v1414_v1 = vrot.slane %v6550_v10, 1  ;;  %v5372_v10 = vld [vmem:[#allocation11 + $0xb8] sm:$0xff]  }
 0x211   : > { %9317 = vst [vmem:[#allocation83_spill] sm:$0xff] %v7002_v29  ;;  %v2529_v44 = vpop.f32.mrb[45].mxu1  ;;  %v1858_v26 = vpop.f32.mrb[31].mxu0  ;;  %4962 = vmatprep.subr.bf16.mxu0 %v5368_v53 }
 0x212   : > { %v7010_v12 = vpop.f32.mrb[46].mxu1  ;;  %v1413_v26 = vrot.slane %v6546_v5, 1  ;;  %v7027_v3 = vsel %vm1385_vm3, %v1410_v20, %v1411_v55  ;;  %v1417_v20 = vrot.slane %v6572_v0, 1  ;;  %v5373_v55 = vld [vmem:[#allocation11 + $0x200] sm:$0xff]  }
 0x213   : > { %9318 = vst [vmem:[#allocation141_spill] sm:$0xff] %v7010_v12  ;;  %v2532_v43 = vpop.f32.mrb[47].mxu1  ;;  %4899 = vmatmul.mubr.bf16.gmra.mrb[136].mxu0 %v7005_v60 }
 0x214   : > { %4902 = vmatprep.mubr.bf16.mxu0 %v7008_v11  ;;  %4963 = vmatpush3.bf16.msra.mxu0 %v5368_v53  ;;  %v7030_v29 = vsel %vm1385_vm3, %v1413_v26, %v1414_v1 }
 0x215   : > { %2742 = vmatmul.mubr.bf16.gmra.mrb[152].mxu1 %v9251_v40  ;;  %4964 = vmatprep.subr.bf16.mxu0 %v5369_v49 }
 0x216   : > { %v7019_v14 = vpop.f32.mrb[32].mxu0  ;;  %2749 = vmatprep.mubr.bf16.mxu1 %v6849_v17 }
 0x217   : > { %9320 = vst [vmem:[#allocation85_spill] sm:$0xff] %v7019_v14  ;;  %v1863_v15 = vpop.f32.mrb[33].mxu0 }
 0x218   : > { %v7022_v43 = vpop.f32.mrb[48].mxu1  ;;  %v7024_v44 = vpop.f32.mrb[34].mxu0  ;;  %4965 = vmatpush3.bf16.msra.mxu0 %v5369_v49  ;;  %v1416_v15 = vrot.slane %v6562_v54, 1  ;;  %v1420_v49 = vrot.slane %v6592_v38, 1 }
 0x219   : > { %9321 = vst [vmem:[#allocation142_spill] sm:$0xff] %v7024_v44  ;;  %v2537_v53 = vpop.f32.mrb[49].mxu1  ;;  %v1866_v40 = vpop.f32.mrb[35].mxu0  ;;  %4966 = vmatprep.subr.bf16.mxu0 %v5371_v24 }
 0x21a   : > { %v7032_v12 = vpop.f32.mrb[50].mxu1  ;;  %v1419_v40 = vrot.slane %v6582_v56, 1  ;;  %v7049_v0 = vsel %vm1385_vm3, %v1416_v15, %v1417_v20 }
 0x21b   : > { %v2540_v14 = vpop.f32.mrb[51].mxu1  ;;  %4903 = vmatmul.mubr.bf16.gmra.mrb[140].mxu0 %v7027_v3 }
 0x21c   : > { %4906 = vmatprep.mubr.bf16.mxu0 %v7030_v29  ;;  %4967 = vmatpush3.bf16.msra.mxu0 %v5371_v24  ;;  %v7052_v17 = vsel %vm1385_vm3, %v1419_v40, %v1420_v49 }
 0x21d   : > { %2750 = vmatmul.mubr.bf16.gmra.mrb[156].mxu1 %v9258_v41  ;;  %4968 = vmatprep.subr.bf16.mxu0 %v5372_v10 }
 0x21e   : > { %v7041_v26 = vpop.f32.mrb[36].mxu0  ;;  %2757 = vmatprep.mubr.bf16.mxu1 %v6871_v34  ;;  %v1423_v34 = vrot.slane %v6610_v37, 1 }
 0x21f   : > { %9322 = vst [vmem:[#allocation143_spill] sm:$0xff] %v7041_v26  ;;  %v1871_v1 = vpop.f32.mrb[37].mxu0 }
 0x220   : > { %v7044_v14 = vpop.f32.mrb[52].mxu1  ;;  %v7046_v53 = vpop.f32.mrb[38].mxu0  ;;  %4969 = vmatpush3.bf16.msra.mxu0 %v5372_v10  ;;  %v1422_v1 = vrot.slane %v6602_v7, 1  ;;  %v1386_v10 = vrot.slane %v6519_v62, 1 }
 0x221   : > { %9323 = vst [vmem:[#allocation144_spill] sm:$0xff] %v7046_v53  ;;  %v2545_v24 = vpop.f32.mrb[53].mxu1  ;;  %v1874_v41 = vpop.f32.mrb[39].mxu0  ;;  %5034 = vmatprep.subr.bf16.mxu0 %v5373_v55 }
 0x222   : > { %v7054_v38 = vpop.f32.mrb[54].mxu1  ;;  %v9324_v41 = vld [vmem:[#allocation84_spill] sm:$0xff]  ;;  %v7071_v24 = vsel %vm1385_vm3, %v1422_v1, %v1423_v34 }
 0x223   : > { %v2548_v44 = vpop.f32.mrb[55].mxu1  ;;  %4907 = vmatmul.mubr.bf16.gmra.mrb[144].mxu0 %v7049_v0  ;;  %v1387_v15 = vrot.slane %v9324_v41, 1 }
 0x224   : > { %4910 = vmatprep.mubr.bf16.mxu0 %v7052_v17 }
 0x225   : > { %2758 = vmatmul.mubr.bf16.gmra.mrb[160].mxu1 %v9265_v23  ;;  %v1388_v23 = vsel %vm1385_vm3, %v1386_v10, %v1387_v15  ;;  %v5374_v10 = vld [vmem:[#allocation11 + $0x208] sm:$0xff]  }
 0x226   : > { %v7063_v20 = vpop.f32.mrb[40].mxu0  ;;  %2765 = vmatprep.mubr.bf16.mxu1 %v6893_v13 }
 0x227   : > { %9325 = vst [vmem:[#allocation84_spill] sm:$0xff] %v7063_v20  ;;  %v1879_v40 = vpop.f32.mrb[41].mxu0 }
 0x228   : > { %v7066_v44 = vpop.f32.mrb[56].mxu1  ;;  %v7068_v49 = vpop.f32.mrb[42].mxu0 }
 0x229   : > { %9326 = vst [vmem:[#allocation145_spill] sm:$0xff] %v7068_v49  ;;  %v2553_v53 = vpop.f32.mrb[57].mxu1  ;;  %v1882_v37 = vpop.f32.mrb[43].mxu0 }
 0x22a   : > { %v7074_v26 = vpop.f32.mrb[58].mxu1 }
 0x22b   : > { %v2556_v62 = vpop.f32.mrb[59].mxu1  ;;  %4911 = vmatmul.mubr.bf16.gmra.mrb[148].mxu0 %v7071_v24 }
 0x22c   : > { %4970 = vmatprep.mubr.bf16.mxu0 %v1388_v23  ;;  %v9329_v62 = vld [vmem:[#allocation62_spill] sm:$0xff] }
 0x22d   : > { %2766 = vmatmul.mubr.bf16.gmra.mrb[164].mxu1 %v9274_v47 }
 0x22e   : > { %v7078_v41 = vpop.f32.mrb[44].mxu0  ;;  %3288 = vmatprep.mubr.bf16.mxu1 %v6279_v32  ;;  %v5375_v32 = vld [vmem:[#allocation11 + $0x210] sm:$0xff]  }
 0x22f   : > { %9327 = vst [vmem:[#allocation146_spill] sm:$0xff] %v7078_v41  ;;  %v1887_v40 = vpop.f32.mrb[45].mxu0  ;;  %v9344_v41 = vld [vmem:[#allocation30_spill] sm:$0xff] }
 0x230   : > { %v7081_v13 = vpop.f32.mrb[60].mxu1  ;;  %v7083_v34 = vpop.f32.mrb[46].mxu0 }
 0x231   : > { %9328 = vst [vmem:[#allocation147_spill] sm:$0xff] %v7083_v34  ;;  %v2561_v53 = vpop.f32.mrb[61].mxu1  ;;  %v1890_v1 = vpop.f32.mrb[47].mxu0 }
 0x232   : > { %v7085_v15 = vpop.f32.mrb[62].mxu1 }
 0x233   : > { %v2564_v37 = vpop.f32.mrb[63].mxu1  ;;  %4971 = vmatmul.mubr.bf16.vlgmr.msra.gmra.mrb[152].mxu0 %v6935_v61 }
 0x234   : > { %5035 = vmatpush3.bf16.msra.mxu0 %v5373_v55  ;;  %4974 = vmatprep.mubr.bf16.mxu0 %v6956_v33 }
 0x235   : > { %3289 = vmatmul.mubr.bf16.vlgmr.msra.gmra.mrb[168].mxu1 %v6240_v50  ;;  %5036 = vmatprep.subr.bf16.mxu0 %v5374_v10  ;;  %v5376_v50 = vld [vmem:[#allocation11 + $0x218] sm:$0xff]  }
 0x236   : > { %v1893_v23 = vpop.f32.mrb[48].mxu0  ;;  %3296 = vmatprep.mubr.bf16.mxu1 %v9329_v62 }
 0x237   : > { %v7092_v40 = vadd.f32 %v6770_v48, %v1893_v23  ;;  %v1895_v53 = vpop.f32.mrb[49].mxu0  ;;  %v5377_v48 = vld [vmem:[#allocation11 + $0x220] sm:$0xff]  }
 0x238   : > { %v7094_v1 = vpop.f32.mrb[64].mxu1  ;;  %v1896_v47 = vpop.f32.mrb[50].mxu0  ;;  %5037 = vmatpush3.bf16.msra.mxu0 %v5374_v10 }
 0x239   : > { %v7097_v61 = vadd.f32 %v6779_v16, %v1896_v47  ;;  %v2569_v55 = vpop.f32.mrb[65].mxu1  ;;  %v1898_v37 = vpop.f32.mrb[51].mxu0  ;;  %5038 = vmatprep.subr.bf16.mxu0 %v5375_v32 }
 0x23a   : > { %v7099_v49 = vpop.f32.mrb[66].mxu1 }
 0x23b   : > { %9330 = vst [vmem:[#allocation62_spill] sm:$0xff] %v7099_v49  ;;  %v2572_v34 = vpop.f32.mrb[67].mxu1  ;;  %4975 = vmatmul.mubr.bf16.gmra.mrb[156].mxu0 %v6961_v46 }
 0x23c   : > { %4978 = vmatprep.mubr.bf16.mxu0 %v6983_v42  ;;  %5039 = vmatpush3.bf16.msra.mxu0 %v5375_v32 }
 0x23d   : > { %3297 = vmatmul.mubr.bf16.gmra.mrb[172].mxu1 %v6304_v2  ;;  %5040 = vmatprep.subr.bf16.mxu0 %v5376_v50  ;;  %v5378_v2 = vld [vmem:[#allocation11 + $0x228] sm:$0xff]  }
 0x23e   : > { %v1901_v10 = vpop.f32.mrb[52].mxu0  ;;  %3304 = vmatprep.mubr.bf16.mxu1 %v6394_v30  ;;  %v5379_v30 = vld [vmem:[#allocation11 + $0x230] sm:$0xff]  }
 0x23f   : > { %v7106_v47 = vadd.f32 %v6768_v35, %v1901_v10  ;;  %v1903_v16 = vpop.f32.mrb[53].mxu0 }
 0x240   : > { %v7108_v23 = vpop.f32.mrb[68].mxu1  ;;  %v1904_v62 = vpop.f32.mrb[54].mxu0  ;;  %5041 = vmatpush3.bf16.msra.mxu0 %v5376_v50 }
 0x241   : > { %v7111_v34 = vadd.f32 %v6777_v39, %v1904_v62  ;;  %v2577_v53 = vpop.f32.mrb[69].mxu1  ;;  %v1906_v32 = vpop.f32.mrb[55].mxu0  ;;  %5042 = vmatprep.subr.bf16.mxu0 %v5377_v48 }
 0x242   : > { %v7113_v55 = vpop.f32.mrb[70].mxu1 }
 0x243   : > { %v2580_v37 = vpop.f32.mrb[71].mxu1  ;;  %4979 = vmatmul.mubr.bf16.gmra.mrb[160].mxu0 %v6986_v8 }
 0x244   : > { %4982 = vmatprep.mubr.bf16.mxu0 %v7005_v60  ;;  %5043 = vmatpush3.bf16.msra.mxu0 %v5377_v48 }
 0x245   : > { %3305 = vmatmul.mubr.bf16.gmra.mrb[176].mxu1 %v6354_v21  ;;  %5044 = vmatprep.subr.bf16.mxu0 %v5378_v2  ;;  %v5380_v21 = vld [vmem:[#allocation11 + $0x238] sm:$0xff]  }
 0x246   : > { %v1909_v35 = vpop.f32.mrb[56].mxu0  ;;  %3312 = vmatprep.mubr.bf16.mxu1 %v6447_v51 }
 0x247   : > { %v7120_v39 = vadd.f32 %v6788_v59, %v1909_v35  ;;  %v1911_v50 = vpop.f32.mrb[57].mxu0 }
 0x248   : > { %v7122_v10 = vpop.f32.mrb[72].mxu1  ;;  %v1912_v16 = vpop.f32.mrb[58].mxu0  ;;  %5045 = vmatpush3.bf16.msra.mxu0 %v5378_v2 }
 0x249   : > { %9331 = vst [vmem:[#allocation148_spill] sm:$0xff] %v7122_v10  ;;  %v7125_v62 = vadd.f32 %v6797_v6, %v1912_v16  ;;  %v2585_v53 = vpop.f32.mrb[73].mxu1  ;;  %v1914_v48 = vpop.f32.mrb[59].mxu0  ;;  %5046 = vmatprep.subr.bf16.mxu0 %v5379_v30 }
 0x24a   : > { %v7127_v32 = vpop.f32.mrb[74].mxu1 }
 0x24b   : > { %9332 = vst [vmem:[#allocation149_spill] sm:$0xff] %v7127_v32  ;;  %v2588_v37 = vpop.f32.mrb[75].mxu1  ;;  %4983 = vmatmul.mubr.bf16.gmra.mrb[164].mxu0 %v7008_v11 }
 0x24c   : > { %4986 = vmatprep.mubr.bf16.mxu0 %v7027_v3  ;;  %5047 = vmatpush3.bf16.msra.mxu0 %v5379_v30 }
 0x24d   : > { %3313 = vmatmul.mubr.bf16.gmra.mrb[180].mxu1 %v6406_v25  ;;  %5048 = vmatprep.subr.bf16.mxu0 %v5380_v21 }
 0x24e   : > { %v1917_v51 = vpop.f32.mrb[60].mxu0  ;;  %3320 = vmatprep.mubr.bf16.mxu1 %v6498_v28 }
 0x24f   : > { %v7134_v59 = vadd.f32 %v6786_v57, %v1917_v51  ;;  %v1919_v6 = vpop.f32.mrb[61].mxu0  ;;  %v9335_v57 = vld [vmem:[#allocation104_spill] sm:$0xff]  ;;  %v9337_v51 = vld [vmem:[#allocation106_spill] sm:$0xff] }
 0x250   : > { %v7136_v2 = vpop.f32.mrb[76].mxu1  ;;  %v1920_v35 = vpop.f32.mrb[62].mxu0  ;;  %5049 = vmatpush3.bf16.msra.mxu0 %v5380_v21 }
 0x251   : > { %9333 = vst [vmem:[#allocation150_spill] sm:$0xff] %v7136_v2  ;;  %v7139_v50 = vadd.f32 %v6795_v9, %v1920_v35  ;;  %v2593_v16 = vpop.f32.mrb[77].mxu1  ;;  %v1922_v53 = vpop.f32.mrb[63].mxu0 }
 0x252   : > { %v7141_v30 = vpop.f32.mrb[78].mxu1 }
 0x253   : > { %9334 = vst [vmem:[#allocation151_spill] sm:$0xff] %v7141_v30  ;;  %v2596_v25 = vpop.f32.mrb[79].mxu1  ;;  %4987 = vmatmul.mubr.bf16.gmra.mrb[168].mxu0 %v7030_v29 }
 0x254   : > { %4990 = vmatprep.mubr.bf16.mxu0 %v7049_v0 }
 0x255   : > { %3321 = vmatmul.mubr.bf16.gmra.mrb[184].mxu1 %v6454_v27 }
 0x256   : > { %v1925_v28 = vpop.f32.mrb[64].mxu0  ;;  %3328 = vmatprep.mubr.bf16.mxu1 %v6539_v31  ;;  %v9339_v31 = vld [vmem:[#allocation87_spill] sm:$0xff] }
 0x257   : > { %v7148_v48 = vadd.f32 %v9335_v57, %v1925_v28  ;;  %v1927_v21 = vpop.f32.mrb[65].mxu0  ;;  %v9340_v28 = vld [vmem:[#allocation64_spill] sm:$0xff] }
 0x258   : > { %v7150_v9 = vpop.f32.mrb[80].mxu1  ;;  %v1928_v37 = vpop.f32.mrb[66].mxu0 }
 0x259   : > { %9336 = vst [vmem:[#allocation104_spill] sm:$0xff] %v7150_v9  ;;  %v7153_v6 = vadd.f32 %v9337_v51, %v1928_v37  ;;  %v2601_v35 = vpop.f32.mrb[81].mxu1  ;;  %v1930_v16 = vpop.f32.mrb[67].mxu0 }
 0x25a   : > { %v7155_v53 = vpop.f32.mrb[82].mxu1  ;;  %v9342_v35 = vld [vmem:[#allocation66_spill] sm:$0xff] }
 0x25b   : > { %9338 = vst [vmem:[#allocation106_spill] sm:$0xff] %v7155_v53  ;;  %v2604_v25 = vpop.f32.mrb[83].mxu1  ;;  %4991 = vmatmul.mubr.bf16.gmra.mrb[172].mxu0 %v7052_v17 }
 0x25c   : > { %4994 = vmatprep.mubr.bf16.mxu0 %v7071_v24 }
 0x25d   : > { %3329 = vmatmul.mubr.bf16.gmra.mrb[188].mxu1 %v6505_v58  ;;  %v9345_v58 = vld [vmem:[#allocation33_spill] sm:$0xff] }
 0x25e   : > { %v1933_v27 = vpop.f32.mrb[68].mxu0  ;;  %3336 = vmatprep.mubr.bf16.mxu1 %v9339_v31  ;;  %v9346_v31 = vld [vmem:[#allocation88_spill] sm:$0xff] }
 0x25f   : > { %v7162_v57 = vadd.f32 %v9340_v28, %v1933_v27  ;;  %v1935_v21 = vpop.f32.mrb[69].mxu0  ;;  %v9347_v28 = vld [vmem:[#allocation108_spill] sm:$0xff] }
 0x260   : > { %v7164_v37 = vpop.f32.mrb[84].mxu1  ;;  %v1936_v51 = vpop.f32.mrb[70].mxu0 }
 0x261   : > { %9341 = vst [vmem:[#allocation87_spill] sm:$0xff] %v7164_v37  ;;  %v7167_v16 = vadd.f32 %v9342_v35, %v1936_v51  ;;  %v2609_v25 = vpop.f32.mrb[85].mxu1  ;;  %v1938_v53 = vpop.f32.mrb[71].mxu0 }
 0x262   : > { %v7169_v9 = vpop.f32.mrb[86].mxu1  ;;  %v9349_v25 = vld [vmem:[#allocation110_spill] sm:$0xff] }
 0x263   : > { %9343 = vst [vmem:[#allocation64_spill] sm:$0xff] %v7169_v9  ;;  %v2612_v20 = vpop.f32.mrb[87].mxu1  ;;  %4995 = vmatmul.mubr.bf16.gmra.mrb[176].mxu0 %v9344_v41 }
 0x264   : > { %4998 = vmatprep.mubr.bf16.mxu0 %v9345_v58 }
 0x265   : > { %3337 = vmatmul.mubr.bf16.gmra.mrb[192].mxu1 %v6534_v19 }
 0x266   : > { %v1941_v27 = vpop.f32.mrb[72].mxu0  ;;  %3344 = vmatprep.mubr.bf16.mxu1 %v9346_v31  ;;  %v9351_v31 = vld [vmem:[#allocation34_spill] sm:$0xff] }
 0x267   : > { %v7176_v21 = vadd.f32 %v9347_v28, %v1941_v27  ;;  %v1943_v37 = vpop.f32.mrb[73].mxu0  ;;  %v9352_v27 = vld [vmem:[#allocation37_spill] sm:$0xff] }
 0x268   : > { %v2615_v51 = vpop.f32.mrb[88].mxu1  ;;  %v1944_v35 = vpop.f32.mrb[74].mxu0  ;;  %v9353_v28 = vld [vmem:[#allocation89_spill] sm:$0xff] }
 0x269   : > { %v7179_v53 = vadd.f32 %v2615_v51, %v7092_v40  ;;  %v7182_v20 = vadd.f32 %v9349_v25, %v1944_v35  ;;  %v2617_v9 = vpop.f32.mrb[89].mxu1  ;;  %v1946_v32 = vpop.f32.mrb[75].mxu0  ;;  %v9354_v40 = vld [vmem:[#allocation107_spill] sm:$0xff] }
 0x26a   : > { %v2618_v30 = vpop.f32.mrb[90].mxu1 }
 0x26b   : > { %9348 = vst [vmem:[#allocation66_spill] sm:$0xff] %v7179_v53  ;;  %v7185_v19 = vadd.f32 %v2618_v30, %v7097_v61  ;;  %v2620_v10 = vpop.f32.mrb[91].mxu1  ;;  %4999 = vmatmul.mubr.bf16.gmra.mrb[180].mxu0 %v9351_v31  ;;  %v9356_v61 = vld [vmem:[#allocation71_spill] sm:$0xff] }
 0x26c   : > { %5002 = vmatprep.mubr.bf16.mxu0 %v9352_v27 }
 0x26d   : > { %9350 = vst [vmem:[#allocation30_spill] sm:$0xff] %v7185_v19  ;;  %3345 = vmatmul.mubr.bf16.gmra.mrb[196].mxu1 %v6546_v5 }
 0x26e   : > { %v1949_v37 = vpop.f32.mrb[76].mxu0  ;;  %3352 = vmatprep.mubr.bf16.mxu1 %v9353_v28  ;;  %v9358_v28 = vld [vmem:[#allocation38_spill] sm:$0xff] }
 0x26f   : > { %v7192_v51 = vadd.f32 %v9354_v40, %v1949_v37  ;;  %v1951_v35 = vpop.f32.mrb[77].mxu0  ;;  %v9359_v37 = vld [vmem:[#allocation42_spill] sm:$0xff] }
 0x270   : > { %v2623_v9 = vpop.f32.mrb[92].mxu1  ;;  %v1952_v32 = vpop.f32.mrb[78].mxu0  ;;  %v9360_v35 = vld [vmem:[#allocation90_spill] sm:$0xff] }
 0x271   : > { %v7195_v25 = vadd.f32 %v2623_v9, %v7106_v47  ;;  %v7198_v10 = vadd.f32 %v9356_v61, %v1952_v32  ;;  %v2625_v30 = vpop.f32.mrb[93].mxu1  ;;  %v1954_v19 = vpop.f32.mrb[79].mxu0  ;;  %v9361_v47 = vld [vmem:[#allocation114_spill] sm:$0xff] }
 0x272   : > { %v2626_v53 = vpop.f32.mrb[94].mxu1 }
 0x273   : > { %9355 = vst [vmem:[#allocation33_spill] sm:$0xff] %v7195_v25  ;;  %v7201_v5 = vadd.f32 %v2626_v53, %v7111_v34  ;;  %v2628_v2 = vpop.f32.mrb[95].mxu1  ;;  %5003 = vmatmul.mubr.bf16.gmra.mrb[184].mxu0 %v9358_v28  ;;  %v9363_v34 = vld [vmem:[#allocation116_spill] sm:$0xff] }
 0x274   : > { %5006 = vmatprep.mubr.bf16.mxu0 %v9359_v37 }
 0x275   : > { %9357 = vst [vmem:[#allocation88_spill] sm:$0xff] %v7201_v5  ;;  %3353 = vmatmul.mubr.bf16.gmra.mrb[200].mxu1 %v6562_v54 }
 0x276   : > { %v1957_v40 = vpop.f32.mrb[80].mxu0  ;;  %3360 = vmatprep.mubr.bf16.mxu1 %v9360_v35  ;;  %v9365_v35 = vld [vmem:[#allocation43_spill] sm:$0xff] }
 0x277   : > { %v7208_v9 = vadd.f32 %v9361_v47, %v1957_v40  ;;  %v1959_v32 = vpop.f32.mrb[81].mxu0  ;;  %v9366_v40 = vld [vmem:[#allocation45_spill] sm:$0xff] }
 0x278   : > { %v2631_v61 = vpop.f32.mrb[96].mxu1  ;;  %v1960_v19 = vpop.f32.mrb[82].mxu0  ;;  %v9367_v32 = vld [vmem:[#allocation91_spill] sm:$0xff] }
 0x279   : > { %v7211_v30 = vadd.f32 %v2631_v61, %v7120_v39  ;;  %v7214_v2 = vadd.f32 %v9363_v34, %v1960_v19  ;;  %v2633_v53 = vpop.f32.mrb[97].mxu1  ;;  %v1962_v5 = vpop.f32.mrb[83].mxu0  ;;  %v9368_v39 = vld [vmem:[#allocation112_spill] sm:$0xff] }
 0x27a   : > { %v2634_v25 = vpop.f32.mrb[98].mxu1 }
 0x27b   : > { %9362 = vst [vmem:[#allocation108_spill] sm:$0xff] %v7211_v30  ;;  %v7217_v54 = vadd.f32 %v2634_v25, %v7125_v62  ;;  %v2636_v49 = vpop.f32.mrb[99].mxu1  ;;  %5007 = vmatmul.mubr.bf16.gmra.mrb[188].mxu0 %v9365_v35  ;;  %v9370_v62 = vld [vmem:[#allocation73_spill] sm:$0xff] }
 0x27c   : > { %5010 = vmatprep.mubr.bf16.mxu0 %v9366_v40 }
 0x27d   : > { %9364 = vst [vmem:[#allocation110_spill] sm:$0xff] %v7217_v54  ;;  %3361 = vmatmul.mubr.bf16.gmra.mrb[204].mxu1 %v6582_v56 }
 0x27e   : > { %v1965_v47 = vpop.f32.mrb[84].mxu0  ;;  %3368 = vmatprep.mubr.bf16.mxu1 %v9367_v32  ;;  %v9372_v32 = vld [vmem:[#allocation49_spill] sm:$0xff] }
 0x27f   : > { %v7224_v61 = vadd.f32 %v9368_v39, %v1965_v47  ;;  %v1967_v19 = vpop.f32.mrb[85].mxu0  ;;  %v9373_v47 = vld [vmem:[#allocation50_spill] sm:$0xff] }
 0x280   : > { %v2639_v34 = vpop.f32.mrb[100].mxu1  ;;  %v1968_v5 = vpop.f32.mrb[86].mxu0  ;;  %v9374_v19 = vld [vmem:[#allocation92_spill] sm:$0xff] }
 0x281   : > { %v7227_v53 = vadd.f32 %v2639_v34, %v7134_v59  ;;  %v7230_v49 = vadd.f32 %v9370_v62, %v1968_v5  ;;  %v2641_v25 = vpop.f32.mrb[101].mxu1  ;;  %v1970_v54 = vpop.f32.mrb[87].mxu0  ;;  %v9375_v59 = vld [vmem:[#allocation120_spill] sm:$0xff] }
 0x282   : > { %v2642_v30 = vpop.f32.mrb[102].mxu1 }
 0x283   : > { %9369 = vst [vmem:[#allocation34_spill] sm:$0xff] %v7227_v53  ;;  %v7233_v56 = vadd.f32 %v2642_v30, %v7139_v50  ;;  %v2644_v40 = vpop.f32.mrb[103].mxu1  ;;  %5011 = vmatmul.mubr.bf16.gmra.mrb[192].mxu0 %v9372_v32  ;;  %v9377_v50 = vld [vmem:[#allocation122_spill] sm:$0xff]  ;;  %v9382_v32 = vld [vmem:[#allocation93_spill] sm:$0xff] }
 0x284   : > { %5014 = vmatprep.mubr.bf16.mxu0 %v9373_v47 }
 0x285   : > { %9371 = vst [vmem:[#allocation37_spill] sm:$0xff] %v7233_v56  ;;  %3369 = vmatmul.mubr.bf16.gmra.mrb[208].mxu1 %v6602_v7 }
 0x286   : > { %v1973_v39 = vpop.f32.mrb[88].mxu0  ;;  %3376 = vmatprep.mubr.bf16.mxu1 %v9374_v19  ;;  %v9379_v19 = vld [vmem:[#allocation53_spill] sm:$0xff] }
 0x287   : > { %v7240_v34 = vadd.f32 %v9375_v59, %v1973_v39  ;;  %v1975_v5 = vpop.f32.mrb[89].mxu0  ;;  %v9380_v39 = vld [vmem:[#allocation56_spill] sm:$0xff]  ;;  %v9381_v59 = vld [vmem:[#allocation29_spill] sm:$0xff] }
 0x288   : > { %v2647_v62 = vpop.f32.mrb[104].mxu1  ;;  %v1976_v54 = vpop.f32.mrb[90].mxu0 }
 0x289   : > { %v7243_v25 = vadd.f32 %v2647_v62, %v7148_v48  ;;  %v7246_v30 = vadd.f32 %v9377_v50, %v1976_v54  ;;  %v2649_v40 = vpop.f32.mrb[105].mxu1  ;;  %v1978_v56 = vpop.f32.mrb[91].mxu0  ;;  %v9383_v48 = vld [vmem:[#allocation118_spill] sm:$0xff] }
 0x28a   : > { %v2650_v53 = vpop.f32.mrb[106].mxu1 }
 0x28b   : > { %9376 = vst [vmem:[#allocation89_spill] sm:$0xff] %v7243_v25  ;;  %v7249_v7 = vadd.f32 %v2650_v53, %v7153_v6  ;;  %v2652_v47 = vpop.f32.mrb[107].mxu1  ;;  %5015 = vmatmul.mubr.bf16.gmra.mrb[196].mxu0 %v9379_v19  ;;  %v9385_v6 = vld [vmem:[#allocation78_spill] sm:$0xff] }
 0x28c   : > { %5018 = vmatprep.mubr.bf16.mxu0 %v9380_v39  ;;  %v9390_v19 = vld [vmem:[#allocation94_spill] sm:$0xff] }
 0x28d   : > { %9378 = vst [vmem:[#allocation107_spill] sm:$0xff] %v7249_v7  ;;  %3377 = vmatmul.mubr.bf16.gmra.mrb[212].mxu1 %v9381_v59 }
 0x28e   : > { %v1981_v5 = vpop.f32.mrb[92].mxu0  ;;  %3384 = vmatprep.mubr.bf16.mxu1 %v9382_v32  ;;  %v9387_v32 = vld [vmem:[#allocation59_spill] sm:$0xff] }
 0x28f   : > { %v7256_v62 = vadd.f32 %v9383_v48, %v1981_v5  ;;  %v1983_v54 = vpop.f32.mrb[93].mxu0  ;;  %v9388_v5 = vld [vmem:[#allocation63_spill] sm:$0xff] }
 0x290   : > { %v2655_v50 = vpop.f32.mrb[108].mxu1  ;;  %v1984_v56 = vpop.f32.mrb[94].mxu0  ;;  %v9389_v48 = vld [vmem:[#allocation31_spill] sm:$0xff] }
 0x291   : > { %v7259_v40 = vadd.f32 %v2655_v50, %v7162_v57  ;;  %v7262_v53 = vadd.f32 %v9385_v6, %v1984_v56  ;;  %v2657_v47 = vpop.f32.mrb[109].mxu1  ;;  %v1986_v7 = vpop.f32.mrb[95].mxu0 }
 0x292   : > { %v2658_v25 = vpop.f32.mrb[110].mxu1 }
 0x293   : > { %9384 = vst [vmem:[#allocation71_spill] sm:$0xff] %v7259_v40  ;;  %v7265_v59 = vadd.f32 %v2658_v25, %v7167_v16  ;;  %v2660_v39 = vpop.f32.mrb[111].mxu1  ;;  %5019 = vmatmul.mubr.bf16.gmra.mrb[200].mxu0 %v9387_v32  ;;  %v9396_v40 = vld [vmem:[#allocation95_spill] sm:$0xff] }
 0x294   : > { %5022 = vmatprep.mubr.bf16.mxu0 %v9388_v5 }
 0x295   : > { %9386 = vst [vmem:[#allocation38_spill] sm:$0xff] %v7265_v59  ;;  %3385 = vmatmul.mubr.bf16.gmra.mrb[216].mxu1 %v9389_v48 }
 0x296   : > { %v1989_v54 = vpop.f32.mrb[96].mxu0  ;;  %3392 = vmatprep.mubr.bf16.mxu1 %v9390_v19  ;;  %v9393_v19 = vld [vmem:[#allocation68_spill] sm:$0xff] }
 0x297   : > { %v7272_v57 = vadd.f32 %v6890_v36, %v1989_v54  ;;  %v1991_v50 = vpop.f32.mrb[97].mxu0  ;;  %v9394_v36 = vld [vmem:[#allocation70_spill] sm:$0xff]  ;;  %v9395_v54 = vld [vmem:[#allocation32_spill] sm:$0xff] }
 0x298   : > { %v2663_v56 = vpop.f32.mrb[112].mxu1  ;;  %v1992_v7 = vpop.f32.mrb[98].mxu0 }
 0x299   : > { %v7275_v6 = vadd.f32 %v2663_v56, %v7176_v21  ;;  %v7278_v16 = vadd.f32 %v6899_v22, %v1992_v7  ;;  %v2665_v25 = vpop.f32.mrb[113].mxu1  ;;  %v1994_v39 = vpop.f32.mrb[99].mxu0  ;;  %v9397_v21 = vld [vmem:[#allocation124_spill] sm:$0xff] }
 0x29a   : > { %v2666_v47 = vpop.f32.mrb[114].mxu1 }
 0x29b   : > { %9391 = vst [vmem:[#allocation42_spill] sm:$0xff] %v7275_v6  ;;  %v7281_v48 = vadd.f32 %v2666_v47, %v7182_v20  ;;  %v2668_v59 = vpop.f32.mrb[115].mxu1  ;;  %5023 = vmatmul.mubr.bf16.gmra.mrb[204].mxu0 %v9393_v19  ;;  %v9398_v20 = vld [vmem:[#allocation80_spill] sm:$0xff] }
 0x29c   : > { %5026 = vmatprep.mubr.bf16.mxu0 %v9394_v36  ;;  %v9403_v19 = vld [vmem:[#allocation96_spill] sm:$0xff] }
 0x29d   : > { %9392 = vst [vmem:[#allocation90_spill] sm:$0xff] %v7281_v48  ;;  %3393 = vmatmul.mubr.bf16.gmra.mrb[220].mxu1 %v9395_v54 }
 0x29e   : > { %v1997_v50 = vpop.f32.mrb[100].mxu0  ;;  %3400 = vmatprep.mubr.bf16.mxu1 %v9396_v40  ;;  %v9400_v40 = vld [vmem:[#allocation76_spill] sm:$0xff] }
 0x29f   : > { %v7288_v56 = vadd.f32 %v9397_v21, %v1997_v50  ;;  %v1999_v22 = vpop.f32.mrb[101].mxu0  ;;  %v9401_v50 = vld [vmem:[#allocation77_spill] sm:$0xff]  ;;  %v9402_v21 = vld [vmem:[#allocation35_spill] sm:$0xff] }
 0x2a0   : > { %v2671_v7 = vpop.f32.mrb[116].mxu1  ;;  %v2000_v25 = vpop.f32.mrb[102].mxu0 }
 0x2a1   : > { %v7291_v39 = vadd.f32 %v2671_v7, %v7192_v51  ;;  %v7294_v59 = vadd.f32 %v9398_v20, %v2000_v25  ;;  %v2673_v47 = vpop.f32.mrb[117].mxu1  ;;  %v2002_v48 = vpop.f32.mrb[103].mxu0 }
 0x2a2   : > { %v2674_v6 = vpop.f32.mrb[118].mxu1 }
 0x2a3   : > { %v7297_v54 = vadd.f32 %v2674_v6, %v7198_v10  ;;  %v2676_v36 = vpop.f32.mrb[119].mxu1  ;;  %5027 = vmatmul.mubr.bf16.gmra.mrb[208].mxu0 %v9400_v40 }
 0x2a4   : > { %5030 = vmatprep.mubr.bf16.mxu0 %v9401_v50 }
 0x2a5   : > { %9399 = vst [vmem:[#allocation114_spill] sm:$0xff] %v7297_v54  ;;  %3401 = vmatmul.mubr.bf16.gmra.mrb[224].mxu1 %v9402_v21 }
 0x2a6   : > { %v2005_v22 = vpop.f32.mrb[104].mxu0  ;;  %3408 = vmatprep.mubr.bf16.mxu1 %v9403_v19  ;;  %v9404_v19 = vld [vmem:[#allocation81_spill] sm:$0xff] }
 0x2a7   : > { %v7304_v51 = vadd.f32 %v6911_v63, %v2005_v22  ;;  %v2007_v7 = vpop.f32.mrb[105].mxu0  ;;  %v9405_v63 = vld [vmem:[#allocation36_spill] sm:$0xff] }
 0x2a8   : > { %v2679_v25 = vpop.f32.mrb[120].mxu1  ;;  %v2008_v48 = vpop.f32.mrb[106].mxu0  ;;  %v9406_v7 = vld [vmem:[#allocation97_spill] sm:$0xff] }
 0x2a9   : > { %v7307_v20 = vadd.f32 %v2679_v25, %v7208_v9  ;;  %v7310_v10 = vadd.f32 %v6918_v45, %v2008_v48  ;;  %v2681_v6 = vpop.f32.mrb[121].mxu1  ;;  %v2010_v36 = vpop.f32.mrb[107].mxu0 }
 0x2aa   : > { %v2682_v47 = vpop.f32.mrb[122].mxu1 }
 0x2ab   : > { %v7313_v21 = vadd.f32 %v2682_v47, %v7214_v2  ;;  %v2684_v54 = vpop.f32.mrb[123].mxu1  ;;  %5031 = vmatmul.mubr.bf16.gmra.mrb[212].mxu0 %v9404_v19 }
 0x2ac   : > { %5050 = vmatprep.mubr.bf16.mxu0 %v6956_v33 }
 0x2ad   : > { %3409 = vmatmul.mubr.bf16.gmra.mrb[228].mxu1 %v9405_v63 }
 0x2ae   : > { %v2013_v22 = vpop.f32.mrb[108].mxu0  ;;  %3416 = vmatprep.mubr.bf16.mxu1 %v9406_v7  ;;  %v9408_v7 = vld [vmem:[#allocation98_spill] sm:$0xff] }
 0x2af   : > { %v7320_v9 = vadd.f32 %v6907_v52, %v2013_v22  ;;  %v2015_v45 = vpop.f32.mrb[109].mxu0  ;;  %v9407_v52 = vld [vmem:[#allocation39_spill] sm:$0xff] }
 0x2b0   : > { %v2687_v25 = vpop.f32.mrb[124].mxu1  ;;  %v2016_v48 = vpop.f32.mrb[110].mxu0 }
 0x2b1   : > { %v7323_v6 = vadd.f32 %v2687_v25, %v7224_v61  ;;  %v7326_v2 = vadd.f32 %v6916_v4, %v2016_v48  ;;  %v2689_v54 = vpop.f32.mrb[125].mxu1  ;;  %v2018_v36 = vpop.f32.mrb[111].mxu0  ;;  %v9409_v61 = vld [vmem:[#allocation132_spill] sm:$0xff] }
 0x2b2   : > { %v2690_v33 = vpop.f32.mrb[126].mxu1 }
 0x2b3   : > { %v7329_v47 = vadd.f32 %v2690_v33, %v7230_v49  ;;  %v2692_v63 = vpop.f32.mrb[127].mxu1  ;;  %5051 = vmatmul.mubr.bf16.vlgmr.msra.gmra.mrb[216].mxu0 %v6961_v46  ;;  %v9410_v49 = vld [vmem:[#allocation134_spill] sm:$0xff] }
 0x2b4   : > { %5054 = vmatprep.mubr.bf16.mxu0 %v6983_v42 }
 0x2b5   : > { %3417 = vmatmul.mubr.bf16.gmra.mrb[232].mxu1 %v9407_v52 }
 0x2b6   : > { %v2021_v22 = vpop.f32.mrb[112].mxu0  ;;  %3424 = vmatprep.mubr.bf16.mxu1 %v9408_v7 }
 0x2b7   : > { %v7336_v45 = vadd.f32 %v9409_v61, %v2021_v22  ;;  %v2023_v4 = vpop.f32.mrb[113].mxu0  ;;  %v9411_v22 = vld [vmem:[#allocation40_spill] sm:$0xff]  ;;  %v9412_v61 = vld [vmem:[#allocation99_spill] sm:$0xff] }
 0x2b8   : > { %v2695_v25 = vpop.f32.mrb[128].mxu1  ;;  %v2024_v48 = vpop.f32.mrb[114].mxu0 }
 0x2b9   : > { %v7339_v54 = vadd.f32 %v2695_v25, %v7240_v34  ;;  %v7342_v36 = vadd.f32 %v9410_v49, %v2024_v48  ;;  %v2697_v46 = vpop.f32.mrb[129].mxu1  ;;  %v2026_v33 = vpop.f32.mrb[115].mxu0  ;;  %v9413_v34 = vld [vmem:[#allocation130_spill] sm:$0xff] }
 0x2ba   : > { %v2698_v42 = vpop.f32.mrb[130].mxu1 }
 0x2bb   : > { %v7345_v63 = vadd.f32 %v2698_v42, %v7246_v30  ;;  %v2700_v52 = vpop.f32.mrb[131].mxu1  ;;  %5055 = vmatmul.mubr.bf16.gmra.mrb[220].mxu0 %v6986_v8  ;;  %v9414_v30 = vld [vmem:[#allocation133_spill] sm:$0xff] }
 0x2bc   : > { %5058 = vmatprep.mubr.bf16.mxu0 %v7005_v60 }
 0x2bd   : > { %3425 = vmatmul.mubr.bf16.gmra.mrb[236].mxu1 %v9411_v22 }
 0x2be   : > { %v2029_v7 = vpop.f32.mrb[116].mxu0  ;;  %3432 = vmatprep.mubr.bf16.mxu1 %v9412_v61 }
 0x2bf   : > { %v7352_v4 = vadd.f32 %v9413_v34, %v2029_v7  ;;  %v2031_v25 = vpop.f32.mrb[117].mxu0  ;;  %v9415_v7 = vld [vmem:[#allocation41_spill] sm:$0xff]  ;;  %v9416_v34 = vld [vmem:[#allocation100_spill] sm:$0xff] }
 0x2c0   : > { %v2703_v48 = vpop.f32.mrb[132].mxu1  ;;  %v2032_v49 = vpop.f32.mrb[118].mxu0 }
 0x2c1   : > { %v7355_v46 = vadd.f32 %v2703_v48, %v7256_v62  ;;  %v7358_v33 = vadd.f32 %v9414_v30, %v2032_v49  ;;  %v2705_v8 = vpop.f32.mrb[133].mxu1  ;;  %v2034_v42 = vpop.f32.mrb[119].mxu0  ;;  %v9417_v62 = vld [vmem:[#allocation136_spill] sm:$0xff] }
 0x2c2   : > { %v2706_v60 = vpop.f32.mrb[134].mxu1 }
 0x2c3   : > { %v7361_v52 = vadd.f32 %v2706_v60, %v7262_v53  ;;  %v2708_v22 = vpop.f32.mrb[135].mxu1  ;;  %5059 = vmatmul.mubr.bf16.gmra.mrb[224].mxu0 %v7008_v11  ;;  %v9419_v53 = vld [vmem:[#allocation138_spill] sm:$0xff] }
 0x2c4   : > { %5062 = vmatprep.mubr.bf16.mxu0 %v7027_v3 }
 0x2c5   : > { %3433 = vmatmul.mubr.bf16.gmra.mrb[240].mxu1 %v9415_v7 }
 0x2c6   : > { %v2037_v61 = vpop.f32.mrb[120].mxu0  ;;  %3440 = vmatprep.mubr.bf16.mxu1 %v9416_v34 }
 0x2c7   : > { %v7368_v25 = vadd.f32 %v9417_v62, %v2037_v61  ;;  %v2039_v48 = vpop.f32.mrb[121].mxu0  ;;  %v9421_v61 = vld [vmem:[#allocation46_spill] sm:$0xff]  ;;  %v9422_v62 = vld [vmem:[#allocation101_spill] sm:$0xff] }
 0x2c8   : > { %v2711_v49 = vpop.f32.mrb[136].mxu1  ;;  %v2040_v30 = vpop.f32.mrb[122].mxu0 }
 0x2c9   : > { %v7371_v8 = vadd.f32 %v2711_v49, %v7272_v57  ;;  %v7374_v42 = vadd.f32 %v9419_v53, %v2040_v30  ;;  %v2713_v11 = vpop.f32.mrb[137].mxu1  ;;  %v2042_v60 = vpop.f32.mrb[123].mxu0  ;;  %v9423_v57 = vld [vmem:[#allocation54_spill] sm:$0xff] }
 0x2ca   : > { %v2714_v3 = vpop.f32.mrb[138].mxu1 }
 0x2cb   : > { %9418 = vst [vmem:[#allocation116_spill] sm:$0xff] %v7371_v8  ;;  %v7377_v22 = vadd.f32 %v2714_v3, %v7278_v16  ;;  %v2716_v7 = vpop.f32.mrb[139].mxu1  ;;  %5063 = vmatmul.mubr.bf16.gmra.mrb[228].mxu0 %v7030_v29  ;;  %v9424_v16 = vld [vmem:[#allocation137_spill] sm:$0xff] }
 0x2cc   : > { %5066 = vmatprep.mubr.bf16.mxu0 %v7049_v0  ;;  %v9432_v8 = vld [vmem:[#allocation69_spill] sm:$0xff] }
 0x2cd   : > { %9420 = vst [vmem:[#allocation43_spill] sm:$0xff] %v7377_v22  ;;  %3441 = vmatmul.mubr.bf16.gmra.mrb[244].mxu1 %v9421_v61 }
 0x2ce   : > { %v2045_v34 = vpop.f32.mrb[124].mxu0  ;;  %3448 = vmatprep.mubr.bf16.mxu1 %v9422_v62 }
 0x2cf   : > { %v7384_v48 = vadd.f32 %v9423_v57, %v2045_v34  ;;  %v2047_v49 = vpop.f32.mrb[125].mxu0  ;;  %v9426_v34 = vld [vmem:[#allocation47_spill] sm:$0xff]  ;;  %v9427_v57 = vld [vmem:[#allocation102_spill] sm:$0xff] }
 0x2d0   : > { %v2719_v30 = vpop.f32.mrb[140].mxu1  ;;  %v2048_v53 = vpop.f32.mrb[126].mxu0 }
 0x2d1   : > { %v7387_v11 = vadd.f32 %v2719_v30, %v7288_v56  ;;  %v7390_v60 = vadd.f32 %v9424_v16, %v2048_v53  ;;  %v2721_v29 = vpop.f32.mrb[141].mxu1  ;;  %v2050_v3 = vpop.f32.mrb[127].mxu0  ;;  %v9428_v56 = vld [vmem:[#allocation117_spill] sm:$0xff]  ;;  %v9429_v53 = vld [vmem:[#allocation111_spill] sm:$0xff] }
 0x2d2   : > { %v2722_v0 = vpop.f32.mrb[142].mxu1 }
 0x2d3   : > { %v7393_v7 = vadd.f32 %v2722_v0, %v7294_v59  ;;  %v2724_v61 = vpop.f32.mrb[143].mxu1  ;;  %5067 = vmatmul.mubr.bf16.gmra.mrb[232].mxu0 %v7052_v17  ;;  %v9430_v0 = vld [vmem:[#allocation119_spill] sm:$0xff] }
 0x2d4   : > { %5070 = vmatprep.mubr.bf16.mxu0 %v7071_v24 }
 0x2d5   : > { %9425 = vst [vmem:[#allocation91_spill] sm:$0xff] %v7393_v7  ;;  %3449 = vmatmul.mubr.bf16.gmra.mrb[248].mxu1 %v9426_v34  ;;  %v9431_v34 = vld [vmem:[#allocation113_spill] sm:$0xff] }
 0x2d6   : > { %v4892_v62 = vpop.f32.mrb[128].mxu0  ;;  %3456 = vmatprep.mubr.bf16.mxu1 %v9427_v57 }
 0x2d7   : > { %v2095_v49 = vadd.f32 %v4892_v62, %v9428_v56  ;;  %v2086_v30 = vpop.f32.mrb[129].mxu0 }
 0x2d8   : > { %v2087_v16 = vadd.f32 %v2086_v30, %v9429_v53  ;;  %v2727_v29 = vpop.f32.mrb[144].mxu1  ;;  %v4893_v3 = vpop.f32.mrb[130].mxu0 }
 0x2d9   : > { %v7402_v59 = vadd.f32 %v2727_v29, %v7304_v51  ;;  %v2098_v61 = vadd.f32 %v4893_v3, %v9430_v0  ;;  %v2729_v17 = vpop.f32.mrb[145].mxu1  ;;  %v2089_v22 = vpop.f32.mrb[131].mxu0  ;;  %v7406_v24 = vadd.f32 %v7000_v18, %v2095_v49  ;;  %v9433_v51 = vld [vmem:[#allocation141_spill] sm:$0xff]  ;;  %v9434_v29 = vld [vmem:[#allocation140_spill] sm:$0xff]  ;;  %v9435_v49 = vld [vmem:[#allocation51_spill] sm:$0xff] }
 0x2da   : > { %v2090_v7 = vadd.f32 %v2089_v22, %v9431_v34  ;;  %v2730_v57 = vpop.f32.mrb[146].mxu1  ;;  %v7410_v62 = vadd.f32 %v9432_v8, %v2087_v16  ;;  %v9436_v3 = vld [vmem:[#allocation103_spill] sm:$0xff] }
 0x2db   : > { %v7413_v56 = vadd.f32 %v2730_v57, %v7310_v10  ;;  %v2732_v30 = vpop.f32.mrb[147].mxu1  ;;  %5071 = vmatmul.mubr.bf16.gmra.mrb[236].mxu0 %v9344_v41  ;;  %v7417_v53 = vadd.f32 %v9433_v51, %v2098_v61  ;;  %v9437_v8 = vld [vmem:[#allocation127_spill] sm:$0xff]  ;;  %v9439_v57 = vld [vmem:[#allocation128_spill] sm:$0xff] }
 0x2dc   : > { %5074 = vmatprep.mubr.bf16.mxu0 %v9345_v58  ;;  %v7421_v18 = vadd.f32 %v9434_v29, %v2090_v7  ;;  %v9438_v0 = vld [vmem:[#allocation123_spill] sm:$0xff]  ;;  %v9440_v29 = vld [vmem:[#allocation125_spill] sm:$0xff] }
 0x2dd   : > { %3457 = vmatmul.mubr.bf16.gmra.mrb[252].mxu1 %v9435_v49 }
 0x2de   : > { %v4896_v22 = vpop.f32.mrb[132].mxu0  ;;  %3464 = vmatprep.mubr.bf16.mxu1 %v9436_v3 }
 0x2df   : > { %v2111_v16 = vadd.f32 %v4896_v22, %v9437_v8  ;;  %v2102_v10 = vpop.f32.mrb[133].mxu0 }
 0x2e0   : > { %v2103_v17 = vadd.f32 %v2102_v10, %v9438_v0  ;;  %v2735_v34 = vpop.f32.mrb[148].mxu1  ;;  %v4897_v41 = vpop.f32.mrb[134].mxu0 }
 0x2e1   : > { %v7428_v61 = vadd.f32 %v2735_v34, %v7320_v9  ;;  %v2114_v58 = vadd.f32 %v4897_v41, %v9439_v57  ;;  %v2737_v30 = vpop.f32.mrb[149].mxu1  ;;  %v2105_v7 = vpop.f32.mrb[135].mxu0  ;;  %v7432_v51 = vadd.f32 %v7044_v14, %v2111_v16  ;;  %v9441_v16 = vld [vmem:[#allocation52_spill] sm:$0xff]  ;;  %v9442_v34 = vld [vmem:[#allocation55_spill] sm:$0xff] }
 0x2e2   : > { %v2106_v49 = vadd.f32 %v2105_v7, %v9440_v29  ;;  %v2738_v3 = vpop.f32.mrb[150].mxu1  ;;  %v7436_v22 = vadd.f32 %v7022_v43, %v2103_v17  ;;  %v9443_v43 = vld [vmem:[#allocation48_spill] sm:$0xff] }
 0x2e3   : > { %v7439_v8 = vadd.f32 %v2738_v3, %v7326_v2  ;;  %v2740_v10 = vpop.f32.mrb[151].mxu1  ;;  %5075 = vmatmul.mubr.bf16.gmra.mrb[240].mxu0 %v9351_v31  ;;  %v7443_v9 = vadd.f32 %v7054_v38, %v2114_v58  ;;  %v9444_v41 = vld [vmem:[#allocation44_spill] sm:$0xff]  ;;  %v9445_v58 = vld [vmem:[#allocation135_spill] sm:$0xff] }
 0x2e4   : > { %5078 = vmatprep.mubr.bf16.mxu0 %v9352_v27  ;;  %v7447_v14 = vadd.f32 %v7032_v12, %v2106_v49  ;;  %v9446_v49 = vld [vmem:[#allocation131_spill] sm:$0xff] }
 0x2e5   : > { %3465 = vmatmul.mubr.bf16.gmra.mrb[0].mxu1 %v9441_v16 }
 0x2e6   : > { %v4900_v0 = vpop.f32.mrb[136].mxu0  ;;  %3472 = vmatprep.mubr.bf16.mxu1 %v9442_v34 }
 0x2e7   : > { %v2127_v17 = vadd.f32 %v4900_v0, %v9443_v43  ;;  %v2118_v2 = vpop.f32.mrb[137].mxu0  ;;  %v9447_v43 = vld [vmem:[#allocation57_spill] sm:$0xff] }
 0x2e8   : > { %v2119_v57 = vadd.f32 %v2118_v2, %v9444_v41  ;;  %v2743_v30 = vpop.f32.mrb[152].mxu1  ;;  %v4901_v31 = vpop.f32.mrb[138].mxu0  ;;  %v9448_v2 = vld [vmem:[#allocation58_spill] sm:$0xff] }
 0x2e9   : > { %v7454_v38 = vadd.f32 %v2743_v30, %v7336_v45  ;;  %v2130_v27 = vadd.f32 %v4901_v31, %v9445_v58  ;;  %v2745_v7 = vpop.f32.mrb[153].mxu1  ;;  %v2121_v12 = vpop.f32.mrb[139].mxu0  ;;  %v7458_v29 = vadd.f32 %v7081_v13, %v2127_v17  ;;  %v9451_v58 = vld [vmem:[#allocation83_spill] sm:$0xff] }
 0x2ea   : > { %v2122_v3 = vadd.f32 %v2121_v12, %v9446_v49  ;;  %v2746_v10 = vpop.f32.mrb[154].mxu1  ;;  %v7462_v16 = vadd.f32 %v7066_v44, %v2119_v57  ;;  %v9449_v44 = vld [vmem:[#allocation75_spill] sm:$0xff]  ;;  %v9450_v57 = vld [vmem:[#allocation61_spill] sm:$0xff] }
 0x2eb   : > { %v7465_v0 = vadd.f32 %v2746_v10, %v7342_v36  ;;  %v2748_v34 = vpop.f32.mrb[155].mxu1  ;;  %5079 = vmatmul.mubr.bf16.gmra.mrb[244].mxu0 %v9358_v28  ;;  %v7469_v45 = vadd.f32 %v7085_v15, %v2130_v27  ;;  %v9452_v12 = vld [vmem:[#allocation139_spill] sm:$0xff] }
 0x2ec   : > { %5082 = vmatprep.mubr.bf16.mxu0 %v9359_v37  ;;  %v7473_v13 = vadd.f32 %v7074_v26, %v2122_v3 }
 0x2ed   : > { %3473 = vmatmul.mubr.bf16.gmra.mrb[4].mxu1 %v9447_v43 }
 0x2ee   : > { %v4904_v17 = vpop.f32.mrb[140].mxu0  ;;  %3480 = vmatprep.mubr.bf16.mxu1 %v9448_v2  ;;  %v9454_v2 = vld [vmem:[#allocation62_spill] sm:$0xff] }
 0x2ef   : > { %v2143_v41 = vadd.f32 %v4904_v17, %v9449_v44  ;;  %v2134_v36 = vpop.f32.mrb[141].mxu0  ;;  %v9453_v17 = vld [vmem:[#allocation45_spill] sm:$0xff]  ;;  %v9455_v44 = vld [vmem:[#allocation60_spill] sm:$0xff] }
 0x2f0   : > { %v2135_v30 = vadd.f32 %v2134_v36, %v9450_v57  ;;  %v2751_v31 = vpop.f32.mrb[156].mxu1  ;;  %v4905_v28 = vpop.f32.mrb[142].mxu0  ;;  %v9456_v36 = vld [vmem:[#allocation105_spill] sm:$0xff] }
 0x2f1   : > { %v7480_v15 = vadd.f32 %v2751_v31, %v7352_v4  ;;  %v2146_v37 = vadd.f32 %v4905_v28, %v9451_v58  ;;  %v2753_v27 = vpop.f32.mrb[157].mxu1  ;;  %v2137_v26 = vpop.f32.mrb[143].mxu0  ;;  %v7484_v7 = vadd.f32 %v7108_v23, %v2143_v41  ;;  %v9460_v58 = vld [vmem:[#allocation144_spill] sm:$0xff] }
 0x2f2   : > { %v2138_v49 = vadd.f32 %v2137_v26, %v9452_v12  ;;  %v2754_v3 = vpop.f32.mrb[158].mxu1  ;;  %v7488_v10 = vadd.f32 %v7094_v1, %v2135_v30  ;;  %v9457_v1 = vld [vmem:[#allocation143_spill] sm:$0xff]  ;;  %v9458_v30 = vld [vmem:[#allocation85_spill] sm:$0xff]  ;;  %v9461_v12 = vld [vmem:[#allocation150_spill] sm:$0xff] }
 0x2f3   : > { %v7491_v34 = vadd.f32 %v2754_v3, %v7358_v33  ;;  %v2756_v43 = vpop.f32.mrb[159].mxu1  ;;  %5083 = vmatmul.mubr.bf16.gmra.mrb[248].mxu0 %v9365_v35  ;;  %v7495_v4 = vadd.f32 %v7113_v55, %v2146_v37  ;;  %v9462_v3 = vld [vmem:[#allocation142_spill] sm:$0xff] }
 0x2f4   : > { %5086 = vmatprep.mubr.bf16.mxu0 %v9453_v17  ;;  %v7499_v23 = vadd.f32 %v9454_v2, %v2138_v49  ;;  %v9463_v2 = vld [vmem:[#allocation148_spill] sm:$0xff] }
 0x2f5   : > { %3481 = vmatmul.mubr.bf16.gmra.mrb[8].mxu1 %v9455_v44 }
 0x2f6   : > { %v4908_v41 = vpop.f32.mrb[144].mxu0  ;;  %3488 = vmatprep.mubr.bf16.mxu1 %v9456_v36 }
 0x2f7   : > { %v2159_v57 = vadd.f32 %v4908_v41, %v9457_v1  ;;  %v2150_v33 = vpop.f32.mrb[145].mxu0  ;;  %v9465_v1 = vld [vmem:[#allocation49_spill] sm:$0xff] }
 0x2f8   : > { %v2151_v31 = vadd.f32 %v2150_v33, %v9458_v30  ;;  %v2759_v28 = vpop.f32.mrb[160].mxu1  ;;  %v4909_v35 = vpop.f32.mrb[146].mxu0  ;;  %v9467_v30 = vld [vmem:[#allocation50_spill] sm:$0xff] }
 0x2f9   : > { %v7506_v55 = vadd.f32 %v2759_v28, %v7368_v25  ;;  %v2162_v37 = vadd.f32 %v4909_v35, %v9460_v58  ;;  %v2761_v27 = vpop.f32.mrb[161].mxu1  ;;  %v2153_v26 = vpop.f32.mrb[147].mxu0  ;;  %v7510_v49 = vadd.f32 %v9461_v12, %v2159_v57  ;;  %v9466_v25 = vld [vmem:[#allocation151_spill] sm:$0xff]  ;;  %v9468_v28 = vld [vmem:[#allocation149_spill] sm:$0xff]  ;;  %v9472_v12 = vld [vmem:[#allocation84_spill] sm:$0xff] }
 0x2fa   : > { %v2154_v43 = vadd.f32 %v2153_v26, %v9462_v3  ;;  %v2762_v17 = vpop.f32.mrb[162].mxu1  ;;  %v7514_v44 = vadd.f32 %v9463_v2, %v2151_v31  ;;  %v9469_v35 = vld [vmem:[#allocation65_spill] sm:$0xff]  ;;  %v9471_v31 = vld [vmem:[#allocation146_spill] sm:$0xff] }
 0x2fb   : > { %9459 = vst [vmem:[#allocation112_spill] sm:$0xff] %v7506_v55  ;;  %v7517_v41 = vadd.f32 %v2762_v17, %v7374_v42  ;;  %v2764_v36 = vpop.f32.mrb[163].mxu1  ;;  %5087 = vmatmul.mubr.bf16.gmra.mrb[252].mxu0 %v9465_v1  ;;  %v7521_v33 = vadd.f32 %v9466_v25, %v2162_v37  ;;  %v9470_v27 = vld [vmem:[#allocation109_spill] sm:$0xff] }
 0x2fc   : > { %5090 = vmatprep.mubr.bf16.mxu0 %v9467_v30  ;;  %v7525_v57 = vadd.f32 %v9468_v28, %v2154_v43  ;;  %v9473_v36 = vld [vmem:[#allocation147_spill] sm:$0xff]  ;;  %v9477_v55 = vld [vmem:[#allocation53_spill] sm:$0xff] }
 0x2fd   : > { %9464 = vst [vmem:[#allocation73_spill] sm:$0xff] %v7517_v41  ;;  %3489 = vmatmul.mubr.bf16.gmra.mrb[12].mxu1 %v9469_v35  ;;  %v9474_v30 = vld [vmem:[#allocation87_spill] sm:$0xff]  ;;  %v9475_v35 = vld [vmem:[#allocation145_spill] sm:$0xff] }
 0x2fe   : > { %v4912_v58 = vpop.f32.mrb[148].mxu0  ;;  %3496 = vmatprep.mubr.bf16.mxu1 %v9470_v27 }
 0x2ff   : > { %v2175_v26 = vadd.f32 %v4912_v58, %v9471_v31  ;;  %v2166_v42 = vpop.f32.mrb[149].mxu0  ;;  %v9476_v58 = vld [vmem:[#allocation104_spill] sm:$0xff] }
 0x300   : > { %v2167_v3 = vadd.f32 %v2166_v42, %v9472_v12  ;;  %v2767_v17 = vpop.f32.mrb[164].mxu1  ;;  %v4913_v2 = vpop.f32.mrb[150].mxu0 }
 0x301   : > { %v7532_v37 = vadd.f32 %v2767_v17, %v7384_v48  ;;  %v2178_v1 = vadd.f32 %v4913_v2, %v9473_v36  ;;  %v2769_v43 = vpop.f32.mrb[165].mxu1  ;;  %v2169_v25 = vpop.f32.mrb[151].mxu0  ;;  %v7536_v28 = vadd.f32 %v9474_v30, %v2175_v26  ;;  %v9478_v48 = vld [vmem:[#allocation64_spill] sm:$0xff]  ;;  %v9480_v26 = vld [vmem:[#allocation106_spill] sm:$0xff] }
 0x302   : > { %v2170_v27 = vadd.f32 %v2169_v25, %v9475_v35  ;;  %v2770_v41 = vpop.f32.mrb[166].mxu1  ;;  %v7540_v31 = vadd.f32 %v9476_v58, %v2167_v3  ;;  %v9479_v2 = vld [vmem:[#allocation56_spill] sm:$0xff]  ;;  %v9481_v25 = vld [vmem:[#allocation67_spill] sm:$0xff] }
 0x303   : > { %v7543_v42 = vadd.f32 %v2770_v41, %v7390_v60  ;;  %v2772_v12 = vpop.f32.mrb[167].mxu1  ;;  %5091 = vmatmul.mubr.bf16.gmra.mrb[0].mxu0 %v9477_v55  ;;  %v7547_v17 = vadd.f32 %v9478_v48, %v2178_v1  ;;  %v5381_v36 = vld [vmem:[%s5997_s12 + $0x108] sm:$0xff]  }
 0x304   : > { %5094 = vmatprep.mubr.bf16.mxu0 %v9479_v2  ;;  %v7552_v43 = vadd.f32 %v9480_v26, %v2170_v27  ;;  %v9482_v3 = vld [vmem:[#allocation115_spill] sm:$0xff]  ;;  %v729_v58 = vshrl.u32 %v5381_v36, 16 }
 0x305   : > { %3497 = vmatmul.mubr.bf16.gmra.mrb[16].mxu1 %v9481_v25  ;;  %v732_v25 = vshll.u32 %v5381_v36, 16 }
 0x306   : > { %v4972_v30 = vpop.f32.mrb[152].mxu0  ;;  %3504 = vmatprep.mubr.bf16.mxu1 %v9482_v3 }
 0x307   : > { %v7557_v60 = vadd.f32 %v4972_v30, %v7406_v24  ;;  %v2808_v41 = vpop.f32.mrb[153].mxu0  ;;  %v9483_v30 = vld [vmem:[#allocation72_spill] sm:$0xff] }
 0x308   : > { %v7560_v55 = vadd.f32 %v2808_v41, %v7410_v62  ;;  %v7562_v1 = vpop.f32.mrb[168].mxu1  ;;  %v4973_v35 = vpop.f32.mrb[154].mxu0  ;;  %v731_v62 = vrot.slane %v729_v58, 7  ;;  %v9484_v41 = vld [vmem:[#allocation121_spill] sm:$0xff] }
 0x309   : > { %v7565_v12 = vadd.f32 %v4973_v35, %v7417_v53  ;;  %v3292_v27 = vpop.f32.mrb[169].mxu1  ;;  %v2811_v48 = vpop.f32.mrb[155].mxu0 }
 0x30a   : > { %v7568_v2 = vadd.f32 %v2811_v48, %v7421_v18  ;;  %v7570_v26 = vpop.f32.mrb[170].mxu1 }
 0x30b   : > { %v3295_v24 = vpop.f32.mrb[171].mxu1  ;;  %5095 = vmatmul.mubr.bf16.gmra.mrb[4].mxu0 %v9387_v32  ;;  %v734_v32 = vor.u32 %v732_v25, %v731_v62 }
 0x30c   : > { %5098 = vmatprep.mubr.bf16.mxu0 %v9388_v5 }
 0x30d   : > { %3505 = vmatmul.mubr.bf16.gmra.mrb[20].mxu1 %v9483_v30 }
 0x30e   : > { %v4976_v3 = vpop.f32.mrb[156].mxu0  ;;  %3512 = vmatprep.mubr.bf16.mxu1 %v9484_v41  ;;  %v9488_v41 = vld [vmem:[#allocation70_spill] sm:$0xff] }
 0x30f   : > { %v7577_v53 = vadd.f32 %v4976_v3, %v7432_v51  ;;  %v2824_v35 = vpop.f32.mrb[157].mxu0  ;;  %v9487_v3 = vld [vmem:[#allocation68_spill] sm:$0xff] }
 0x310   : > { %v7580_v18 = vadd.f32 %v2824_v35, %v7436_v22  ;;  %v7582_v27 = vpop.f32.mrb[172].mxu1  ;;  %v4977_v48 = vpop.f32.mrb[158].mxu0  ;;  %v839_v35 = vsel %vm6042_vm2, 0, %v734_v32  ;;  %v9495_v22 = vld [vmem:[#allocation79_spill] sm:$0xff] }
 0x311   : > { %v7585_v5 = vadd.f32 %v4977_v48, %v7443_v9  ;;  %v3300_v36 = vpop.f32.mrb[173].mxu1  ;;  %v2827_v58 = vpop.f32.mrb[159].mxu0  ;;  %v9491_v9 = vld [vmem:[#allocation126_spill] sm:$0xff] }
 0x312   : > { %9485 = vst [vmem:[#allocation92_spill] sm:$0xff] %v7580_v18  ;;  %v7588_v24 = vadd.f32 %v2827_v58, %v7447_v14  ;;  %v7590_v30 = vpop.f32.mrb[174].mxu1  ;;  %v9490_v18 = vld [vmem:[#allocation74_spill] sm:$0xff]  ;;  %v1274_v36 = vshll.u32 %v839_v35, 16 }
 0x313   : > { %v3303_v51 = vpop.f32.mrb[175].mxu1  ;;  %5099 = vmatmul.mubr.bf16.gmra.mrb[8].mxu0 %v9487_v3 }
 0x314   : > { %9486 = vst [vmem:[#allocation120_spill] sm:$0xff] %v7588_v24  ;;  %5102 = vmatprep.mubr.bf16.mxu0 %v9488_v41  ;;  %v873_v41 = vsel %vm6042_vm2, %v731_v62, 0 }
 0x315   : > { %3513 = vmatmul.mubr.bf16.gmra.mrb[24].mxu1 %v9490_v18 }
 0x316   : > { %v4980_v25 = vpop.f32.mrb[160].mxu0  ;;  %3520 = vmatprep.mubr.bf16.mxu1 %v9491_v9 }
 0x317   : > { %v7599_v48 = vadd.f32 %v4980_v25, %v7458_v29  ;;  %v2840_v14 = vpop.f32.mrb[161].mxu0 }
 0x318   : > { %v7602_v58 = vadd.f32 %v2840_v14, %v7462_v16  ;;  %v7604_v51 = vpop.f32.mrb[176].mxu1  ;;  %v4981_v3 = vpop.f32.mrb[162].mxu0  ;;  %v1272_v16 = vshrl.u32 %v839_v35, 16  ;;  %v1276_v14 = vrot.slane %v1274_v36, 1 }
 0x319   : > { %v7609_v32 = vadd.f32 %v4981_v3, %v7469_v45  ;;  %v3308_v18 = vpop.f32.mrb[177].mxu1  ;;  %v2843_v24 = vpop.f32.mrb[163].mxu0  ;;  %v9496_v45 = vld [vmem:[#allocation129_spill] sm:$0xff] }
 0x31a   : > { %9492 = vst [vmem:[#allocation122_spill] sm:$0xff] %v7602_v58  ;;  %v7612_v9 = vadd.f32 %v2843_v24, %v7473_v13  ;;  %v7614_v29 = vpop.f32.mrb[178].mxu1  ;;  %v1279_v58 = vshll.u32 %v873_v41, 16  ;;  %v1277_v24 = vor.u32 %v1276_v14, %v1272_v16  ;;  %v1486_v16 = vrot.slane %v873_v41, 1 }
 0x31b   : > { %9493 = vst [vmem:[#allocation29_spill] sm:$0xff] %v7609_v32  ;;  %v3311_v25 = vpop.f32.mrb[179].mxu1  ;;  %5103 = vmatmul.mubr.bf16.gmra.mrb[12].mxu0 %v9400_v40  ;;  %v1485_v14 = vrot.slane %v839_v35, 1 }
 0x31c   : > { %9494 = vst [vmem:[#allocation93_spill] sm:$0xff] %v7612_v9  ;;  %5106 = vmatprep.mubr.bf16.mxu0 %v9401_v50  ;;  %v1281_v18 = vrot.slane %v1279_v58, 1 }
 0x31d   : > { %3521 = vmatmul.mubr.bf16.gmra.mrb[28].mxu1 %v9495_v22 }
 0x31e   : > { %v4984_v62 = vpop.f32.mrb[164].mxu0  ;;  %3528 = vmatprep.mubr.bf16.mxu1 %v9496_v45  ;;  %v1282_v58 = vsel %vm874_vm4, %v1277_v24, %v1281_v18  ;;  %v1487_v24 = vsel %vm1385_vm3, %v1485_v14, %v1486_v16 }
 0x31f   : > { %v7621_v3 = vadd.f32 %v4984_v62, %v7484_v7  ;;  %v2856_v13 = vpop.f32.mrb[165].mxu0  ;;  %v9498_v62 = vld [vmem:[#allocation82_spill] sm:$0xff] }
 0x320   : > { %v7624_v25 = vadd.f32 %v2856_v13, %v7488_v10  ;;  %v7626_v40 = vpop.f32.mrb[180].mxu1  ;;  %v4985_v36 = vpop.f32.mrb[166].mxu0  ;;  %v9497_v10 = vld [vmem:[#allocation86_spill] sm:$0xff] }
 0x321   : > { %v7629_v9 = vadd.f32 %v4985_v36, %v7495_v4  ;;  %v3316_v50 = vpop.f32.mrb[181].mxu1  ;;  %v2859_v22 = vpop.f32.mrb[167].mxu0 }
 0x322   : > { %v7632_v32 = vadd.f32 %v2859_v22, %v7499_v23  ;;  %v7634_v45 = vpop.f32.mrb[182].mxu1 }
 0x323   : > { %v3319_v7 = vpop.f32.mrb[183].mxu1  ;;  %5107 = vmatmul.mubr.bf16.gmra.mrb[16].mxu0 %v9404_v19 }
 0x324   : > { %5110 = vmatprep.mubr.bf16.mxu0 %v9497_v10 }
 0x325   : > { %3529 = vmatmul.mubr.bf16.gmra.mrb[32].mxu1 %v9498_v62 }
 0x326   : > { %v4988_v4 = vpop.f32.mrb[168].mxu0  ;;  %3536 = vmatprep.mubr.bf16.mxu1 %v1282_v58 }
 0x327   : > { %v7641_v13 = vadd.f32 %v4988_v4, %v7510_v49  ;;  %v2872_v23 = vpop.f32.mrb[169].mxu0 }
 0x328   : > { %v7644_v36 = vadd.f32 %v2872_v23, %v7514_v44  ;;  %v7646_v50 = vpop.f32.mrb[184].mxu1  ;;  %v4989_v19 = vpop.f32.mrb[170].mxu0 }
 0x329   : > { %v7650_v18 = vadd.f32 %v4989_v19, %v7521_v33  ;;  %v3324_v41 = vpop.f32.mrb[185].mxu1  ;;  %v2875_v22 = vpop.f32.mrb[171].mxu0 }
 0x32a   : > { %9499 = vst [vmem:[#allocation118_spill] sm:$0xff] %v7644_v36  ;;  %v7653_v7 = vadd.f32 %v2875_v22, %v7525_v57  ;;  %v7655_v58 = vpop.f32.mrb[186].mxu1  ;;  %v9506_v41 = vld [vmem:[#allocation33_spill] sm:$0xff] }
 0x32b   : > { %9500 = vst [vmem:[#allocation78_spill] sm:$0xff] %v7650_v18  ;;  %v3327_v49 = vpop.f32.mrb[187].mxu1  ;;  %5111 = vmatmul.mubr.bf16.gmra.mrb[20].mxu0 %v1487_v24 }
 0x32c   : > { %9501 = vst [vmem:[#allocation59_spill] sm:$0xff] %v7653_v7  ;;  %v9508_v49 = vld [vmem:[#allocation66_spill] sm:$0xff] }
 0x32d   : > { %3537 = vmatmul.mubr.bf16.gmra.mrb[36].mxu1 %v839_v35 }
 0x32e   : > { %v4992_v44 = vpop.f32.mrb[172].mxu0 }
 0x32f   : > { %v7658_v10 = vadd.f32 %v4992_v44, %v7536_v28  ;;  %v2888_v62 = vpop.f32.mrb[173].mxu0 }
 0x330   : > { %v7661_v16 = vadd.f32 %v2888_v62, %v7540_v31  ;;  %v7663_v33 = vpop.f32.mrb[188].mxu1  ;;  %v4993_v14 = vpop.f32.mrb[174].mxu0 }
 0x331   : > { %9502 = vst [vmem:[#allocation63_spill] sm:$0xff] %v7658_v10  ;;  %v7666_v4 = vadd.f32 %v4993_v14, %v7547_v17  ;;  %v3332_v57 = vpop.f32.mrb[189].mxu1  ;;  %v2891_v23 = vpop.f32.mrb[175].mxu0  ;;  %v9510_v14 = vld [vmem:[#allocation88_spill] sm:$0xff] }
 0x332   : > { %9503 = vst [vmem:[#allocation31_spill] sm:$0xff] %v7661_v16  ;;  %v7669_v19 = vadd.f32 %v2891_v23, %v7552_v43  ;;  %v7671_v35 = vpop.f32.mrb[190].mxu1  ;;  %v9512_v23 = vld [vmem:[#allocation30_spill] sm:$0xff] }
 0x333   : > { %9504 = vst [vmem:[#allocation94_spill] sm:$0xff] %v7666_v4  ;;  %v3335_v24 = vpop.f32.mrb[191].mxu1 }
 0x334   : > { %9505 = vst [vmem:[#allocation32_spill] sm:$0xff] %v7669_v19 }
 0x336   : > { %v4996_v28 = vpop.f32.mrb[176].mxu0 }
 0x337   : > { %v7674_v22 = vadd.f32 %v4996_v28, %v9506_v41  ;;  %v2904_v31 = vpop.f32.mrb[177].mxu0  ;;  %v9514_v41 = vld [vmem:[#allocation34_spill] sm:$0xff] }
 0x338   : > { %v7677_v44 = vadd.f32 %v2904_v31, %v9508_v49  ;;  %v7679_v62 = vpop.f32.mrb[192].mxu1  ;;  %v4997_v17 = vpop.f32.mrb[178].mxu0  ;;  %v9516_v49 = vld [vmem:[#allocation108_spill] sm:$0xff] }
 0x339   : > { %9507 = vst [vmem:[#allocation95_spill] sm:$0xff] %v7674_v22  ;;  %v7682_v57 = vadd.f32 %v4997_v17, %v9510_v14  ;;  %v3340_v4 = vpop.f32.mrb[193].mxu1  ;;  %v2907_v43 = vpop.f32.mrb[179].mxu0  ;;  %v9518_v14 = vld [vmem:[#allocation37_spill] sm:$0xff] }
 0x33a   : > { %9509 = vst [vmem:[#allocation124_spill] sm:$0xff] %v7677_v44  ;;  %v7685_v19 = vadd.f32 %v2907_v43, %v9512_v23  ;;  %v7687_v24 = vpop.f32.mrb[194].mxu1  ;;  %v9520_v23 = vld [vmem:[#allocation110_spill] sm:$0xff] }
 0x33b   : > { %9511 = vst [vmem:[#allocation80_spill] sm:$0xff] %v7682_v57  ;;  %v3343_v16 = vpop.f32.mrb[195].mxu1 }
 0x33c   : > { %9513 = vst [vmem:[#allocation76_spill] sm:$0xff] %v7685_v19 }
 0x33e   : > { %v5000_v28 = vpop.f32.mrb[180].mxu0 }
 0x33f   : > { %v7690_v22 = vadd.f32 %v5000_v28, %v9514_v41  ;;  %v2920_v31 = vpop.f32.mrb[181].mxu0  ;;  %v9522_v41 = vld [vmem:[#allocation71_spill] sm:$0xff] }
 0x340   : > { %v7693_v44 = vadd.f32 %v2920_v31, %v9516_v49  ;;  %v7695_v10 = vpop.f32.mrb[196].mxu1  ;;  %v5001_v17 = vpop.f32.mrb[182].mxu0  ;;  %v9524_v49 = vld [vmem:[#allocation89_spill] sm:$0xff] }
 0x341   : > { %9515 = vst [vmem:[#allocation77_spill] sm:$0xff] %v7690_v22  ;;  %v7698_v4 = vadd.f32 %v5001_v17, %v9518_v14  ;;  %v3348_v57 = vpop.f32.mrb[197].mxu1  ;;  %v2923_v43 = vpop.f32.mrb[183].mxu0  ;;  %v9526_v14 = vld [vmem:[#allocation38_spill] sm:$0xff] }
 0x342   : > { %9517 = vst [vmem:[#allocation35_spill] sm:$0xff] %v7693_v44  ;;  %v7701_v19 = vadd.f32 %v2923_v43, %v9520_v23  ;;  %v7703_v16 = vpop.f32.mrb[198].mxu1  ;;  %v9528_v23 = vld [vmem:[#allocation107_spill] sm:$0xff] }
 0x343   : > { %9519 = vst [vmem:[#allocation96_spill] sm:$0xff] %v7698_v4  ;;  %v3351_v7 = vpop.f32.mrb[199].mxu1 }
 0x344   : > { %9521 = vst [vmem:[#allocation81_spill] sm:$0xff] %v7701_v19 }
 0x346   : > { %v5004_v28 = vpop.f32.mrb[184].mxu0 }
 0x347   : > { %v7706_v22 = vadd.f32 %v5004_v28, %v9522_v41  ;;  %v2936_v31 = vpop.f32.mrb[185].mxu0 }
 0x348   : > { %v7709_v44 = vadd.f32 %v2936_v31, %v9524_v49  ;;  %v7711_v18 = vpop.f32.mrb[200].mxu1  ;;  %v5005_v17 = vpop.f32.mrb[186].mxu0  ;;  %v9531_v49 = vld [vmem:[#allocation42_spill] sm:$0xff] }
 0x349   : > { %9523 = vst [vmem:[#allocation36_spill] sm:$0xff] %v7706_v22  ;;  %v7714_v57 = vadd.f32 %v5005_v17, %v9526_v14  ;;  %v3356_v4 = vpop.f32.mrb[201].mxu1  ;;  %v2939_v43 = vpop.f32.mrb[187].mxu0  ;;  %v9533_v14 = vld [vmem:[#allocation114_spill] sm:$0xff] }
 0x34a   : > { %9525 = vst [vmem:[#allocation97_spill] sm:$0xff] %v7709_v44  ;;  %v7717_v19 = vadd.f32 %v2939_v43, %v9528_v23  ;;  %v7719_v7 = vpop.f32.mrb[202].mxu1  ;;  %v9534_v23 = vld [vmem:[#allocation90_spill] sm:$0xff] }
 0x34b   : > { %9527 = vst [vmem:[#allocation39_spill] sm:$0xff] %v7714_v57  ;;  %9530 = vst [vmem:[#allocation132_spill] sm:$0xff] %v7719_v7  ;;  %v3359_v36 = vpop.f32.mrb[203].mxu1 }
 0x34c   : > { %9529 = vst [vmem:[#allocation98_spill] sm:$0xff] %v7717_v19 }
 0x34e   : > { %v5008_v28 = vpop.f32.mrb[188].mxu0 }
 0x34f   : > { %v7722_v41 = vadd.f32 %v5008_v28, %v7291_v39  ;;  %v2952_v31 = vpop.f32.mrb[189].mxu0 }
 0x350   : > { %v7725_v44 = vadd.f32 %v2952_v31, %v9531_v49  ;;  %v7727_v22 = vpop.f32.mrb[204].mxu1  ;;  %v5009_v17 = vpop.f32.mrb[190].mxu0 }
 0x351   : > { %v7730_v4 = vadd.f32 %v5009_v17, %v9533_v14  ;;  %v3364_v57 = vpop.f32.mrb[205].mxu1  ;;  %v2955_v43 = vpop.f32.mrb[191].mxu0 }
 0x352   : > { %9532 = vst [vmem:[#allocation134_spill] sm:$0xff] %v7725_v44  ;;  %v7733_v19 = vadd.f32 %v2955_v43, %v9534_v23  ;;  %v7735_v36 = vpop.f32.mrb[206].mxu1 }
 0x353   : > { %v3367_v7 = vpop.f32.mrb[207].mxu1 }
 0x354   : > { %9535 = vst [vmem:[#allocation40_spill] sm:$0xff] %v7733_v19 }
 0x356   : > { %v5012_v39 = vpop.f32.mrb[192].mxu0 }
 0x357   : > { %v7738_v28 = vadd.f32 %v5012_v39, %v7323_v6  ;;  %v2968_v31 = vpop.f32.mrb[193].mxu0 }
 0x358   : > { %v7741_v49 = vadd.f32 %v2968_v31, %v7307_v20  ;;  %v7743_v44 = vpop.f32.mrb[208].mxu1  ;;  %v5013_v17 = vpop.f32.mrb[194].mxu0 }
 0x359   : > { %v7746_v57 = vadd.f32 %v5013_v17, %v7329_v47  ;;  %v3372_v14 = vpop.f32.mrb[209].mxu1  ;;  %v2971_v43 = vpop.f32.mrb[195].mxu0 }
 0x35a   : > { %9536 = vst [vmem:[#allocation99_spill] sm:$0xff] %v7741_v49  ;;  %v7749_v23 = vadd.f32 %v2971_v43, %v7313_v21  ;;  %v7751_v7 = vpop.f32.mrb[210].mxu1 }
 0x35b   : > { %9537 = vst [vmem:[#allocation130_spill] sm:$0xff] %v7746_v57  ;;  %v3375_v19 = vpop.f32.mrb[211].mxu1 }
 0x35c   : > { %9538 = vst [vmem:[#allocation133_spill] sm:$0xff] %v7749_v23 }
 0x35e   : > { %v5016_v6 = vpop.f32.mrb[196].mxu0 }
 0x35f   : > { %v7754_v39 = vadd.f32 %v5016_v6, %v7355_v46  ;;  %v2984_v20 = vpop.f32.mrb[197].mxu0 }
 0x360   : > { %v7757_v31 = vadd.f32 %v2984_v20, %v7339_v54  ;;  %v7759_v49 = vpop.f32.mrb[212].mxu1  ;;  %v5017_v47 = vpop.f32.mrb[198].mxu0  ;;  %v9543_v20 = vld [vmem:[#allocation116_spill] sm:$0xff] }
 0x361   : > { %9539 = vst [vmem:[#allocation41_spill] sm:$0xff] %v7754_v39  ;;  %v7762_v17 = vadd.f32 %v5017_v47, %v7361_v52  ;;  %v3380_v14 = vpop.f32.mrb[213].mxu1  ;;  %v2987_v21 = vpop.f32.mrb[199].mxu0  ;;  %v9545_v47 = vld [vmem:[#allocation91_spill] sm:$0xff] }
 0x362   : > { %9540 = vst [vmem:[#allocation100_spill] sm:$0xff] %v7757_v31  ;;  %v7765_v43 = vadd.f32 %v2987_v21, %v7345_v63  ;;  %v7767_v19 = vpop.f32.mrb[214].mxu1  ;;  %v9546_v21 = vld [vmem:[#allocation43_spill] sm:$0xff] }
 0x363   : > { %9541 = vst [vmem:[#allocation136_spill] sm:$0xff] %v7762_v17  ;;  %v3383_v23 = vpop.f32.mrb[215].mxu1 }
 0x364   : > { %9542 = vst [vmem:[#allocation138_spill] sm:$0xff] %v7765_v43 }
 0x366   : > { %v5020_v46 = vpop.f32.mrb[200].mxu0 }
 0x367   : > { %v7770_v6 = vadd.f32 %v5020_v46, %v7387_v11  ;;  %v3000_v54 = vpop.f32.mrb[201].mxu0 }
 0x368   : > { %v7773_v31 = vadd.f32 %v3000_v54, %v9543_v20  ;;  %v7775_v39 = vpop.f32.mrb[216].mxu1  ;;  %v5021_v52 = vpop.f32.mrb[202].mxu0 }
 0x369   : > { %v7778_v14 = vadd.f32 %v5021_v52, %v9545_v47  ;;  %v3388_v17 = vpop.f32.mrb[217].mxu1  ;;  %v3003_v63 = vpop.f32.mrb[203].mxu0 }
 0x36a   : > { %9544 = vst [vmem:[#allocation46_spill] sm:$0xff] %v7773_v31  ;;  %v7781_v43 = vadd.f32 %v3003_v63, %v9546_v21  ;;  %v7783_v23 = vpop.f32.mrb[218].mxu1 }
 0x36b   : > { %v3391_v57 = vpop.f32.mrb[219].mxu1 }
 0x36c   : > { %9547 = vst [vmem:[#allocation101_spill] sm:$0xff] %v7781_v43 }
 0x36e   : > { %v5024_v11 = vpop.f32.mrb[204].mxu0 }
 0x36f   : > { %v7786_v46 = vadd.f32 %v5024_v11, %v7428_v61  ;;  %v3016_v54 = vpop.f32.mrb[205].mxu0 }
 0x370   : > { %v7789_v20 = vadd.f32 %v3016_v54, %v7402_v59  ;;  %v7791_v31 = vpop.f32.mrb[220].mxu1  ;;  %v5025_v52 = vpop.f32.mrb[206].mxu0 }
 0x371   : > { %v7794_v17 = vadd.f32 %v5025_v52, %v7439_v8  ;;  %v3396_v47 = vpop.f32.mrb[221].mxu1  ;;  %v3019_v63 = vpop.f32.mrb[207].mxu0 }
 0x372   : > { %9548 = vst [vmem:[#allocation54_spill] sm:$0xff] %v7789_v20  ;;  %v7797_v21 = vadd.f32 %v3019_v63, %v7413_v56  ;;  %v7799_v57 = vpop.f32.mrb[222].mxu1 }
 0x373   : > { %9549 = vst [vmem:[#allocation137_spill] sm:$0xff] %v7794_v17  ;;  %v3399_v43 = vpop.f32.mrb[223].mxu1 }
 0x374   : > { %9550 = vst [vmem:[#allocation47_spill] sm:$0xff] %v7797_v21 }
 0x376   : > { %v5028_v61 = vpop.f32.mrb[208].mxu0 }
 0x377   : > { %v7802_v11 = vadd.f32 %v5028_v61, %v7480_v15  ;;  %v3032_v59 = vpop.f32.mrb[209].mxu0 }
 0x378   : > { %v7805_v54 = vadd.f32 %v3032_v59, %v7454_v38  ;;  %v7807_v20 = vpop.f32.mrb[224].mxu1  ;;  %v5029_v8 = vpop.f32.mrb[210].mxu0  ;;  %v9556_v59 = vld [vmem:[#allocation112_spill] sm:$0xff] }
 0x379   : > { %9551 = vst [vmem:[#allocation102_spill] sm:$0xff] %v7802_v11  ;;  %v7810_v52 = vadd.f32 %v5029_v8, %v7491_v34  ;;  %v3404_v47 = vpop.f32.mrb[225].mxu1  ;;  %v3035_v56 = vpop.f32.mrb[211].mxu0 }
 0x37a   : > { %9552 = vst [vmem:[#allocation117_spill] sm:$0xff] %v7805_v54  ;;  %v7813_v63 = vadd.f32 %v3035_v56, %v7465_v0  ;;  %v7815_v43 = vpop.f32.mrb[226].mxu1  ;;  %v9559_v56 = vld [vmem:[#allocation73_spill] sm:$0xff] }
 0x37b   : > { %9553 = vst [vmem:[#allocation111_spill] sm:$0xff] %v7810_v52  ;;  %v3407_v21 = vpop.f32.mrb[227].mxu1 }
 0x37c   : > { %9554 = vst [vmem:[#allocation119_spill] sm:$0xff] %v7813_v63 }
 0x37e   : > { %v5032_v15 = vpop.f32.mrb[212].mxu0 }
 0x37f   : > { %v7818_v61 = vadd.f32 %v5032_v15, %v7532_v37  ;;  %v3048_v38 = vpop.f32.mrb[213].mxu0 }
 0x380   : > { %v7821_v54 = vadd.f32 %v3048_v38, %v9556_v59  ;;  %v7823_v11 = vpop.f32.mrb[228].mxu1  ;;  %v5033_v34 = vpop.f32.mrb[214].mxu0  ;;  %v7834_v38 = vld [vmem:[#allocation13] ss:$0 sm:$0xff] }
 0x381   : > { %9555 = vst [vmem:[#allocation113_spill] sm:$0xff] %v7818_v61  ;;  %v7826_v8 = vadd.f32 %v5033_v34, %v7543_v42  ;;  %v3412_v47 = vpop.f32.mrb[229].mxu1  ;;  %v3051_v0 = vpop.f32.mrb[215].mxu0 }
 0x382   : > { %9557 = vst [vmem:[#allocation69_spill] sm:$0xff] %v7821_v54  ;;  %v7829_v63 = vadd.f32 %v3051_v0, %v9559_v56  ;;  %v7831_v21 = vpop.f32.mrb[230].mxu1 }
 0x383   : > { %9558 = vst [vmem:[#allocation141_spill] sm:$0xff] %v7826_v8  ;;  %v3415_v52 = vpop.f32.mrb[231].mxu1 }
 0x384   : > { %9560 = vst [vmem:[#allocation140_spill] sm:$0xff] %v7829_v63 }
 0x386   : > { %v5052_v37 = vpop.f32.mrb[216].mxu0 }
 0x387   : > { %v3588_v15 = vadd.f32 %v5052_v37, %v7582_v27  ;;  %v3579_v61 = vpop.f32.mrb[217].mxu0 }
 0x388   : > { %v7836_v59 = vpop.f32.mrb[232].mxu1  ;;  %v3580_v54 = vadd.f32 %v3579_v61, %v7562_v1  ;;  %v5053_v42 = vpop.f32.mrb[218].mxu0 }
 0x389   : > { %v3836_v34 = vadd.f32 %v3588_v15, %v7557_v60  ;;  %v3420_v47 = vpop.f32.mrb[233].mxu1  ;;  %v3591_v0 = vadd.f32 %v5053_v42, %v7590_v30  ;;  %v3582_v56 = vpop.f32.mrb[219].mxu0 }
 0x38a   : > { %v3834_v8 = vadd.f32 %v3580_v54, %v7560_v55  ;;  %v7842_v52 = vpop.f32.mrb[234].mxu1  ;;  %v3583_v27 = vadd.f32 %v3582_v56, %v7570_v26 }
 0x38b   : > { %v7846_v37 = vadd.f32 %v7834_v38, %v3836_v34  ;;  %v3837_v63 = vadd.f32 %v3591_v0, %v7565_v12  ;;  %v3423_v17 = vpop.f32.mrb[235].mxu1 }
 0x38c   : > { %v7850_v1 = vadd.f32 %v7834_v38, %v3834_v8  ;;  %v3835_v60 = vadd.f32 %v3583_v27, %v7568_v2  ;;  %v9561_v27 = vld [vmem:[#allocation92_spill] sm:$0xff] }
 0x38d   : > { %v7855_v61 = vadd.f32 %v7834_v38, %v3837_v63 }
 0x38e   : > { %v7859_v26 = vadd.f32 %v7834_v38, %v3835_v60  ;;  %v5056_v54 = vpop.f32.mrb[220].mxu0 }
 0x38f   : > { %v3604_v12 = vadd.f32 %v5056_v54, %v7626_v40  ;;  %v3595_v17 = vpop.f32.mrb[221].mxu0 }
 0x390   : > { %v7864_v42 = vpop.f32.mrb[236].mxu1  ;;  %v3596_v2 = vadd.f32 %v3595_v17, %v7604_v51  ;;  %v5057_v34 = vpop.f32.mrb[222].mxu0 }
 0x391   : > { %v3840_v63 = vadd.f32 %v3604_v12, %v7577_v53  ;;  %v3428_v47 = vpop.f32.mrb[237].mxu1  ;;  %v3607_v0 = vadd.f32 %v5057_v34, %v7634_v45  ;;  %v3598_v56 = vpop.f32.mrb[223].mxu0  ;;  %v9562_v53 = vld [vmem:[#allocation120_spill] sm:$0xff] }
 0x392   : > { %v3838_v60 = vadd.f32 %v3596_v2, %v9561_v27  ;;  %v7870_v30 = vpop.f32.mrb[238].mxu1  ;;  %v3599_v40 = vadd.f32 %v3598_v56, %v7614_v29 }
 0x393   : > { %v7874_v54 = vadd.f32 %v7834_v38, %v3840_v63  ;;  %v3841_v15 = vadd.f32 %v3607_v0, %v7585_v5  ;;  %v3431_v8 = vpop.f32.mrb[239].mxu1  ;;  %v9564_v63 = vld [vmem:[#allocation29_spill] sm:$0xff] }
 0x394   : > { %v7878_v51 = vadd.f32 %v7834_v38, %v3838_v60  ;;  %v3839_v12 = vadd.f32 %v3599_v40, %v9562_v53 }
 0x395   : > { %v7883_v17 = vadd.f32 %v7834_v38, %v3841_v15 }
 0x396   : > { %v7887_v29 = vadd.f32 %v7834_v38, %v3839_v12  ;;  %v5060_v34 = vpop.f32.mrb[224].mxu0  ;;  %v9563_v12 = vld [vmem:[#allocation122_spill] sm:$0xff] }
 0x397   : > { %v3620_v5 = vadd.f32 %v5060_v34, %v7663_v33  ;;  %v3611_v8 = vpop.f32.mrb[225].mxu0 }
 0x398   : > { %v7892_v0 = vpop.f32.mrb[240].mxu1  ;;  %v3612_v56 = vadd.f32 %v3611_v8, %v7646_v50  ;;  %v5061_v27 = vpop.f32.mrb[226].mxu0 }
 0x399   : > { %v3844_v15 = vadd.f32 %v3620_v5, %v7599_v48  ;;  %v3436_v60 = vpop.f32.mrb[241].mxu1  ;;  %v3623_v40 = vadd.f32 %v5061_v27, %v7671_v35  ;;  %v3614_v53 = vpop.f32.mrb[227].mxu0  ;;  %v9565_v48 = vld [vmem:[#allocation93_spill] sm:$0xff] }
 0x39a   : > { %v3842_v45 = vadd.f32 %v3612_v56, %v9563_v12  ;;  %v7898_v2 = vpop.f32.mrb[242].mxu1  ;;  %v3615_v33 = vadd.f32 %v3614_v53, %v7655_v58 }
 0x39b   : > { %v7902_v34 = vadd.f32 %v7834_v38, %v3844_v15  ;;  %v3845_v47 = vadd.f32 %v3623_v40, %v9564_v63  ;;  %v3439_v55 = vpop.f32.mrb[243].mxu1 }
 0x39c   : > { %v7906_v50 = vadd.f32 %v7834_v38, %v3842_v45  ;;  %v3843_v5 = vadd.f32 %v3615_v33, %v9565_v48 }
 0x39d   : > { %v7911_v8 = vadd.f32 %v7834_v38, %v3845_v47 }
 0x39e   : > { %v7915_v58 = vadd.f32 %v7834_v38, %v3843_v5  ;;  %v5064_v27 = vpop.f32.mrb[228].mxu0 }
 0x39f   : > { %v3636_v55 = vadd.f32 %v5064_v27, %v7695_v10  ;;  %v3627_v63 = vpop.f32.mrb[229].mxu0 }
 0x3a0   : > { %v7920_v60 = vpop.f32.mrb[244].mxu1  ;;  %v3628_v40 = vadd.f32 %v3627_v63, %v7679_v62  ;;  %v5065_v53 = vpop.f32.mrb[230].mxu0 }
 0x3a1   : > { %v3848_v47 = vadd.f32 %v3636_v55, %v7621_v3  ;;  %v3444_v12 = vpop.f32.mrb[245].mxu1  ;;  %v3639_v33 = vadd.f32 %v5065_v53, %v7703_v16  ;;  %v3630_v48 = vpop.f32.mrb[231].mxu0  ;;  %v9569_v53 = vld [vmem:[#allocation78_spill] sm:$0xff] }
 0x3a2   : > { %v3846_v5 = vadd.f32 %v3628_v40, %v7624_v25  ;;  %v7926_v35 = vpop.f32.mrb[246].mxu1  ;;  %v3631_v10 = vadd.f32 %v3630_v48, %v7687_v24  ;;  %v9567_v40 = vld [vmem:[#allocation132_spill] sm:$0xff] }
 0x3a3   : > { %v7930_v27 = vadd.f32 %v7834_v38, %v3848_v47  ;;  %v3849_v15 = vadd.f32 %v3639_v33, %v7629_v9  ;;  %v3447_v45 = vpop.f32.mrb[247].mxu1 }
 0x3a4   : > { %v7934_v62 = vadd.f32 %v7834_v38, %v3846_v5  ;;  %v3847_v3 = vadd.f32 %v3631_v10, %v7632_v32  ;;  %v9566_v10 = vld [vmem:[#allocation118_spill] sm:$0xff] }
 0x3a5   : > { %v7939_v55 = vadd.f32 %v7834_v38, %v3849_v15 }
 0x3a6   : > { %v7943_v24 = vadd.f32 %v7834_v38, %v3847_v3  ;;  %v5068_v63 = vpop.f32.mrb[232].mxu0 }
 0x3a7   : > { %v3652_v9 = vadd.f32 %v5068_v63, %v7727_v22  ;;  %v3643_v45 = vpop.f32.mrb[233].mxu0 }
 0x3a8   : > { %v7948_v47 = vpop.f32.mrb[248].mxu1  ;;  %v3644_v32 = vadd.f32 %v3643_v45, %v7711_v18  ;;  %v5069_v12 = vpop.f32.mrb[234].mxu0 }
 0x3a9   : > { %v3852_v15 = vadd.f32 %v3652_v9, %v7641_v13  ;;  %v3452_v33 = vpop.f32.mrb[249].mxu1  ;;  %v3655_v48 = vadd.f32 %v5069_v12, %v7735_v36  ;;  %v3646_v5 = vpop.f32.mrb[235].mxu0  ;;  %v9570_v13 = vld [vmem:[#allocation59_spill] sm:$0xff] }
 0x3aa   : > { %v3850_v3 = vadd.f32 %v3644_v32, %v9566_v10  ;;  %v7954_v16 = vpop.f32.mrb[250].mxu1  ;;  %v3647_v22 = vadd.f32 %v3646_v5, %v9567_v40  ;;  %v9573_v36 = vld [vmem:[#allocation31_spill] sm:$0xff] }
 0x3ab   : > { %v7958_v63 = vadd.f32 %v7834_v38, %v3852_v15  ;;  %v3853_v25 = vadd.f32 %v3655_v48, %v9569_v53  ;;  %v3455_v56 = vpop.f32.mrb[251].mxu1  ;;  %v9575_v15 = vld [vmem:[#allocation94_spill] sm:$0xff] }
 0x3ac   : > { %v7962_v18 = vadd.f32 %v7834_v38, %v3850_v3  ;;  %v3851_v9 = vadd.f32 %v3647_v22, %v9570_v13 }
 0x3ad   : > { %9568 = vst [vmem:[#allocation51_spill] sm:$0xff] %v7958_v63  ;;  %v7967_v45 = vadd.f32 %v7834_v38, %v3853_v25  ;;  %v9572_v25 = vld [vmem:[#allocation63_spill] sm:$0xff] }
 0x3ae   : > { %v7971_v40 = vadd.f32 %v7834_v38, %v3851_v9  ;;  %v5072_v12 = vpop.f32.mrb[236].mxu0 }
 0x3af   : > { %9571 = vst [vmem:[#allocation103_spill] sm:$0xff] %v7967_v45  ;;  %v3668_v56 = vadd.f32 %v5072_v12, %v7759_v49  ;;  %v3659_v53 = vpop.f32.mrb[237].mxu0 }
 0x3b0   : > { %v7976_v48 = vpop.f32.mrb[252].mxu1  ;;  %v3660_v5 = vadd.f32 %v3659_v53, %v7743_v44  ;;  %v5073_v10 = vpop.f32.mrb[238].mxu0 }
 0x3b1   : > { %v3856_v3 = vadd.f32 %v3668_v56, %v9572_v25  ;;  %v3460_v22 = vpop.f32.mrb[253].mxu1  ;;  %v3671_v13 = vadd.f32 %v5073_v10, %v7767_v19  ;;  %v3662_v9 = vpop.f32.mrb[239].mxu0  ;;  %v9576_v56 = vld [vmem:[#allocation32_spill] sm:$0xff] }
 0x3b2   : > { %v3854_v32 = vadd.f32 %v3660_v5, %v9573_v36  ;;  %v7982_v63 = vpop.f32.mrb[254].mxu1  ;;  %v3663_v49 = vadd.f32 %v3662_v9, %v7751_v7  ;;  %v9579_v19 = vld [vmem:[#allocation124_spill] sm:$0xff] }
 0x3b3   : > { %v7986_v12 = vadd.f32 %v7834_v38, %v3856_v3  ;;  %v3857_v33 = vadd.f32 %v3671_v13, %v9575_v15  ;;  %v3463_v45 = vpop.f32.mrb[255].mxu1  ;;  %v9581_v25 = vld [vmem:[#allocation80_spill] sm:$0xff] }
 0x3b4   : > { %v7990_v44 = vadd.f32 %v7834_v38, %v3854_v32  ;;  %v3855_v53 = vadd.f32 %v3663_v49, %v9576_v56 }
 0x3b5   : > { %9574 = vst [vmem:[#allocation127_spill] sm:$0xff] %v7986_v12  ;;  %v7995_v10 = vadd.f32 %v7834_v38, %v3857_v33  ;;  %v9578_v33 = vld [vmem:[#allocation95_spill] sm:$0xff] }
 0x3b6   : > { %v7999_v7 = vadd.f32 %v7834_v38, %v3855_v53  ;;  %v5076_v5 = vpop.f32.mrb[240].mxu0 }
 0x3b7   : > { %9577 = vst [vmem:[#allocation123_spill] sm:$0xff] %v7995_v10  ;;  %v3684_v45 = vadd.f32 %v5076_v5, %v7791_v31  ;;  %v3675_v15 = vpop.f32.mrb[241].mxu0 }
 0x3b8   : > { %v8004_v3 = vpop.f32.mrb[0].mxu1  ;;  %v3676_v22 = vadd.f32 %v3675_v15, %v7775_v39  ;;  %v5077_v13 = vpop.f32.mrb[242].mxu0 }
 0x3b9   : > { %v3860_v9 = vadd.f32 %v3684_v45, %v9578_v33  ;;  %v3468_v49 = vpop.f32.mrb[1].mxu1  ;;  %v3687_v56 = vadd.f32 %v5077_v13, %v7799_v57  ;;  %v3678_v53 = vpop.f32.mrb[243].mxu0  ;;  %v9582_v45 = vld [vmem:[#allocation76_spill] sm:$0xff]  ;;  %v9585_v57 = vld [vmem:[#allocation35_spill] sm:$0xff] }
 0x3ba   : > { %v3858_v36 = vadd.f32 %v3676_v22, %v9579_v19  ;;  %v8010_v12 = vpop.f32.mrb[2].mxu1  ;;  %v3679_v31 = vadd.f32 %v3678_v53, %v7783_v23  ;;  %v9587_v33 = vld [vmem:[#allocation96_spill] sm:$0xff] }
 0x3bb   : > { %v8014_v5 = vadd.f32 %v7834_v38, %v3860_v9  ;;  %v3861_v32 = vadd.f32 %v3687_v56, %v9581_v25  ;;  %v3471_v10 = vpop.f32.mrb[3].mxu1 }
 0x3bc   : > { %v8018_v39 = vadd.f32 %v7834_v38, %v3858_v36  ;;  %v3859_v15 = vadd.f32 %v3679_v31, %v9582_v45 }
 0x3bd   : > { %9580 = vst [vmem:[#allocation128_spill] sm:$0xff] %v8014_v5  ;;  %v8023_v13 = vadd.f32 %v7834_v38, %v3861_v32  ;;  %v9584_v32 = vld [vmem:[#allocation77_spill] sm:$0xff] }
 0x3be   : > { %v8027_v23 = vadd.f32 %v7834_v38, %v3859_v15  ;;  %v5080_v22 = vpop.f32.mrb[244].mxu0 }
 0x3bf   : > { %9583 = vst [vmem:[#allocation125_spill] sm:$0xff] %v8023_v13  ;;  %v3700_v10 = vadd.f32 %v5080_v22, %v7823_v11  ;;  %v3691_v25 = vpop.f32.mrb[245].mxu0 }
 0x3c0   : > { %v8032_v9 = vpop.f32.mrb[4].mxu1  ;;  %v3692_v49 = vadd.f32 %v3691_v25, %v7807_v20  ;;  %v5081_v56 = vpop.f32.mrb[246].mxu0 }
 0x3c1   : > { %v3864_v53 = vadd.f32 %v3700_v10, %v9584_v32  ;;  %v3476_v31 = vpop.f32.mrb[5].mxu1  ;;  %v3703_v45 = vadd.f32 %v5081_v56, %v7831_v21  ;;  %v3694_v15 = vpop.f32.mrb[247].mxu0  ;;  %v9588_v10 = vld [vmem:[#allocation81_spill] sm:$0xff]  ;;  %v9592_v32 = vld [vmem:[#allocation39_spill] sm:$0xff] }
 0x3c2   : > { %v3862_v19 = vadd.f32 %v3692_v49, %v9585_v57  ;;  %v8038_v5 = vpop.f32.mrb[6].mxu1  ;;  %v3695_v11 = vadd.f32 %v3694_v15, %v7815_v43  ;;  %v9591_v21 = vld [vmem:[#allocation97_spill] sm:$0xff] }
 0x3c3   : > { %v8042_v22 = vadd.f32 %v7834_v38, %v3864_v53  ;;  %v3865_v36 = vadd.f32 %v3703_v45, %v9587_v33  ;;  %v3479_v13 = vpop.f32.mrb[7].mxu1 }
 0x3c4   : > { %v8046_v20 = vadd.f32 %v7834_v38, %v3862_v19  ;;  %v3863_v25 = vadd.f32 %v3695_v11, %v9588_v10 }
 0x3c5   : > { %9586 = vst [vmem:[#allocation52_spill] sm:$0xff] %v8042_v22  ;;  %v8051_v56 = vadd.f32 %v7834_v38, %v3865_v36  ;;  %v9590_v36 = vld [vmem:[#allocation36_spill] sm:$0xff] }
 0x3c6   : > { %v8055_v43 = vadd.f32 %v7834_v38, %v3863_v25  ;;  %v5084_v49 = vpop.f32.mrb[248].mxu0 }
 0x3c7   : > { %9589 = vst [vmem:[#allocation55_spill] sm:$0xff] %v8051_v56  ;;  %v3716_v13 = vadd.f32 %v5084_v49, %v7864_v42  ;;  %v3707_v33 = vpop.f32.mrb[249].mxu0 }
 0x3c8   : > { %v8060_v53 = vpop.f32.mrb[8].mxu1  ;;  %v3708_v31 = vadd.f32 %v3707_v33, %v7836_v59  ;;  %v5085_v45 = vpop.f32.mrb[250].mxu0 }
 0x3c9   : > { %v3868_v15 = vadd.f32 %v3716_v13, %v9590_v36  ;;  %v3484_v11 = vpop.f32.mrb[9].mxu1  ;;  %v3719_v10 = vadd.f32 %v5085_v45, %v7870_v30  ;;  %v3710_v25 = vpop.f32.mrb[251].mxu0  ;;  %v9593_v13 = vld [vmem:[#allocation98_spill] sm:$0xff] }
 0x3ca   : > { %v3866_v57 = vadd.f32 %v3708_v31, %v9591_v21  ;;  %v8066_v22 = vpop.f32.mrb[10].mxu1  ;;  %v3711_v42 = vadd.f32 %v3710_v25, %v7842_v52 }
 0x3cb   : > { %v8070_v49 = vadd.f32 %v7834_v38, %v3868_v15  ;;  %v3869_v19 = vadd.f32 %v3719_v10, %v9592_v32  ;;  %v3487_v56 = vpop.f32.mrb[11].mxu1 }
 0x3cc   : > { %v8074_v59 = vadd.f32 %v7834_v38, %v3866_v57  ;;  %v3867_v33 = vadd.f32 %v3711_v42, %v9593_v13 }
 0x3cd   : > { %v8079_v45 = vadd.f32 %v7834_v38, %v3869_v19 }
 0x3ce   : > { %v8083_v52 = vadd.f32 %v7834_v38, %v3867_v33  ;;  %v5088_v31 = vpop.f32.mrb[252].mxu0  ;;  %v9594_v33 = vld [vmem:[#allocation134_spill] sm:$0xff] }
 0x3cf   : > { %v3732_v56 = vadd.f32 %v5088_v31, %v7920_v60  ;;  %v3723_v32 = vpop.f32.mrb[253].mxu0 }
 0x3d0   : > { %v8088_v15 = vpop.f32.mrb[12].mxu1  ;;  %v3724_v11 = vadd.f32 %v3723_v32, %v7892_v0  ;;  %v5089_v10 = vpop.f32.mrb[254].mxu0 }
 0x3d1   : > { %v3872_v19 = vadd.f32 %v3732_v56, %v7722_v41  ;;  %v3492_v25 = vpop.f32.mrb[13].mxu1  ;;  %v3735_v42 = vadd.f32 %v5089_v10, %v7926_v35  ;;  %v3726_v13 = vpop.f32.mrb[255].mxu0  ;;  %v9595_v41 = vld [vmem:[#allocation40_spill] sm:$0xff] }
 0x3d2   : > { %v3870_v30 = vadd.f32 %v3724_v11, %v9594_v33  ;;  %v8094_v21 = vpop.f32.mrb[14].mxu1  ;;  %v3727_v60 = vadd.f32 %v3726_v13, %v7898_v2 }
 0x3d3   : > { %v8098_v31 = vadd.f32 %v7834_v38, %v3872_v19  ;;  %v3873_v36 = vadd.f32 %v3735_v42, %v7730_v4  ;;  %v3495_v57 = vpop.f32.mrb[15].mxu1  ;;  %v9599_v19 = vld [vmem:[#allocation130_spill] sm:$0xff] }
 0x3d4   : > { %v8102_v0 = vadd.f32 %v7834_v38, %v3870_v30  ;;  %v3871_v56 = vadd.f32 %v3727_v60, %v9595_v41 }
 0x3d5   : > { %v8107_v32 = vadd.f32 %v7834_v38, %v3873_v36 }
 0x3d6   : > { %v8111_v2 = vadd.f32 %v7834_v38, %v3871_v56  ;;  %v5092_v10 = vpop.f32.mrb[0].mxu0  ;;  %v9597_v56 = vld [vmem:[#allocation99_spill] sm:$0xff] }
 0x3d7   : > { %9596 = vst [vmem:[#allocation48_spill] sm:$0xff] %v8107_v32  ;;  %v3748_v4 = vadd.f32 %v5092_v10, %v7976_v48  ;;  %v3739_v57 = vpop.f32.mrb[1].mxu0 }
 0x3d8   : > { %v8116_v25 = vpop.f32.mrb[16].mxu1  ;;  %v3740_v42 = vadd.f32 %v3739_v57, %v7948_v47  ;;  %v5093_v13 = vpop.f32.mrb[2].mxu0 }
 0x3d9   : > { %v3876_v36 = vadd.f32 %v3748_v4, %v7738_v28  ;;  %v3500_v33 = vpop.f32.mrb[17].mxu1  ;;  %v3751_v60 = vadd.f32 %v5093_v13, %v7982_v63  ;;  %v3742_v41 = vpop.f32.mrb[3].mxu0  ;;  %v9600_v28 = vld [vmem:[#allocation133_spill] sm:$0xff] }
 0x3da   : > { %v3874_v35 = vadd.f32 %v3740_v42, %v9597_v56  ;;  %v8122_v11 = vpop.f32.mrb[18].mxu1  ;;  %v3743_v48 = vadd.f32 %v3742_v41, %v7954_v16  ;;  %v9602_v56 = vld [vmem:[#allocation41_spill] sm:$0xff] }
 0x3db   : > { %v8126_v10 = vadd.f32 %v7834_v38, %v3876_v36  ;;  %v3877_v30 = vadd.f32 %v3751_v60, %v9599_v19  ;;  %v3503_v32 = vpop.f32.mrb[19].mxu1 }
 0x3dc   : > { %v8130_v47 = vadd.f32 %v7834_v38, %v3874_v35  ;;  %v3875_v4 = vadd.f32 %v3743_v48, %v9600_v28 }
 0x3dd   : > { %9598 = vst [vmem:[#allocation44_spill] sm:$0xff] %v8126_v10  ;;  %v8135_v57 = vadd.f32 %v7834_v38, %v3877_v30 }
 0x3de   : > { %v8139_v16 = vadd.f32 %v7834_v38, %v3875_v4  ;;  %v5096_v13 = vpop.f32.mrb[4].mxu0  ;;  %v9603_v4 = vld [vmem:[#allocation100_spill] sm:$0xff] }
 0x3df   : > { %9601 = vst [vmem:[#allocation135_spill] sm:$0xff] %v8135_v57  ;;  %v3764_v32 = vadd.f32 %v5096_v13, %v8032_v9  ;;  %v3755_v19 = vpop.f32.mrb[5].mxu0  ;;  %v9604_v13 = vld [vmem:[#allocation136_spill] sm:$0xff] }
 0x3e0   : > { %v3506_v33 = vpop.f32.mrb[20].mxu1  ;;  %v3756_v60 = vadd.f32 %v3755_v19, %v8004_v3  ;;  %v5097_v41 = vpop.f32.mrb[6].mxu0  ;;  %v9605_v19 = vld [vmem:[#allocation138_spill] sm:$0xff] }
 0x3e1   : > { %v3880_v30 = vadd.f32 %v3764_v32, %v9602_v56  ;;  %v3508_v48 = vpop.f32.mrb[21].mxu1  ;;  %v3767_v28 = vadd.f32 %v5097_v41, %v8038_v5  ;;  %v3758_v63 = vpop.f32.mrb[7].mxu0 }
 0x3e2   : > { %v3878_v42 = vadd.f32 %v3756_v60, %v9603_v4  ;;  %v3509_v10 = vpop.f32.mrb[22].mxu1  ;;  %v3759_v36 = vadd.f32 %v3758_v63, %v8010_v12 }
 0x3e3   : > { %v8150_v9 = vadd.f32 %v7834_v38, %v3880_v30  ;;  %v3881_v35 = vadd.f32 %v3767_v28, %v9604_v13  ;;  %v3511_v57 = vpop.f32.mrb[23].mxu1 }
 0x3e4   : > { %v8154_v3 = vadd.f32 %v7834_v38, %v3878_v42  ;;  %v3879_v32 = vadd.f32 %v3759_v36, %v9605_v19 }
 0x3e5   : > { %v8159_v5 = vadd.f32 %v7834_v38, %v3881_v35 }
 0x3e6   : > { %v8163_v12 = vadd.f32 %v7834_v38, %v3879_v32  ;;  %v5100_v63 = vpop.f32.mrb[8].mxu0  ;;  %v9606_v32 = vld [vmem:[#allocation46_spill] sm:$0xff] }
 0x3e7   : > { %v3780_v57 = vadd.f32 %v5100_v63, %v8088_v15  ;;  %v3771_v30 = vpop.f32.mrb[9].mxu0 }
 0x3e8   : > { %v3514_v48 = vpop.f32.mrb[24].mxu1  ;;  %v3772_v36 = vadd.f32 %v3771_v30, %v8060_v53  ;;  %v5101_v28 = vpop.f32.mrb[10].mxu0  ;;  %v9608_v30 = vld [vmem:[#allocation101_spill] sm:$0xff] }
 0x3e9   : > { %v3884_v35 = vadd.f32 %v3780_v57, %v7770_v6  ;;  %v3516_v4 = vpop.f32.mrb[25].mxu1  ;;  %v3783_v13 = vadd.f32 %v5101_v28, %v8094_v21  ;;  %v3774_v19 = vpop.f32.mrb[11].mxu0  ;;  %v9610_v57 = vld [vmem:[#allocation54_spill] sm:$0xff] }
 0x3ea   : > { %v3882_v56 = vadd.f32 %v3772_v36, %v9606_v32  ;;  %v3517_v60 = vpop.f32.mrb[26].mxu1  ;;  %v3775_v41 = vadd.f32 %v3774_v19, %v8066_v22 }
 0x3eb   : > { %v8174_v15 = vadd.f32 %v7834_v38, %v3884_v35  ;;  %v3885_v63 = vadd.f32 %v3783_v13, %v7778_v14  ;;  %v3519_v42 = vpop.f32.mrb[27].mxu1 }
 0x3ec   : > { %v8178_v53 = vadd.f32 %v7834_v38, %v3882_v56  ;;  %v3883_v6 = vadd.f32 %v3775_v41, %v9608_v30 }
 0x3ed   : > { %9607 = vst [vmem:[#allocation131_spill] sm:$0xff] %v8174_v15  ;;  %v8183_v21 = vadd.f32 %v7834_v38, %v3885_v63 }
 0x3ee   : > { %v8187_v22 = vadd.f32 %v7834_v38, %v3883_v6  ;;  %v5104_v28 = vpop.f32.mrb[12].mxu0 }
 0x3ef   : > { %9609 = vst [vmem:[#allocation57_spill] sm:$0xff] %v8183_v21  ;;  %v3796_v14 = vadd.f32 %v5104_v28, %v3506_v33  ;;  %v3787_v42 = vpop.f32.mrb[13].mxu0  ;;  %v9612_v33 = vld [vmem:[#allocation137_spill] sm:$0xff] }
 0x3f0   : > { %v3522_v4 = vpop.f32.mrb[28].mxu1  ;;  %v3788_v41 = vadd.f32 %v3787_v42, %v8116_v25  ;;  %v5105_v13 = vpop.f32.mrb[14].mxu0  ;;  %v9614_v25 = vld [vmem:[#allocation47_spill] sm:$0xff] }
 0x3f1   : > { %v3888_v19 = vadd.f32 %v3796_v14, %v7786_v46  ;;  %v3524_v32 = vpop.f32.mrb[29].mxu1  ;;  %v3799_v63 = vadd.f32 %v5105_v13, %v3509_v10  ;;  %v3790_v30 = vpop.f32.mrb[15].mxu0  ;;  %v9616_v46 = vld [vmem:[#allocation117_spill] sm:$0xff] }
 0x3f2   : > { %v3886_v36 = vadd.f32 %v3788_v41, %v9610_v57  ;;  %v3525_v6 = vpop.f32.mrb[30].mxu1  ;;  %v3791_v15 = vadd.f32 %v3790_v30, %v8122_v11  ;;  %v9618_v41 = vld [vmem:[#allocation111_spill] sm:$0xff] }
 0x3f3   : > { %v8196_v35 = vadd.f32 %v7834_v38, %v3888_v19  ;;  %v3889_v28 = vadd.f32 %v3799_v63, %v9612_v33  ;;  %v3527_v56 = vpop.f32.mrb[31].mxu1  ;;  %v9615_v63 = vld [vmem:[#allocation102_spill] sm:$0xff] }
 0x3f4   : > { %v8200_v21 = vadd.f32 %v7834_v38, %v3886_v36  ;;  %v3887_v42 = vadd.f32 %v3791_v15, %v9614_v25 }
 0x3f5   : > { %9611 = vst [vmem:[#allocation58_spill] sm:$0xff] %v8196_v35  ;;  %v8205_v10 = vadd.f32 %v7834_v38, %v3889_v28 }
 0x3f6   : > { %9613 = vst [vmem:[#allocation75_spill] sm:$0xff] %v8200_v21  ;;  %v8209_v11 = vadd.f32 %v7834_v38, %v3887_v42  ;;  %v5108_v14 = vpop.f32.mrb[16].mxu0 }
 0x3f7   : > { %v3812_v13 = vadd.f32 %v5108_v14, %v3522_v4  ;;  %v3803_v56 = vpop.f32.mrb[17].mxu0 }
 0x3f8   : > { %v3530_v19 = vpop.f32.mrb[32].mxu1  ;;  %v3804_v32 = vadd.f32 %v3803_v56, %v3514_v48  ;;  %v5109_v15 = vpop.f32.mrb[18].mxu0  ;;  %v9620_v48 = vld [vmem:[#allocation119_spill] sm:$0xff] }
 0x3f9   : > { %v3892_v30 = vadd.f32 %v3812_v13, %v9615_v63  ;;  %v3532_v33 = vpop.f32.mrb[33].mxu1  ;;  %v3815_v28 = vadd.f32 %v5109_v15, %v3525_v6  ;;  %v3806_v25 = vpop.f32.mrb[19].mxu0 }
 0x3fa   : > { %v3890_v57 = vadd.f32 %v3804_v32, %v9616_v46  ;;  %v3533_v35 = vpop.f32.mrb[34].mxu1  ;;  %v3807_v42 = vadd.f32 %v3806_v25, %v3517_v60  ;;  %v9623_v46 = vld [vmem:[#allocation113_spill] sm:$0xff] }
 0x3fb   : > { %v8216_v21 = vadd.f32 %v7834_v38, %v3892_v30  ;;  %v3893_v4 = vadd.f32 %v3815_v28, %v9618_v41  ;;  %v3535_v14 = vpop.f32.mrb[35].mxu1 }
 0x3fc   : > { %v8220_v36 = vadd.f32 %v7834_v38, %v3890_v57  ;;  %v3891_v56 = vadd.f32 %v3807_v42, %v9620_v48  ;;  %v9622_v14 = vld [vmem:[#allocation69_spill] sm:$0xff] }
 0x3fd   : > { %9617 = vst [vmem:[#allocation61_spill] sm:$0xff] %v8216_v21  ;;  %v8225_v6 = vadd.f32 %v7834_v38, %v3893_v4 }
 0x3fe   : > { %9619 = vst [vmem:[#allocation83_spill] sm:$0xff] %v8220_v36  ;;  %v8229_v60 = vadd.f32 %v7834_v38, %v3891_v56  ;;  %v5112_v32 = vpop.f32.mrb[20].mxu0 }
 0x3ff   : > { %9621 = vst [vmem:[#allocation139_spill] sm:$0xff] %v8225_v6  ;;  %v3819_v41 = vpop.f32.mrb[21].mxu0  ;;  %v9624_v6 = vld [vmem:[#allocation140_spill] sm:$0xff] }
 0x400   : > { %v3538_v57 = vpop.f32.mrb[36].mxu1  ;;  %v3820_v30 = vadd.f32 %v3819_v41, %v3530_v19  ;;  %v5113_v33 = vpop.f32.mrb[22].mxu0 }
 0x401   : > { %v3828_v28 = vadd.f32 %v5112_v32, %v3538_v57  ;;  %v3540_v25 = vpop.f32.mrb[37].mxu1  ;;  %v3822_v42 = vpop.f32.mrb[23].mxu0  ;;  %v9625_v32 = vld [vmem:[#allocation141_spill] sm:$0xff] }
 0x402   : > { %v3894_v4 = vadd.f32 %v3820_v30, %v9622_v14  ;;  %v3541_v48 = vpop.f32.mrb[38].mxu1  ;;  %v3823_v13 = vadd.f32 %v3822_v42, %v3533_v35  ;;  %v9632_v25 = vmax.f32 (!%p4746_p5), %v7874_v54, 0.0  ;;  %v9633_v42 = vmax.f32 (!%p4746_p5), %v7883_v17, 0.0 }
 0x403   : > { %v3896_v56 = vadd.f32 %v3828_v28, %v9623_v46  ;;  %v3831_v21 = vadd.f32 %v5113_v33, %v3541_v48  ;;  %v3543_v36 = vpop.f32.mrb[39].mxu1  ;;  %4037 = sbr.rel (%p4746_p5) target bundleno = 1060 (0x424), region = 48  ;;  %v9631_v28 = vmax.f32 (!%p4746_p5), %v7887_v29, 0.0  ;;  %v9634_v14 = vmax.f32 (!%p4746_p5), %v7906_v50, 0.0 }
 0x404   : > { %v8236_v15 = vadd.f32 %v7834_v38, %v3894_v4  ;;  %v3895_v63 = vadd.f32 %v3823_v13, %v9624_v6  ;;  %v9628_v13 = vmax.f32 (!%p4746_p5), %v7846_v37, 0.0  ;;  %v9629_v6 = vmax.f32 (!%p4746_p5), %v7855_v61, 0.0  ;;  %4044 = vst [vmem:[%s8254_s17 + $0x30] sm:$0xff] (!%p4746_p5), %v9632_v25  ;;  %4045 = vst [vmem:[%s8254_s17 + $0x38] sm:$0xff] (!%p4746_p5), %v9633_v42  ;;  %v9646_v25 = vld [vmem:[#allocation103_spill] sm:$0xff] (!%p4746_p5) }
 0x405   : > { %v8240_v19 = vadd.f32 %v7834_v38, %v3896_v56  ;;  %v3897_v41 = vadd.f32 %v3831_v21, %v9625_v32  ;;  %v9626_v21 = vmax.f32 (!%p4746_p5), %v7850_v1, 0.0  ;;  %4043 = vst [vmem:[%s8254_s17 + $0x28] sm:$0xff] (!%p4746_p5), %v9631_v28  ;;  %4046 = vst [vmem:[%s8254_s17 + $0x40] sm:$0xff] (!%p4746_p5), %v9634_v14  ;;  %v9635_v4 = vmax.f32 (!%p4746_p5), %v7915_v58, 0.0 }
 0x406   : > { %v4029_v57 = vmax.f32 %v8236_v15, 0.0  ;;  %v8245_v30 = vadd.f32 %v7834_v38, %v3895_v63  ;;  %4040 = vst [vmem:[%s8254_s17 + $0x10] sm:$0xff] (!%p4746_p5), %v9628_v13  ;;  %4041 = vst [vmem:[%s8254_s17 + $0x18] sm:$0xff] (!%p4746_p5), %v9629_v6  ;;  %v9630_v63 = vmax.f32 (!%p4746_p5), %v7878_v51, 0.0  ;;  %v9636_v48 = vmax.f32 (!%p4746_p5), %v7902_v34, 0.0 }
 0x407   : > { %v4031_v35 = vmax.f32 %v8240_v19, 0.0  ;;  %v8249_v46 = vadd.f32 %v7834_v38, %v3897_v41  ;;  %4038 = vst [vmem:[%s8254_s17] sm:$0xff] (!%p4746_p5), %v9626_v21  ;;  %v9627_v38 = vmax.f32 (!%p4746_p5), %v7859_v26, 0.0  ;;  %4047 = vst [vmem:[%s8254_s17 + $0x48] sm:$0xff] (!%p4746_p5), %v9635_v4  ;;  %v9637_v56 = vmax.f32 (!%p4746_p5), %v7911_v8, 0.0 }
 0x408   : > { %v4030_v36 = vmax.f32 %v8245_v30, 0.0  ;;  %4042 = vst [vmem:[%s8254_s17 + $0x20] sm:$0xff] (!%p4746_p5), %v9630_v63  ;;  %4048 = vst [vmem:[%s8254_s17 + $0x50] sm:$0xff] (!%p4746_p5), %v9636_v48  ;;  %v9638_v32 = vmax.f32 (!%p4746_p5), %v7934_v62, 0.0  ;;  %v9639_v41 = vmax.f32 (!%p4746_p5), %v7943_v24, 0.0  ;;  %v9640_v21 = vmax.f32 (!%p4746_p5), %v7930_v27, 0.0 }
 0x409   : > { %v9140_v33 = vmax.f32 %v8249_v46, 0.0  ;;  %4039 = vst [vmem:[%s8254_s17 + $0x8] sm:$0xff] (!%p4746_p5), %v9627_v38  ;;  %4049 = vst [vmem:[%s8254_s17 + $0x58] sm:$0xff] (!%p4746_p5), %v9637_v56  ;;  %v9641_v38 = vmax.f32 (!%p4746_p5), %v7939_v55, 0.0  ;;  %v9642_v13 = vmax.f32 (!%p4746_p5), %v7962_v18, 0.0  ;;  %v9643_v6 = vmax.f32 (!%p4746_p5), %v7971_v40, 0.0 }
 0x40a   : > { %4050 = vst [vmem:[%s8254_s17 + $0x60] sm:$0xff] %v9638_v32  ;;  %4051 = vst [vmem:[%s8254_s17 + $0x68] sm:$0xff] %v9639_v41  ;;  %v9644_v63 = vld [vmem:[#allocation51_spill] sm:$0xff]  ;;  %v9647_v42 = vmax.f32 %v9646_v25, 0.0  ;;  %v9648_v14 = vmax.f32 %v7990_v44, 0.0  ;;  %v9649_v4 = vmax.f32 %v7999_v7, 0.0 }
 0x40b   : > { %4052 = vst [vmem:[%s8254_s17 + $0x70] sm:$0xff] %v9640_v21  ;;  %4053 = vst [vmem:[%s8254_s17 + $0x78] sm:$0xff] %v9641_v38  ;;  %v9645_v28 = vmax.f32 %v9644_v63, 0.0  ;;  %v9650_v48 = vld [vmem:[#allocation127_spill] sm:$0xff]  ;;  %v9654_v21 = vmax.f32 %v8018_v39, 0.0  ;;  %v9655_v38 = vmax.f32 %v8027_v23, 0.0 }
 0x40c   : > { %4054 = vst [vmem:[%s8254_s17 + $0x80] sm:$0xff] %v9642_v13  ;;  %4055 = vst [vmem:[%s8254_s17 + $0x88] sm:$0xff] %v9643_v6  ;;  %v9651_v56 = vmax.f32 %v9650_v48, 0.0  ;;  %v9652_v32 = vld [vmem:[#allocation123_spill] sm:$0xff]  ;;  %v9656_v13 = vld [vmem:[#allocation128_spill] sm:$0xff]  ;;  %v9660_v25 = vmax.f32 %v8046_v20, 0.0 }
 0x40d   : > { %4056 = vst [vmem:[%s8254_s17 + $0x90] sm:$0xff] %v9645_v28  ;;  %4057 = vst [vmem:[%s8254_s17 + $0x98] sm:$0xff] %v9647_v42  ;;  %v9653_v41 = vmax.f32 %v9652_v32, 0.0  ;;  %v9657_v6 = vmax.f32 %v9656_v13, 0.0  ;;  %v9658_v63 = vld [vmem:[#allocation125_spill] sm:$0xff]  ;;  %v9661_v42 = vmax.f32 %v8055_v43, 0.0 }
 0x40e   : > { %4058 = vst [vmem:[%s8254_s17 + $0xa0] sm:$0xff] %v9648_v14  ;;  %4059 = vst [vmem:[%s8254_s17 + $0xa8] sm:$0xff] %v9649_v4  ;;  %v9659_v28 = vmax.f32 %v9658_v63, 0.0  ;;  %v9662_v14 = vld [vmem:[#allocation52_spill] sm:$0xff]  ;;  %v9664_v48 = vld [vmem:[#allocation55_spill] sm:$0xff]  ;;  %v9666_v32 = vmax.f32 %v8074_v59, 0.0 }
 0x40f   : > { %4060 = vst [vmem:[%s8254_s17 + $0xb0] sm:$0xff] %v9651_v56  ;;  %4061 = vst [vmem:[%s8254_s17 + $0xb8] sm:$0xff] %v9653_v41  ;;  %v9663_v4 = vmax.f32 %v9662_v14, 0.0  ;;  %v9665_v56 = vmax.f32 %v9664_v48, 0.0  ;;  %v9667_v41 = vmax.f32 %v8083_v52, 0.0  ;;  %v9670_v13 = vmax.f32 %v8102_v0, 0.0 }
 0x410   : > { %4062 = vst [vmem:[%s8254_s17 + $0xc0] sm:$0xff] %v9654_v21  ;;  %4063 = vst [vmem:[%s8254_s17 + $0xc8] sm:$0xff] %v9655_v38  ;;  %v9668_v21 = vmax.f32 %v8070_v49, 0.0  ;;  %v9669_v38 = vmax.f32 %v8079_v45, 0.0  ;;  %v9672_v63 = vmax.f32 %v8098_v31, 0.0  ;;  %v9676_v14 = vmax.f32 %v8139_v16, 0.0 }
 0x411   : > { %4064 = vst [vmem:[%s8254_s17 + $0xd0] sm:$0xff] %v9657_v6  ;;  %4065 = vst [vmem:[%s8254_s17 + $0xd8] sm:$0xff] %v9659_v28  ;;  %v9671_v6 = vmax.f32 %v8111_v2, 0.0  ;;  %v9673_v28 = vld [vmem:[#allocation48_spill] sm:$0xff] }
 0x412   : > { %4066 = vst [vmem:[%s8254_s17 + $0xe0] sm:$0xff] %v9660_v25  ;;  %4067 = vst [vmem:[%s8254_s17 + $0xe8] sm:$0xff] %v9661_v42  ;;  %v9674_v25 = vmax.f32 %v9673_v28, 0.0  ;;  %v9675_v42 = vmax.f32 %v8130_v47, 0.0  ;;  %v9687_v28 = vld [vmem:[#allocation131_spill] sm:$0xff] }
 0x413   : > { %4068 = vst [vmem:[%s8254_s17 + $0xf0] sm:$0xff] %v9663_v4  ;;  %4069 = vst [vmem:[%s8254_s17 + $0xf8] sm:$0xff] %v9665_v56  ;;  %v9677_v4 = vld [vmem:[#allocation44_spill] sm:$0xff]  ;;  %v9679_v56 = vld [vmem:[#allocation135_spill] sm:$0xff] }
 0x414   : > { %4070 = vst [vmem:[%s8254_s17 + $0x100] sm:$0xff] %v9666_v32  ;;  %4071 = vst [vmem:[%s8254_s17 + $0x108] sm:$0xff] %v9667_v41  ;;  %v9678_v48 = vmax.f32 %v9677_v4, 0.0  ;;  %v9680_v32 = vmax.f32 %v9679_v56, 0.0  ;;  %v9681_v41 = vmax.f32 %v8154_v3, 0.0  ;;  %v9691_v4 = vld [vmem:[#allocation75_spill] sm:$0xff] }
 0x415   : > { %4072 = vst [vmem:[%s8254_s17 + $0x110] sm:$0xff] %v9668_v21  ;;  %4073 = vst [vmem:[%s8254_s17 + $0x118] sm:$0xff] %v9669_v38  ;;  %v9682_v21 = vmax.f32 %v8163_v12, 0.0  ;;  %v9683_v38 = vmax.f32 %v8150_v9, 0.0  ;;  %v9693_v56 = vmax.f32 %v8209_v11, 0.0 }
 0x416   : > { %4074 = vst [vmem:[%s8254_s17 + $0x120] sm:$0xff] %v9670_v13  ;;  %4075 = vst [vmem:[%s8254_s17 + $0x128] sm:$0xff] %v9671_v6  ;;  %v9684_v13 = vmax.f32 %v8159_v5, 0.0  ;;  %v9685_v6 = vmax.f32 %v8178_v53, 0.0 }
 0x417   : > { %4076 = vst [vmem:[%s8254_s17 + $0x130] sm:$0xff] %v9672_v63  ;;  %4077 = vst [vmem:[%s8254_s17 + $0x138] sm:$0xff] %v9674_v25  ;;  %v9686_v63 = vmax.f32 %v8187_v22, 0.0  ;;  %v9688_v25 = vmax.f32 %v9687_v28, 0.0 }
 0x418   : > { %4078 = vst [vmem:[%s8254_s17 + $0x140] sm:$0xff] %v9675_v42  ;;  %4079 = vst [vmem:[%s8254_s17 + $0x148] sm:$0xff] %v9676_v14  ;;  %v9689_v42 = vld [vmem:[#allocation57_spill] sm:$0xff] }
 0x419   : > { %4080 = vst [vmem:[%s8254_s17 + $0x150] sm:$0xff] %v9678_v48  ;;  %4081 = vst [vmem:[%s8254_s17 + $0x158] sm:$0xff] %v9680_v32  ;;  %v9690_v14 = vmax.f32 %v9689_v42, 0.0  ;;  %v9692_v48 = vmax.f32 %v9691_v4, 0.0  ;;  %v9694_v32 = vld [vmem:[#allocation58_spill] sm:$0xff] }
 0x41a   : > { %4082 = vst [vmem:[%s8254_s17 + $0x160] sm:$0xff] %v9681_v41  ;;  %4083 = vst [vmem:[%s8254_s17 + $0x168] sm:$0xff] %v9682_v21  ;;  %v9695_v41 = vmax.f32 %v9694_v32, 0.0  ;;  %v9696_v21 = vmax.f32 %v8205_v10, 0.0 }
 0x41b   : > { %4084 = vst [vmem:[%s8254_s17 + $0x170] sm:$0xff] %v9683_v38  ;;  %4085 = vst [vmem:[%s8254_s17 + $0x178] sm:$0xff] %v9684_v13  ;;  %v9697_v38 = vld [vmem:[#allocation83_spill] sm:$0xff] }
 0x41c   : > { %4086 = vst [vmem:[%s8254_s17 + $0x180] sm:$0xff] %v9685_v6  ;;  %4087 = vst [vmem:[%s8254_s17 + $0x188] sm:$0xff] %v9686_v63  ;;  %v9698_v13 = vmax.f32 %v9697_v38, 0.0  ;;  %v9699_v6 = vmax.f32 %v8229_v60, 0.0  ;;  %v9700_v63 = vld [vmem:[#allocation61_spill] sm:$0xff] }
 0x41d   : > { %4088 = vst [vmem:[%s8254_s17 + $0x190] sm:$0xff] %v9688_v25  ;;  %4089 = vst [vmem:[%s8254_s17 + $0x198] sm:$0xff] %v9690_v14  ;;  %v9701_v28 = vmax.f32 %v9700_v63, 0.0  ;;  %v9702_v25 = vld [vmem:[#allocation139_spill] sm:$0xff] }
 0x41e   : > { %4090 = vst [vmem:[%s8254_s17 + $0x1a0] sm:$0xff] %v9692_v48  ;;  %4091 = vst [vmem:[%s8254_s17 + $0x1a8] sm:$0xff] %v9693_v56  ;;  %v9703_v42 = vmax.f32 %v9702_v25, 0.0 }
 0x41f   : > { %4092 = vst [vmem:[%s8254_s17 + $0x1b0] sm:$0xff] %v9695_v41  ;;  %4093 = vst [vmem:[%s8254_s17 + $0x1b8] sm:$0xff] %v9696_v21 }
 0x420   : > { %4094 = vst [vmem:[%s8254_s17 + $0x1c0] sm:$0xff] %v9698_v13  ;;  %4095 = vst [vmem:[%s8254_s17 + $0x1c8] sm:$0xff] %v9699_v6 }
 0x421   : > { %4096 = vst [vmem:[%s8254_s17 + $0x1d0] sm:$0xff] %v9701_v28  ;;  %4097 = vst [vmem:[%s8254_s17 + $0x1d8] sm:$0xff] %v9703_v42 }
 0x422   : > { %4098 = vst [vmem:[%s8254_s17 + $0x1e0] sm:$0xff] %v4029_v57  ;;  %4099 = vst [vmem:[%s8254_s17 + $0x1e8] sm:$0xff] %v4030_v36 }
 0x423   : > { %4100 = vst [vmem:[%s8254_s17 + $0x1f0] sm:$0xff] %v4031_v35  ;;  %4101 = vst [vmem:[%s8254_s17 + $0x1f8] sm:$0xff] %v9140_v33 }
 0x424 PF: > { %s4102_s18 = sld [smem:[#allocation5 + %s5632_s4]] }
 0x42a   : > { %p4747_p4 = scmp.ne.s32.totalorder %s4102_s18, 0 }
 0x42b   : > { %v4107_v14 = vld [vmem:[%s8254_s17] sm:$0xff] (!%p4747_p4)  ;;  %v4108_v4 = vld [vmem:[%s8254_s17 + $0x8] sm:$0xff] (!%p4747_p4)  ;;  %v4109_v48 = vld [vmem:[%s8254_s17 + $0x10] sm:$0xff] (!%p4747_p4)  ;;  %v9704_v56 = vmax.f32 (!%p4747_p4), %v7850_v1, 0.0  ;;  %v9705_v41 = vmax.f32 (!%p4747_p4), %v7859_v26, 0.0  ;;  %v9706_v38 = vmax.f32 (!%p4747_p4), %v7846_v37, 0.0 }
 0x42c   : > { %4106 = sbr.rel (%p4747_p4) target bundleno = 1107 (0x453), region = 52  ;;  %v4110_v6 = vld [vmem:[%s8254_s17 + $0x18] sm:$0xff] (!%p4747_p4)  ;;  %v4111_v63 = vld [vmem:[%s8254_s17 + $0x20] sm:$0xff] (!%p4747_p4)  ;;  %v4112_v28 = vld [vmem:[%s8254_s17 + $0x28] sm:$0xff] (!%p4747_p4)  ;;  %v9707_v25 = vmax.f32 (!%p4747_p4), %v7855_v61, 0.0  ;;  %v9708_v33 = vmax.f32 (!%p4747_p4), %v7878_v51, 0.0 }
 0x42d   : > { %v4171_v32 = vadd.f32 (!%p4747_p4), %v4107_v14, %v9704_v56  ;;  %v4172_v21 = vadd.f32 (!%p4747_p4), %v4108_v4, %v9705_v41  ;;  %v4173_v13 = vadd.f32 (!%p4747_p4), %v4109_v48, %v9706_v38  ;;  %v9709_v26 = vmax.f32 (!%p4747_p4), %v7887_v29, 0.0  ;;  %v4113_v37 = vld [vmem:[%s8254_s17 + $0x30] sm:$0xff] (!%p4747_p4)  ;;  %v4114_v4 = vld [vmem:[%s8254_s17 + $0x38] sm:$0xff] (!%p4747_p4)  ;;  %v4115_v48 = vld [vmem:[%s8254_s17 + $0x40] sm:$0xff] (!%p4747_p4) }
 0x42e   : > { %v4174_v42 = vadd.f32 (!%p4747_p4), %v4110_v6, %v9707_v25  ;;  %v4175_v1 = vadd.f32 (!%p4747_p4), %v4111_v63, %v9708_v33  ;;  %v9710_v61 = vmax.f32 (!%p4747_p4), %v7874_v54, 0.0  ;;  %v9711_v51 = vmax.f32 (!%p4747_p4), %v7883_v17, 0.0  ;;  %v4116_v38 = vld [vmem:[%s8254_s17 + $0x48] sm:$0xff] (!%p4747_p4)  ;;  %v4117_v6 = vld [vmem:[%s8254_s17 + $0x50] sm:$0xff] (!%p4747_p4)  ;;  %v4118_v63 = vld [vmem:[%s8254_s17 + $0x58] sm:$0xff] (!%p4747_p4) }
 0x42f   : > { %v4176_v14 = vadd.f32 (!%p4747_p4), %v4112_v28, %v9709_v26  ;;  %4235 = vst [vmem:[%s8254_s17] sm:$0xff] (!%p4747_p4), %v4171_v32  ;;  %4236 = vst [vmem:[%s8254_s17 + $0x8] sm:$0xff] (!%p4747_p4), %v4172_v21  ;;  %v9712_v29 = vmax.f32 (!%p4747_p4), %v7906_v50, 0.0  ;;  %v9713_v54 = vmax.f32 (!%p4747_p4), %v7915_v58, 0.0  ;;  %v9714_v17 = vmax.f32 (!%p4747_p4), %v7902_v34, 0.0  ;;  %v4119_v28 = vld [vmem:[%s8254_s17 + $0x60] sm:$0xff] (!%p4747_p4)  ;;  %v4120_v25 = vld [vmem:[%s8254_s17 + $0x68] sm:$0xff] (!%p4747_p4) }
 0x430   : > { %4237 = vst [vmem:[%s8254_s17 + $0x10] sm:$0xff] (!%p4747_p4), %v4173_v13  ;;  %v4177_v56 = vadd.f32 (!%p4747_p4), %v4113_v37, %v9710_v61  ;;  %v4178_v33 = vadd.f32 (!%p4747_p4), %v4114_v4, %v9711_v51  ;;  %4238 = vst [vmem:[%s8254_s17 + $0x18] sm:$0xff] (!%p4747_p4), %v4174_v42  ;;  %v9715_v50 = vmax.f32 (!%p4747_p4), %v7911_v8, 0.0  ;;  %v4121_v26 = vld [vmem:[%s8254_s17 + $0x70] sm:$0xff] (!%p4747_p4)  ;;  %v9716_v58 = vmax.f32 (!%p4747_p4), %v7934_v62, 0.0  ;;  %v4122_v37 = vld [vmem:[%s8254_s17 + $0x78] sm:$0xff] (!%p4747_p4) }
 0x431   : > { %v4179_v41 = vadd.f32 (!%p4747_p4), %v4115_v48, %v9712_v29  ;;  %4239 = vst [vmem:[%s8254_s17 + $0x20] sm:$0xff] (!%p4747_p4), %v4175_v1  ;;  %4240 = vst [vmem:[%s8254_s17 + $0x28] sm:$0xff] (!%p4747_p4), %v4176_v14  ;;  %v4180_v32 = vadd.f32 (!%p4747_p4), %v4116_v38, %v9713_v54  ;;  %v4181_v21 = vadd.f32 (!%p4747_p4), %v4117_v6, %v9714_v17  ;;  %v9717_v34 = vmax.f32 (!%p4747_p4), %v7943_v24, 0.0  ;;  %v4123_v4 = vld [vmem:[%s8254_s17 + $0x80] sm:$0xff] (!%p4747_p4)  ;;  %v4124_v48 = vld [vmem:[%s8254_s17 + $0x88] sm:$0xff] (!%p4747_p4) }
 0x432   : > { %v4182_v13 = vadd.f32 (!%p4747_p4), %v4118_v63, %v9715_v50  ;;  %4241 = vst [vmem:[%s8254_s17 + $0x30] sm:$0xff] (!%p4747_p4), %v4177_v56  ;;  %4242 = vst [vmem:[%s8254_s17 + $0x38] sm:$0xff] (!%p4747_p4), %v4178_v33  ;;  %v4183_v42 = vadd.f32 (!%p4747_p4), %v4119_v28, %v9716_v58  ;;  %v9718_v8 = vmax.f32 (!%p4747_p4), %v7930_v27, 0.0  ;;  %v9719_v62 = vmax.f32 (!%p4747_p4), %v7939_v55, 0.0  ;;  %v4125_v33 = vld [vmem:[%s8254_s17 + $0x90] sm:$0xff] (!%p4747_p4)  ;;  %v4126_v29 = vld [vmem:[%s8254_s17 + $0x98] sm:$0xff] (!%p4747_p4) }
 0x433   : > { %4243 = vst [vmem:[%s8254_s17 + $0x40] sm:$0xff] %v4179_v41  ;;  %v4184_v1 = vadd.f32 %v4120_v25, %v9717_v34  ;;  %4244 = vst [vmem:[%s8254_s17 + $0x48] sm:$0xff] %v4180_v32  ;;  %v9720_v24 = vmax.f32 %v7962_v18, 0.0  ;;  %v9721_v27 = vmax.f32 %v7971_v40, 0.0  ;;  %v4127_v41 = vld [vmem:[%s8254_s17 + $0xa0] sm:$0xff]  ;;  %v9722_v55 = vld [vmem:[#allocation51_spill] sm:$0xff] }
 0x434   : > { %v4185_v14 = vadd.f32 %v4121_v26, %v9718_v8  ;;  %4245 = vst [vmem:[%s8254_s17 + $0x50] sm:$0xff] %v4181_v21  ;;  %4246 = vst [vmem:[%s8254_s17 + $0x58] sm:$0xff] %v4182_v13  ;;  %v4186_v61 = vadd.f32 %v4122_v37, %v9719_v62  ;;  %v9723_v38 = vmax.f32 %v9722_v55, 0.0  ;;  %v9724_v18 = vld [vmem:[#allocation103_spill] sm:$0xff]  ;;  %v9726_v40 = vmax.f32 %v7990_v44, 0.0  ;;  %v4128_v17 = vld [vmem:[%s8254_s17 + $0xa8] sm:$0xff] }
 0x435   : > { %v4187_v56 = vadd.f32 %v4123_v4, %v9720_v24  ;;  %v4188_v51 = vadd.f32 %v4124_v48, %v9721_v27  ;;  %4247 = vst [vmem:[%s8254_s17 + $0x60] sm:$0xff] %v4183_v42  ;;  %4248 = vst [vmem:[%s8254_s17 + $0x68] sm:$0xff] %v4184_v1  ;;  %v9725_v63 = vmax.f32 %v9724_v18, 0.0  ;;  %v4129_v21 = vld [vmem:[%s8254_s17 + $0xb0] sm:$0xff]  ;;  %v4130_v50 = vld [vmem:[%s8254_s17 + $0xb8] sm:$0xff]  ;;  %v9727_v13 = vmax.f32 %v7999_v7, 0.0 }
 0x436   : > { %4249 = vst [vmem:[%s8254_s17 + $0x70] sm:$0xff] %v4185_v14  ;;  %v4189_v6 = vadd.f32 %v4125_v33, %v9723_v38  ;;  %v4191_v32 = vadd.f32 %v4127_v41, %v9726_v40  ;;  %4250 = vst [vmem:[%s8254_s17 + $0x78] sm:$0xff] %v4186_v61  ;;  %v9728_v25 = vld [vmem:[#allocation127_spill] sm:$0xff]  ;;  %v4131_v1 = vld [vmem:[%s8254_s17 + $0xc0] sm:$0xff]  ;;  %v9732_v7 = vmax.f32 %v8018_v39, 0.0  ;;  %v9733_v4 = vmax.f32 %v8027_v23, 0.0 }
 0x437   : > { %v4190_v54 = vadd.f32 %v4126_v29, %v9725_v63  ;;  %4251 = vst [vmem:[%s8254_s17 + $0x80] sm:$0xff] %v4187_v56  ;;  %4252 = vst [vmem:[%s8254_s17 + $0x88] sm:$0xff] %v4188_v51  ;;  %v4192_v28 = vadd.f32 %v4128_v17, %v9727_v13  ;;  %v9729_v26 = vmax.f32 %v9728_v25, 0.0  ;;  %v9730_v44 = vld [vmem:[#allocation123_spill] sm:$0xff]  ;;  %v4132_v8 = vld [vmem:[%s8254_s17 + $0xc8] sm:$0xff]  ;;  %v9738_v23 = vmax.f32 %v8046_v20, 0.0 }
 0x438   : > { %v9731_v42 = vmax.f32 %v9730_v44, 0.0  ;;  %v4133_v14 = vld [vmem:[%s8254_s17 + $0xd0] sm:$0xff]  ;;  %4253 = vst [vmem:[%s8254_s17 + $0x90] sm:$0xff] %v4189_v6  ;;  %4255 = vst [vmem:[%s8254_s17 + $0xa0] sm:$0xff] %v4191_v32  ;;  %v4195_v37 = vadd.f32 %v4131_v1, %v9732_v7  ;;  %v4196_v48 = vadd.f32 %v4132_v8, %v9733_v4  ;;  %v9734_v62 = vld [vmem:[#allocation128_spill] sm:$0xff]  ;;  %v9739_v55 = vmax.f32 %v8055_v43, 0.0 }
 0x439   : > { %v4193_v58 = vadd.f32 %v4129_v21, %v9729_v26  ;;  %4254 = vst [vmem:[%s8254_s17 + $0x98] sm:$0xff] %v4190_v54  ;;  %v9735_v61 = vmax.f32 %v9734_v62, 0.0  ;;  %v4134_v56 = vld [vmem:[%s8254_s17 + $0xd8] sm:$0xff]  ;;  %v4135_v27 = vld [vmem:[%s8254_s17 + $0xe0] sm:$0xff]  ;;  %v4136_v51 = vld [vmem:[%s8254_s17 + $0xe8] sm:$0xff]  ;;  %v9744_v43 = vmax.f32 %v8074_v59, 0.0 }
 0x43a   : > { %v4194_v34 = vadd.f32 %v4130_v50, %v9731_v42  ;;  %4256 = vst [vmem:[%s8254_s17 + $0xa8] sm:$0xff] %v4192_v28  ;;  %v9736_v39 = vld [vmem:[#allocation125_spill] sm:$0xff]  ;;  %v4199_v41 = vadd.f32 %v4135_v27, %v9738_v23  ;;  %v4200_v38 = vadd.f32 %v4136_v51, %v9739_v55  ;;  %v4137_v6 = vld [vmem:[%s8254_s17 + $0xf0] sm:$0xff]  ;;  %v4138_v18 = vld [vmem:[%s8254_s17 + $0xf8] sm:$0xff]  ;;  %v9745_v26 = vmax.f32 %v8083_v52, 0.0 }
 0x43b   : > { %v4197_v24 = vadd.f32 %v4133_v14, %v9735_v61  ;;  %4257 = vst [vmem:[%s8254_s17 + $0xb0] sm:$0xff] %v4193_v58  ;;  %v9737_v33 = vmax.f32 %v9736_v39, 0.0  ;;  %v4139_v63 = vld [vmem:[%s8254_s17 + $0x100] sm:$0xff]  ;;  %4259 = vst [vmem:[%s8254_s17 + $0xc0] sm:$0xff] %v4195_v37  ;;  %v9742_v20 = vld [vmem:[#allocation55_spill] sm:$0xff]  ;;  %v9746_v44 = vmax.f32 %v8070_v49, 0.0 }
 0x43c   : > { %4258 = vst [vmem:[%s8254_s17 + $0xb8] sm:$0xff] %v4194_v34  ;;  %4260 = vst [vmem:[%s8254_s17 + $0xc8] sm:$0xff] %v4196_v48  ;;  %v9740_v54 = vld [vmem:[#allocation52_spill] sm:$0xff]  ;;  %v9743_v17 = vmax.f32 %v9742_v20, 0.0  ;;  %v4203_v50 = vadd.f32 %v4139_v63, %v9744_v43  ;;  %v4140_v13 = vld [vmem:[%s8254_s17 + $0x108] sm:$0xff]  ;;  %v9747_v59 = vmax.f32 %v8079_v45, 0.0 }
 0x43d   : > { %v4198_v29 = vadd.f32 %v4134_v56, %v9737_v33  ;;  %4261 = vst [vmem:[%s8254_s17 + $0xd0] sm:$0xff] %v4197_v24  ;;  %v9741_v40 = vmax.f32 %v9740_v54, 0.0  ;;  %v4141_v28 = vld [vmem:[%s8254_s17 + $0x110] sm:$0xff]  ;;  %v4142_v25 = vld [vmem:[%s8254_s17 + $0x118] sm:$0xff]  ;;  %4263 = vst [vmem:[%s8254_s17 + $0xe0] sm:$0xff] %v4199_v41  ;;  %v4204_v58 = vadd.f32 %v4140_v13, %v9745_v26  ;;  %v9748_v52 = vmax.f32 %v8102_v0, 0.0 }
 0x43e   : > { %v4202_v21 = vadd.f32 %v4138_v18, %v9743_v17  ;;  %4264 = vst [vmem:[%s8254_s17 + $0xe8] sm:$0xff] %v4200_v38  ;;  %v4205_v42 = vadd.f32 %v4141_v28, %v9746_v44  ;;  %v4206_v34 = vadd.f32 %v4142_v25, %v9747_v59  ;;  %v4143_v1 = vld [vmem:[%s8254_s17 + $0x120] sm:$0xff]  ;;  %v4144_v8 = vld [vmem:[%s8254_s17 + $0x128] sm:$0xff]  ;;  %v4145_v14 = vld [vmem:[%s8254_s17 + $0x130] sm:$0xff]  ;;  %v9749_v49 = vmax.f32 %v8111_v2, 0.0 }
 0x43f   : > { %v4201_v32 = vadd.f32 %v4137_v6, %v9741_v40  ;;  %4262 = vst [vmem:[%s8254_s17 + $0xd8] sm:$0xff] %v4198_v29  ;;  %4267 = vst [vmem:[%s8254_s17 + $0x100] sm:$0xff] %v4203_v50  ;;  %v4207_v7 = vadd.f32 %v4143_v1, %v9748_v52  ;;  %v9750_v45 = vmax.f32 %v8098_v31, 0.0  ;;  %v4146_v48 = vld [vmem:[%s8254_s17 + $0x138] sm:$0xff]  ;;  %v4147_v62 = vld [vmem:[%s8254_s17 + $0x140] sm:$0xff]  ;;  %v9753_v2 = vmax.f32 %v8130_v47, 0.0 }
 0x440   : > { %4266 = vst [vmem:[%s8254_s17 + $0xf8] sm:$0xff] %v4202_v21  ;;  %v4208_v37 = vadd.f32 %v4144_v8, %v9749_v49  ;;  %v4148_v61 = vld [vmem:[%s8254_s17 + $0x148] sm:$0xff]  ;;  %4268 = vst [vmem:[%s8254_s17 + $0x108] sm:$0xff] %v4204_v58  ;;  %v9751_v0 = vld [vmem:[#allocation48_spill] sm:$0xff]  ;;  %v9754_v31 = vmax.f32 %v8139_v16, 0.0  ;;  %v9759_v16 = vmax.f32 %v8154_v3, 0.0 }
 0x441   : > { %4265 = vst [vmem:[%s8254_s17 + $0xf0] sm:$0xff] %v4201_v32  ;;  %v4209_v4 = vadd.f32 %v4145_v14, %v9750_v45  ;;  %4269 = vst [vmem:[%s8254_s17 + $0x110] sm:$0xff] %v4205_v42  ;;  %v9752_v24 = vmax.f32 %v9751_v0, 0.0  ;;  %v4211_v27 = vadd.f32 %v4147_v62, %v9753_v2  ;;  %v4149_v39 = vld [vmem:[%s8254_s17 + $0x150] sm:$0xff]  ;;  %v4150_v33 = vld [vmem:[%s8254_s17 + $0x158] sm:$0xff]  ;;  %v9760_v32 = vmax.f32 %v8163_v12, 0.0 }
 0x442   : > { %4270 = vst [vmem:[%s8254_s17 + $0x118] sm:$0xff] %v4206_v34  ;;  %v4212_v51 = vadd.f32 %v4148_v61, %v9754_v31  ;;  %v4151_v29 = vld [vmem:[%s8254_s17 + $0x160] sm:$0xff]  ;;  %4271 = vst [vmem:[%s8254_s17 + $0x120] sm:$0xff] %v4207_v7  ;;  %v9757_v47 = vld [vmem:[#allocation135_spill] sm:$0xff]  ;;  %v9761_v17 = vmax.f32 %v8150_v9, 0.0  ;;  %v9762_v3 = vmax.f32 %v8159_v5, 0.0 }
 0x443   : > { %v4210_v56 = vadd.f32 %v4146_v48, %v9752_v24  ;;  %4272 = vst [vmem:[%s8254_s17 + $0x128] sm:$0xff] %v4208_v37  ;;  %4273 = vst [vmem:[%s8254_s17 + $0x130] sm:$0xff] %v4209_v4  ;;  %v9755_v23 = vld [vmem:[#allocation44_spill] sm:$0xff]  ;;  %v9758_v38 = vmax.f32 %v9757_v47, 0.0  ;;  %v4215_v18 = vadd.f32 %v4151_v29, %v9759_v16  ;;  %v4152_v63 = vld [vmem:[%s8254_s17 + $0x168] sm:$0xff]  ;;  %v9763_v12 = vmax.f32 %v8178_v53, 0.0 }
 0x444   : > { %v9756_v41 = vmax.f32 %v9755_v23, 0.0  ;;  %v4153_v54 = vld [vmem:[%s8254_s17 + $0x170] sm:$0xff]  ;;  %v4154_v40 = vld [vmem:[%s8254_s17 + $0x178] sm:$0xff]  ;;  %4275 = vst [vmem:[%s8254_s17 + $0x140] sm:$0xff] %v4211_v27  ;;  %4276 = vst [vmem:[%s8254_s17 + $0x148] sm:$0xff] %v4212_v51  ;;  %v4216_v20 = vadd.f32 %v4152_v63, %v9760_v32  ;;  %v9764_v9 = vmax.f32 %v8187_v22, 0.0 }
 0x445   : > { %v4214_v6 = vadd.f32 %v4150_v33, %v9758_v38  ;;  %4274 = vst [vmem:[%s8254_s17 + $0x138] sm:$0xff] %v4210_v56  ;;  %v4217_v21 = vadd.f32 %v4153_v54, %v9761_v17  ;;  %v4218_v43 = vadd.f32 %v4154_v40, %v9762_v3  ;;  %v4155_v50 = vld [vmem:[%s8254_s17 + $0x180] sm:$0xff]  ;;  %v4156_v13 = vld [vmem:[%s8254_s17 + $0x188] sm:$0xff]  ;;  %v4157_v28 = vld [vmem:[%s8254_s17 + $0x190] sm:$0xff]  ;;  %v9771_v7 = vmax.f32 %v8209_v11, 0.0 }
 0x446   : > { %v4213_v55 = vadd.f32 %v4149_v39, %v9756_v41  ;;  %4279 = vst [vmem:[%s8254_s17 + $0x160] sm:$0xff] %v4215_v18  ;;  %v4219_v25 = vadd.f32 %v4155_v50, %v9763_v12  ;;  %v4220_v26 = vadd.f32 %v4156_v13, %v9764_v9  ;;  %v9765_v5 = vld [vmem:[#allocation131_spill] sm:$0xff]  ;;  %v4159_v59 = vld [vmem:[%s8254_s17 + $0x1a0] sm:$0xff]  ;;  %v4160_v34 = vld [vmem:[%s8254_s17 + $0x1a8] sm:$0xff]  ;;  %v9774_v0 = vmax.f32 %v8205_v10, 0.0 }
 0x447   : > { %4278 = vst [vmem:[%s8254_s17 + $0x158] sm:$0xff] %v4214_v6  ;;  %v9766_v58 = vmax.f32 %v9765_v5, 0.0  ;;  %v4158_v42 = vld [vmem:[%s8254_s17 + $0x198] sm:$0xff]  ;;  %4280 = vst [vmem:[%s8254_s17 + $0x168] sm:$0xff] %v4216_v20  ;;  %v9767_v53 = vld [vmem:[#allocation57_spill] sm:$0xff]  ;;  %v4224_v49 = vadd.f32 %v4160_v34, %v9771_v7  ;;  %v9777_v39 = vmax.f32 %v8229_v60, 0.0 }
 0x448   : > { %4277 = vst [vmem:[%s8254_s17 + $0x150] sm:$0xff] %v4213_v55  ;;  %4281 = vst [vmem:[%s8254_s17 + $0x170] sm:$0xff] %v4217_v21  ;;  %v9768_v1 = vmax.f32 %v9767_v53, 0.0  ;;  %v9769_v22 = vld [vmem:[#allocation75_spill] sm:$0xff]  ;;  %v4161_v37 = vld [vmem:[%s8254_s17 + $0x1b0] sm:$0xff]  ;;  %v9782_v40 = vmax.f32 %v8249_v46, 0.0 }
 0x449   : > { %v4221_v44 = vadd.f32 %v4157_v28, %v9766_v58  ;;  %4282 = vst [vmem:[%s8254_s17 + $0x178] sm:$0xff] %v4218_v43  ;;  %v9770_v14 = vmax.f32 %v9769_v22, 0.0  ;;  %v4162_v45 = vld [vmem:[%s8254_s17 + $0x1b8] sm:$0xff]  ;;  %v4163_v4 = vld [vmem:[%s8254_s17 + $0x1c0] sm:$0xff]  ;;  %4283 = vst [vmem:[%s8254_s17 + $0x180] sm:$0xff] %v4219_v25 }
 0x44a   : > { %v4222_v8 = vadd.f32 %v4158_v42, %v9768_v1  ;;  %4284 = vst [vmem:[%s8254_s17 + $0x188] sm:$0xff] %v4220_v26  ;;  %v9772_v48 = vld [vmem:[#allocation58_spill] sm:$0xff]  ;;  %v4226_v24 = vadd.f32 %v4162_v45, %v9774_v0  ;;  %v9775_v11 = vld [vmem:[#allocation83_spill] sm:$0xff]  ;;  %v4164_v27 = vld [vmem:[%s8254_s17 + $0x1c8] sm:$0xff] }
 0x44b   : > { %v4223_v52 = vadd.f32 %v4159_v59, %v9770_v14  ;;  %4285 = vst [vmem:[%s8254_s17 + $0x190] sm:$0xff] %v4221_v44  ;;  %v9773_v62 = vmax.f32 %v9772_v48, 0.0  ;;  %v9776_v56 = vmax.f32 %v9775_v11, 0.0  ;;  %v4165_v31 = vld [vmem:[%s8254_s17 + $0x1d0] sm:$0xff]  ;;  %v4166_v51 = vld [vmem:[%s8254_s17 + $0x1d8] sm:$0xff]  ;;  %4288 = vst [vmem:[%s8254_s17 + $0x1a8] sm:$0xff] %v4224_v49  ;;  %v4228_v33 = vadd.f32 %v4164_v27, %v9777_v39 }
 0x44c   : > { %4286 = vst [vmem:[%s8254_s17 + $0x198] sm:$0xff] %v4222_v8  ;;  %v9778_v10 = vld [vmem:[#allocation61_spill] sm:$0xff]  ;;  %v9780_v41 = vld [vmem:[#allocation139_spill] sm:$0xff]  ;;  %v4167_v38 = vld [vmem:[%s8254_s17 + $0x1e0] sm:$0xff] }
 0x44d   : > { %v4225_v61 = vadd.f32 %v4161_v37, %v9773_v62  ;;  %v4227_v2 = vadd.f32 %v4163_v4, %v9776_v56  ;;  %4287 = vst [vmem:[%s8254_s17 + $0x1a0] sm:$0xff] %v4223_v52  ;;  %v9779_v29 = vmax.f32 %v9778_v10, 0.0  ;;  %v9781_v55 = vmax.f32 %v9780_v41, 0.0  ;;  %v4168_v6 = vld [vmem:[%s8254_s17 + $0x1e8] sm:$0xff]  ;;  %v4169_v16 = vld [vmem:[%s8254_s17 + $0x1f0] sm:$0xff]  ;;  %4290 = vst [vmem:[%s8254_s17 + $0x1b8] sm:$0xff] %v4226_v24 }
 0x44e   : > { %v4231_v60 = vadd.f32 %v4167_v38, %v4029_v57  ;;  %v4232_v18 = vadd.f32 %v4168_v6, %v4030_v36  ;;  %v4233_v63 = vadd.f32 %v4169_v16, %v4031_v35  ;;  %v4170_v54 = vld [vmem:[%s8254_s17 + $0x1f8] sm:$0xff]  ;;  %4292 = vst [vmem:[%s8254_s17 + $0x1c8] sm:$0xff] %v4228_v33 }
 0x44f   : > { %v4229_v23 = vadd.f32 %v4165_v31, %v9779_v29  ;;  %v4230_v47 = vadd.f32 %v4166_v51, %v9781_v55  ;;  %4289 = vst [vmem:[%s8254_s17 + $0x1b0] sm:$0xff] %v4225_v61  ;;  %4291 = vst [vmem:[%s8254_s17 + $0x1c0] sm:$0xff] %v4227_v2  ;;  %v4234_v32 = vadd.f32 %v4170_v54, %v9782_v40 }
 0x450   : > { %4295 = vst [vmem:[%s8254_s17 + $0x1e0] sm:$0xff] %v4231_v60  ;;  %4296 = vst [vmem:[%s8254_s17 + $0x1e8] sm:$0xff] %v4232_v18 }
 0x451   : > { %4293 = vst [vmem:[%s8254_s17 + $0x1d0] sm:$0xff] %v4229_v23  ;;  %4294 = vst [vmem:[%s8254_s17 + $0x1d8] sm:$0xff] %v4230_v47 }
 0x452   : > { %4297 = vst [vmem:[%s8254_s17 + $0x1f0] sm:$0xff] %v4233_v63  ;;  %4298 = vst [vmem:[%s8254_s17 + $0x1f8] sm:$0xff] %v4234_v32 }
 0x453 PF: > { %s4299_s6 = sld [smem:[#allocation6 + %s5632_s4]] }
 0x459   : > { %p4748_p8 = scmp.ne.s32.totalorder %s4299_s6, 1 }
 0x45a   : > { %s4368_s3 = sld [smem:[#allocation7 + %s5632_s4]] (!%p4748_p8)  ;;  %v4304_v57 = vld [vmem:[%s8254_s17] sm:$0xff] (!%p4748_p8)  ;;  %v4305_v30 = vld [vmem:[%s8254_s17 + $0x8] sm:$0xff] (!%p4748_p8)  ;;  %v4306_v35 = vld [vmem:[%s8254_s17 + $0x10] sm:$0xff] (!%p4748_p8) }
 0x45b   : > { %4303 = sbr.rel (%p4748_p8) target bundleno = 1220 (0x4c4), region = 56  ;;  %v4307_v46 = vld [vmem:[%s8254_s17 + $0x18] sm:$0xff] (!%p4748_p8)  ;;  %v4308_v36 = vld [vmem:[%s8254_s17 + $0x20] sm:$0xff] (!%p4748_p8)  ;;  %v4309_v20 = vld [vmem:[%s8254_s17 + $0x28] sm:$0xff] (!%p4748_p8) }
 0x45c   : > { %v4310_v17 = vld [vmem:[%s8254_s17 + $0x30] sm:$0xff] (!%p4748_p8)  ;;  %v4311_v21 = vld [vmem:[%s8254_s17 + $0x38] sm:$0xff] (!%p4748_p8)  ;;  %v4312_v3 = vld [vmem:[%s8254_s17 + $0x40] sm:$0xff] (!%p4748_p8) }
 0x45d   : > { %v4313_v43 = vld [vmem:[%s8254_s17 + $0x48] sm:$0xff] (!%p4748_p8)  ;;  %v4314_v50 = vld [vmem:[%s8254_s17 + $0x50] sm:$0xff] (!%p4748_p8)  ;;  %v4315_v13 = vld [vmem:[%s8254_s17 + $0x58] sm:$0xff] (!%p4748_p8) }
 0x45e   : > { %v4316_v28 = vld [vmem:[%s8254_s17 + $0x60] sm:$0xff] (!%p4748_p8)  ;;  %v4317_v12 = vld [vmem:[%s8254_s17 + $0x68] sm:$0xff] (!%p4748_p8)  ;;  %v4318_v25 = vld [vmem:[%s8254_s17 + $0x70] sm:$0xff] (!%p4748_p8) }
 0x45f   : > { %v4319_v9 = vld [vmem:[%s8254_s17 + $0x78] sm:$0xff] (!%p4748_p8)  ;;  %v4320_v26 = vld [vmem:[%s8254_s17 + $0x80] sm:$0xff] (!%p4748_p8)  ;;  %v4321_v5 = vld [vmem:[%s8254_s17 + $0x88] sm:$0xff] (!%p4748_p8) }
 0x460   : > { %s4369_s25 = scvt.s32.f32 (!%p4748_p8), %s4368_s3  ;;  %v4322_v58 = vld [vmem:[%s8254_s17 + $0x90] sm:$0xff] (!%p4748_p8)  ;;  %v4323_v44 = vld [vmem:[%s8254_s17 + $0x98] sm:$0xff] (!%p4748_p8)  ;;  %v4324_v59 = vld [vmem:[%s8254_s17 + $0xa0] sm:$0xff] (!%p4748_p8) }
 0x461   : > { %v4325_v34 = vld [vmem:[%s8254_s17 + $0xa8] sm:$0xff] (!%p4748_p8)  ;;  %v4326_v53 = vld [vmem:[%s8254_s17 + $0xb0] sm:$0xff] (!%p4748_p8)  ;;  %v4327_v1 = vld [vmem:[%s8254_s17 + $0xb8] sm:$0xff] (!%p4748_p8) }
 0x462   : > { %v4370_v15 = vstv %s4369_s25  ;;  %v4328_v7 = vld [vmem:[%s8254_s17 + $0xc0] sm:$0xff]  ;;  %v4329_v49 = vld [vmem:[%s8254_s17 + $0xc8] sm:$0xff]  ;;  %v4330_v37 = vld [vmem:[%s8254_s17 + $0xd0] sm:$0xff] }
 0x463   : > { %5382 = vrcp.f32 %v4370_v15  ;;  %v4331_v45 = vld [vmem:[%s8254_s17 + $0xd8] sm:$0xff]  ;;  %v4332_v0 = vld [vmem:[%s8254_s17 + $0xe0] sm:$0xff]  ;;  %v4333_v24 = vld [vmem:[%s8254_s17 + $0xe8] sm:$0xff] }
 0x464   : > { %v4334_v11 = vld [vmem:[%s8254_s17 + $0xf0] sm:$0xff]  ;;  %v4335_v56 = vld [vmem:[%s8254_s17 + $0xf8] sm:$0xff]  ;;  %v4336_v39 = vld [vmem:[%s8254_s17 + $0x100] sm:$0xff] }
 0x465   : > { %v4337_v33 = vld [vmem:[%s8254_s17 + $0x108] sm:$0xff]  ;;  %v4338_v10 = vld [vmem:[%s8254_s17 + $0x110] sm:$0xff]  ;;  %v4339_v29 = vld [vmem:[%s8254_s17 + $0x118] sm:$0xff] }
 0x466   : > { %v4340_v38 = vld [vmem:[%s8254_s17 + $0x120] sm:$0xff]  ;;  %v4341_v6 = vld [vmem:[%s8254_s17 + $0x128] sm:$0xff]  ;;  %v4342_v16 = vld [vmem:[%s8254_s17 + $0x130] sm:$0xff] }
 0x467   : > { %v4343_v60 = vld [vmem:[%s8254_s17 + $0x138] sm:$0xff]  ;;  %v4344_v32 = vld [vmem:[%s8254_s17 + $0x140] sm:$0xff]  ;;  %v4345_v15 = vld [vmem:[%s8254_s17 + $0x148] sm:$0xff] }
 0x46d   : > { %v5383_v19 = vpop.eup %5382 }
 0x46e   : > { %5134 = vpush %v5383_v19  ;;  %v4346_v19 = vld [vmem:[%s8254_s17 + $0x150] sm:$0xff] }
 0x49f   : > { %s5135_s15 = spop %5134 }
 0x4a0   : > { %v8728_v42 = vstv %s5135_s15 }
 0x4a1   : > { %v4374_v8 = vmul.f32 %v8728_v42, %v4304_v57  ;;  %v4375_v22 = vmul.f32 %v8728_v42, %v4305_v30  ;;  %v4376_v14 = vmul.f32 %v8728_v42, %v4306_v35  ;;  %v4377_v52 = vmul.f32 %v8728_v42, %v4307_v46 }
 0x4a2   : > { %v4378_v4 = vmul.f32 %v8728_v42, %v4308_v36  ;;  %v4379_v48 = vmul.f32 %v8728_v42, %v4309_v20  ;;  %v4380_v62 = vmul.f32 %v8728_v42, %v4310_v17  ;;  %v4381_v61 = vmul.f32 %v8728_v42, %v4311_v21  ;;  %v4347_v36 = vld [vmem:[%s8254_s17 + $0x158] sm:$0xff]  ;;  %v4348_v20 = vld [vmem:[%s8254_s17 + $0x160] sm:$0xff]  ;;  %v4349_v17 = vld [vmem:[%s8254_s17 + $0x168] sm:$0xff] }
 0x4a3   : > { %v4382_v2 = vmul.f32 %v8728_v42, %v4312_v3  ;;  %v4383_v27 = vmul.f32 %v8728_v42, %v4313_v43  ;;  %v4384_v31 = vmul.f32 %v8728_v42, %v4314_v50  ;;  %v4385_v51 = vmul.f32 %v8728_v42, %v4315_v13  ;;  %4438 = vst [vmem:[%s8254_s17] sm:$0xff] %v4374_v8  ;;  %v4350_v13 = vld [vmem:[%s8254_s17 + $0x170] sm:$0xff] }
 0x4a4   : > { %4439 = vst [vmem:[%s8254_s17 + $0x8] sm:$0xff] %v4375_v22  ;;  %4440 = vst [vmem:[%s8254_s17 + $0x10] sm:$0xff] %v4376_v14  ;;  %v4386_v23 = vmul.f32 %v8728_v42, %v4316_v28  ;;  %v4387_v41 = vmul.f32 %v8728_v42, %v4317_v12  ;;  %v4388_v55 = vmul.f32 %v8728_v42, %v4318_v25  ;;  %v4351_v28 = vld [vmem:[%s8254_s17 + $0x178] sm:$0xff]  ;;  %v4352_v12 = vld [vmem:[%s8254_s17 + $0x180] sm:$0xff] }
 0x4a5   : > { %4441 = vst [vmem:[%s8254_s17 + $0x18] sm:$0xff] %v4377_v52  ;;  %v4389_v47 = vmul.f32 %v8728_v42, %v4319_v9  ;;  %4442 = vst [vmem:[%s8254_s17 + $0x20] sm:$0xff] %v4378_v4  ;;  %v4390_v18 = vmul.f32 %v8728_v42, %v4320_v26  ;;  %v4391_v63 = vmul.f32 %v8728_v42, %v4321_v5  ;;  %v4356_v22 = vld [vmem:[%s8254_s17 + $0x1a0] sm:$0xff]  ;;  %v4357_v14 = vld [vmem:[%s8254_s17 + $0x1a8] sm:$0xff] }
 0x4a6   : > { %4443 = vst [vmem:[%s8254_s17 + $0x28] sm:$0xff] %v4379_v48  ;;  %4444 = vst [vmem:[%s8254_s17 + $0x30] sm:$0xff] %v4380_v62  ;;  %v4392_v54 = vmul.f32 %v8728_v42, %v4322_v58  ;;  %v4393_v40 = vmul.f32 %v8728_v42, %v4323_v44  ;;  %v4394_v57 = vmul.f32 %v8728_v42, %v4324_v59  ;;  %v4353_v58 = vld [vmem:[%s8254_s17 + $0x188] sm:$0xff]  ;;  %v4354_v44 = vld [vmem:[%s8254_s17 + $0x190] sm:$0xff] }
 0x4a7   : > { %4445 = vst [vmem:[%s8254_s17 + $0x38] sm:$0xff] %v4381_v61  ;;  %4446 = vst [vmem:[%s8254_s17 + $0x40] sm:$0xff] %v4382_v2  ;;  %v4395_v30 = vmul.f32 %v8728_v42, %v4325_v34  ;;  %v4396_v35 = vmul.f32 %v8728_v42, %v4326_v53  ;;  %v4397_v46 = vmul.f32 %v8728_v42, %v4327_v1  ;;  %v4355_v59 = vld [vmem:[%s8254_s17 + $0x198] sm:$0xff]  ;;  %v4358_v52 = vld [vmem:[%s8254_s17 + $0x1b0] sm:$0xff] }
 0x4a8   : > { %4447 = vst [vmem:[%s8254_s17 + $0x48] sm:$0xff] %v4383_v27  ;;  %4448 = vst [vmem:[%s8254_s17 + $0x50] sm:$0xff] %v4384_v31  ;;  %v4398_v21 = vmul.f32 %v8728_v42, %v4328_v7  ;;  %v4399_v3 = vmul.f32 %v8728_v42, %v4329_v49  ;;  %v4400_v43 = vmul.f32 %v8728_v42, %v4330_v37  ;;  %v4359_v4 = vld [vmem:[%s8254_s17 + $0x1b8] sm:$0xff]  ;;  %v4360_v48 = vld [vmem:[%s8254_s17 + $0x1c0] sm:$0xff] }
 0x4a9   : > { %4449 = vst [vmem:[%s8254_s17 + $0x58] sm:$0xff] %v4385_v51  ;;  %4450 = vst [vmem:[%s8254_s17 + $0x60] sm:$0xff] %v4386_v23  ;;  %v4401_v50 = vmul.f32 %v8728_v42, %v4331_v45  ;;  %v4402_v25 = vmul.f32 %v8728_v42, %v4332_v0  ;;  %v4403_v9 = vmul.f32 %v8728_v42, %v4333_v24  ;;  %v4361_v62 = vld [vmem:[%s8254_s17 + $0x1c8] sm:$0xff]  ;;  %v4363_v2 = vld [vmem:[%s8254_s17 + $0x1d8] sm:$0xff] }
 0x4aa   : > { %4451 = vst [vmem:[%s8254_s17 + $0x68] sm:$0xff] %v4387_v41  ;;  %4452 = vst [vmem:[%s8254_s17 + $0x70] sm:$0xff] %v4388_v55  ;;  %v4404_v26 = vmul.f32 %v8728_v42, %v4334_v11  ;;  %v4405_v5 = vmul.f32 %v8728_v42, %v4335_v56  ;;  %v4406_v34 = vmul.f32 %v8728_v42, %v4336_v39  ;;  %v4362_v56 = vld [vmem:[%s8254_s17 + $0x1d0] sm:$0xff]  ;;  %v4364_v27 = vld [vmem:[%s8254_s17 + $0x1e0] sm:$0xff] }
 0x4ab   : > { %4453 = vst [vmem:[%s8254_s17 + $0x78] sm:$0xff] %v4389_v47  ;;  %4454 = vst [vmem:[%s8254_s17 + $0x80] sm:$0xff] %v4390_v18  ;;  %v4407_v53 = vmul.f32 %v8728_v42, %v4337_v33  ;;  %v4408_v1 = vmul.f32 %v8728_v42, %v4338_v10  ;;  %v4409_v8 = vmul.f32 %v8728_v42, %v4339_v29  ;;  %v4365_v10 = vld [vmem:[%s8254_s17 + $0x1e8] sm:$0xff]  ;;  %v4366_v29 = vld [vmem:[%s8254_s17 + $0x1f0] sm:$0xff] }
 0x4ac   : > { %4455 = vst [vmem:[%s8254_s17 + $0x88] sm:$0xff] %v4391_v63  ;;  %4456 = vst [vmem:[%s8254_s17 + $0x90] sm:$0xff] %v4392_v54  ;;  %v4410_v7 = vmul.f32 %v8728_v42, %v4340_v38  ;;  %v4411_v49 = vmul.f32 %v8728_v42, %v4341_v6  ;;  %v4412_v37 = vmul.f32 %v8728_v42, %v4342_v16  ;;  %v4367_v23 = vld [vmem:[%s8254_s17 + $0x1f8] sm:$0xff] }
 0x4ad   : > { %4457 = vst [vmem:[%s8254_s17 + $0x98] sm:$0xff] %v4393_v40  ;;  %4458 = vst [vmem:[%s8254_s17 + $0xa0] sm:$0xff] %v4394_v57  ;;  %v4413_v45 = vmul.f32 %v8728_v42, %v4343_v60  ;;  %v4414_v61 = vmul.f32 %v8728_v42, %v4344_v32  ;;  %v4415_v0 = vmul.f32 %v8728_v42, %v4345_v15 }
 0x4ae   : > { %4459 = vst [vmem:[%s8254_s17 + $0xa8] sm:$0xff] %v4395_v30  ;;  %4460 = vst [vmem:[%s8254_s17 + $0xb0] sm:$0xff] %v4396_v35  ;;  %v4416_v24 = vmul.f32 %v8728_v42, %v4346_v19  ;;  %v4417_v11 = vmul.f32 %v8728_v42, %v4347_v36  ;;  %v4418_v31 = vmul.f32 %v8728_v42, %v4348_v20 }
 0x4af   : > { %4461 = vst [vmem:[%s8254_s17 + $0xb8] sm:$0xff] %v4397_v46  ;;  %4462 = vst [vmem:[%s8254_s17 + $0xc0] sm:$0xff] %v4398_v21  ;;  %v4419_v51 = vmul.f32 %v8728_v42, %v4349_v17  ;;  %v4420_v39 = vmul.f32 %v8728_v42, %v4350_v13  ;;  %v4421_v33 = vmul.f32 %v8728_v42, %v4351_v28 }
 0x4b0   : > { %4463 = vst [vmem:[%s8254_s17 + $0xc8] sm:$0xff] %v4399_v3  ;;  %4464 = vst [vmem:[%s8254_s17 + $0xd0] sm:$0xff] %v4400_v43  ;;  %v4422_v41 = vmul.f32 %v8728_v42, %v4352_v12  ;;  %v4423_v55 = vmul.f32 %v8728_v42, %v4353_v58  ;;  %v4424_v47 = vmul.f32 %v8728_v42, %v4354_v44 }
 0x4b1   : > { %4465 = vst [vmem:[%s8254_s17 + $0xd8] sm:$0xff] %v4401_v50  ;;  %4466 = vst [vmem:[%s8254_s17 + $0xe0] sm:$0xff] %v4402_v25  ;;  %v4425_v38 = vmul.f32 %v8728_v42, %v4355_v59  ;;  %v4426_v6 = vmul.f32 %v8728_v42, %v4356_v22  ;;  %v4427_v16 = vmul.f32 %v8728_v42, %v4357_v14 }
 0x4b2   : > { %4467 = vst [vmem:[%s8254_s17 + $0xe8] sm:$0xff] %v4403_v9  ;;  %4468 = vst [vmem:[%s8254_s17 + $0xf0] sm:$0xff] %v4404_v26  ;;  %v4428_v60 = vmul.f32 %v8728_v42, %v4358_v52  ;;  %v4429_v18 = vmul.f32 %v8728_v42, %v4359_v4  ;;  %v4430_v63 = vmul.f32 %v8728_v42, %v4360_v48 }
 0x4b3   : > { %4469 = vst [vmem:[%s8254_s17 + $0xf8] sm:$0xff] %v4405_v5  ;;  %4470 = vst [vmem:[%s8254_s17 + $0x100] sm:$0xff] %v4406_v34  ;;  %v4431_v54 = vmul.f32 %v8728_v42, %v4361_v62  ;;  %v4432_v40 = vmul.f32 %v8728_v42, %v4362_v56  ;;  %v4433_v32 = vmul.f32 %v8728_v42, %v4363_v2 }
 0x4b4   : > { %4471 = vst [vmem:[%s8254_s17 + $0x108] sm:$0xff] %v4407_v53  ;;  %4472 = vst [vmem:[%s8254_s17 + $0x110] sm:$0xff] %v4408_v1  ;;  %v4434_v15 = vmul.f32 %v8728_v42, %v4364_v27  ;;  %v4435_v19 = vmul.f32 %v8728_v42, %v4365_v10  ;;  %v4436_v57 = vmul.f32 %v8728_v42, %v4366_v29 }
 0x4b5   : > { %4473 = vst [vmem:[%s8254_s17 + $0x118] sm:$0xff] %v4409_v8  ;;  %4474 = vst [vmem:[%s8254_s17 + $0x120] sm:$0xff] %v4410_v7  ;;  %v4437_v30 = vmul.f32 %v8728_v42, %v4367_v23 }
 0x4b6   : > { %4475 = vst [vmem:[%s8254_s17 + $0x128] sm:$0xff] %v4411_v49  ;;  %4476 = vst [vmem:[%s8254_s17 + $0x130] sm:$0xff] %v4412_v37 }
 0x4b7   : > { %4477 = vst [vmem:[%s8254_s17 + $0x138] sm:$0xff] %v4413_v45  ;;  %4478 = vst [vmem:[%s8254_s17 + $0x140] sm:$0xff] %v4414_v61 }
 0x4b8   : > { %4479 = vst [vmem:[%s8254_s17 + $0x148] sm:$0xff] %v4415_v0  ;;  %4480 = vst [vmem:[%s8254_s17 + $0x150] sm:$0xff] %v4416_v24 }
 0x4b9   : > { %4481 = vst [vmem:[%s8254_s17 + $0x158] sm:$0xff] %v4417_v11  ;;  %4482 = vst [vmem:[%s8254_s17 + $0x160] sm:$0xff] %v4418_v31 }
 0x4ba   : > { %4483 = vst [vmem:[%s8254_s17 + $0x168] sm:$0xff] %v4419_v51  ;;  %4484 = vst [vmem:[%s8254_s17 + $0x170] sm:$0xff] %v4420_v39 }
 0x4bb   : > { %4485 = vst [vmem:[%s8254_s17 + $0x178] sm:$0xff] %v4421_v33  ;;  %4486 = vst [vmem:[%s8254_s17 + $0x180] sm:$0xff] %v4422_v41 }
 0x4bc   : > { %4487 = vst [vmem:[%s8254_s17 + $0x188] sm:$0xff] %v4423_v55  ;;  %4488 = vst [vmem:[%s8254_s17 + $0x190] sm:$0xff] %v4424_v47 }
 0x4bd   : > { %4489 = vst [vmem:[%s8254_s17 + $0x198] sm:$0xff] %v4425_v38  ;;  %4490 = vst [vmem:[%s8254_s17 + $0x1a0] sm:$0xff] %v4426_v6 }
 0x4be   : > { %4491 = vst [vmem:[%s8254_s17 + $0x1a8] sm:$0xff] %v4427_v16  ;;  %4492 = vst [vmem:[%s8254_s17 + $0x1b0] sm:$0xff] %v4428_v60 }
 0x4bf   : > { %4493 = vst [vmem:[%s8254_s17 + $0x1b8] sm:$0xff] %v4429_v18  ;;  %4494 = vst [vmem:[%s8254_s17 + $0x1c0] sm:$0xff] %v4430_v63 }
 0x4c0   : > { %4495 = vst [vmem:[%s8254_s17 + $0x1c8] sm:$0xff] %v4431_v54  ;;  %4496 = vst [vmem:[%s8254_s17 + $0x1d0] sm:$0xff] %v4432_v40 }
 0x4c1   : > { %4497 = vst [vmem:[%s8254_s17 + $0x1d8] sm:$0xff] %v4433_v32  ;;  %4498 = vst [vmem:[%s8254_s17 + $0x1e0] sm:$0xff] %v4434_v15 }
 0x4c2   : > { %4499 = vst [vmem:[%s8254_s17 + $0x1e8] sm:$0xff] %v4435_v19  ;;  %4500 = vst [vmem:[%s8254_s17 + $0x1f0] sm:$0xff] %v4436_v57 }
 0x4c3   : > { %4501 = vst [vmem:[%s8254_s17 + $0x1f8] sm:$0xff] %v4437_v30 }
 0x4c4 PF: > { %p9783_p0 = scmp.ne.s32.totalorder %s9147_s19, 0  ;;  %s5136_s21 = smul.u32 192, %s5636_s1 }
 0x4c5   : > { %s4519_s22 = sshll.u32 %s8254_s17, 4  ;;  %s8918_s2 = scalar_lea.sflag [#allocation10], %s253_s7  ;;  %s8909_s22 = int_to_ptr.vmem [resolvable:$true] %s4519_s22 }
 0x4c6   : > { %s5149_s24 = scalar_select %p9783_p0, [#allocation4], [#allocation16] }
 0x4c7   : > { %s9810_s4 = smov (!%p9783_p0, %s5632_s4), 0  ;;  %s5520_s26 = scalar_lea.vmem %s8909_s22, 8192 }
 0x4c8   : > { %s4510_s16 = sld [smem:[%s5149_s24 + %s9810_s4]]  ;;  %p5521_p10 = scmp.ne.s32.totalorder %s8909_s22, %s5520_s26 }
 0x4c9   : > { %s5661_s4 = smov [#allocation14]  }
 0x4ca   : > { %p5522_p12 = pnand %p5521_p10, %p9783_p0  ;;  %s5524_s1 = sshll.u32 %s5661_s4, 4  ;;  %s5525_s1 = int_to_ptr.vmem [resolvable:$false] %s5524_s1 }
 0x4cb   : > { %s5526_s17 = scalar_lea.vmem %s5525_s1, 16384  ;;  %p5527_p6 = scmp.lt.s32.totalorder %s8909_s22, %s5525_s1 }
 0x4cc   : > { %p5523_p1 = pneg %p5522_p12  ;;  %p5528_p9 = scmp.lt.s32.totalorder %s5526_s17, %s5520_s26 }
 0x4ce   : > { %s4750_s0 = sshll.u32 %s4510_s16, 6  ;;  %p5529_p13 = por %p5528_p9, %p5527_p6 }
 0x4cf   : > { %s4516_s20 = sadd.s32 %s5136_s21, %s4750_s0 }
 0x4d0   : > { %s4751_s27 = sshll.u32 %s4516_s20, 7  ;;  %p5530_p3 = pnand %p5529_p13, %p5523_p1 }
 0x4d1   : > { %s8914_s12 = scalar_lea.hbm %s8983_s8, %s4751_s27 }
 0x4d2   : > { %5533 = shalt.err (!%p5530_p3)
}
 0x4d3   : > { %s5534_s7 = scalar_lea.hbm %s8914_s12, 8192  ;;  %s5538_s3 = scalar_lea.hbm %s8983_s8, 49152 }
 0x4d4   : > { %p5535_p7 = scmp.ne.s32.totalorder %s8914_s12, %s5534_s7  ;;  %p5539_p5 = scmp.lt.u32.totalorder %s8914_s12, %s8983_s8 }
 0x4d5   : > { %p5540_p4 = scmp.lt.u32.totalorder %s5538_s3, %s5534_s7  ;;  %p5542_p10 = scmp.lt.u32.totalorder %s5534_s7, %s8914_s12 }
 0x4d6   : > { %p5536_p11 = pnand %p5535_p7, %p9783_p0 }
 0x4d7   : > { %p5541_p8 = por %p5540_p4, %p5539_p5 }
 0x4d8   : > { %p5537_p2 = pneg %p5536_p11 }
 0x4d9   : > { %p5543_p12 = por %p5542_p10, %p5541_p8 }
 0x4db   : > { %p5544_p1 = pnand %p5543_p12, %p5537_p2 }
 0x4dd   : > { %5547 = shalt.err (!%p5544_p1)
}
 0x4de   : > { %s5662_s24 = smov 128   ;;  %s5663_s16 = smov 8  }
 0x4df   : > { %5151 = dma.vmem_to_hbm [thread:$0]  (%p9783_p0), %s8909_s22, 8192, %s8914_s12, %s8918_s2, %s5662_s24, %s5662_s24, %s5663_s16  }
 0x4e0 PF: > { %s9784_s21 = sld [smem:[#allocation22_spill]]  ;;  %s9785_s0 = sld [smem:[#allocation24_spill]] }
 0x4e1   : > { %p5175_p6 = scmp.ge.s32.totalorder %s5648_s14, 2 }
 0x4e6   : > { %s4534_s20 = sand.u32 1, %s9784_s21   ;;  %p9786_p9 = scmp.ne.s32.totalorder %s9785_s0, 0 }
 0x4e7   : > { %s4535_s27 = scalar_lea.sflag [#allocation10], %s4534_s20 }
 0x4e8   : > { %p5167_p13 = pnand %p5175_p6, %p9786_p9 }
 0x4ea   : > { %5603 = dma.done.wait (!%p5167_p13), %s4535_s27, 8192  }
 0x4eb   : > { %5605 = vsyncadd (!%p5167_p13), %s4535_s27, 4294959104  ;;  %s37_s14 = sadd.s32 1, %s5648_s14   ;;  %s9787_s19 = sld [smem:[#allocation27_spill]] }
 0x4ec   : > { %p34_p3 = scmp.ge.s32.totalorder %s37_s14, 12   ;;  %s9788_s4 = sld [smem:[#allocation23_spill]] }
 0x4ed   : > { %s9789_s12 = sld [smem:[#allocation25_spill]]  ;;  %s9790_s22 = sld [smem:[#allocation26_spill]] }
 0x4ee   : > { %s9791_s3 = smov %s5612_s29  ;;  %s9792_s29 = smov %s5616_s30 }
 0x4ef   : > { %s9793_s30 = smov %s5944_s9  ;;  %s9794_s9 = smov %s5624_s10 }
 0x4f0   : > { %s9795_s10 = smov %s5628_s11  ;;  %s9797_s1 = smov %s5644_s13 }
 0x4f1   : > { %s9796_s11 = smov %s9787_s19  ;;  %36 = sbr.rel (!%p34_p3) target bundleno = 51 (0x33), region = 99 }
 0x4f3   : > { %s9798_s13 = smov %s9790_s22 }
 0x4f8   :  { %4540 = vsyncpa [#allocation9], 1 }
 0x4f9   :  { %4542 = vsyncpa [#allocation9 + $0x1], 1 }
 0x4fa   :  { %4543 = vsyncpa [#allocation12], 1 }
 0x4fb   :  { %4544 = vsyncpa [#allocation10], 1 }
 0x4fc   :  { %4546 = vsyncpa [#allocation10 + $0x1], 1 }

</bundles_post_ra>
